<compile_context>
chip_gen: v7x
topology: tpu7x:2x2x1
jax: 0.10.0
libtpu: 0.0.40
codegen_flags: <defaults>
</compile_context>

<pallas_src>
import functools

import jax
import jax.numpy as jnp
import numpy as np
from jax import lax
from jax.experimental import pallas as pl
from jax.experimental.pallas import tpu as pltpu

TAU = 2.0           # MultiStepLIFNode tau
V_TH = 1.0          # q/k/v/proj LIF threshold
V_TH_ATTN = 0.5     # attn_lif threshold
ATTN_SCALE = 0.125  # self.scale in SSA
BN_EPS = 1e-5


def ssa_kernel(T, N, Bb, shared, *refs):
    """One grid step = one batch block (Bb elems); lanes are t-major, b, n."""
    if shared:
        (x_ref, w_qkv_ref, b_qkv_ref, w_p_ref, b_p_ref, mask_ref, out_ref) = refs
    else:
        (q_ref, k_ref, v_ref, w_qkv_ref, b_qkv_ref,
         w_p_ref, b_p_ref, mask_ref, out_ref) = refs

    C = w_p_ref.shape[0]
    W = Bb * N                              # lanes per time step

    w_all = w_qkv_ref[...]                  # (3C, C)  BN-folded q/k/v weights
    b_all = b_qkv_ref[...]                  # (3C, 1)  BN-folded q/k/v biases
    mask = mask_ref[...]                    # (C, C)   block-diag head mask * 0.125

    # ---- q/k/v 1x1 conv (+ folded BN), batched over all T*Bb*N lanes -------
    if shared:
        x = x_ref[0]                        # (C, T*W), q = k = v input
        qkv = jnp.dot(w_all, x, preferred_element_type=jnp.float32) + b_all
        qc, kc, vc = qkv[0:C], qkv[C:2 * C], qkv[2 * C:3 * C]
    else:
        qc = jnp.dot(w_all[0:C], q_ref[0],
                     preferred_element_type=jnp.float32) + b_all[0:C]
        kc = jnp.dot(w_all[C:2 * C], k_ref[0],
                     preferred_element_type=jnp.float32) + b_all[C:2 * C]
        vc = jnp.dot(w_all[2 * C:], v_ref[0],
                     preferred_element_type=jnp.float32) + b_all[2 * C:]

    inv_tau = 1.0 / TAU

    def lif_step(mem, inp, thresh):
        mem = mem + (inp - mem) * inv_tau
        s = (mem >= thresh).astype(jnp.float32)
        return mem * (1.0 - s), s

    zero = jnp.zeros((C, W), jnp.float32)

    # ---- Phase 1: q/k/v LIF recurrences (pure VPU) --------------------------
    mem_q = mem_k = mem_v = zero
    q_sp, k_sp, v_sp = [], [], []
    for t in range(T):                      # T is small & static -> unrolled
        sl = slice(t * W, (t + 1) * W)
        mem_q, s = lif_step(mem_q, qc[:, sl], V_TH); q_sp.append(s)
        mem_k, s = lif_step(mem_k, kc[:, sl], V_TH); k_sp.append(s)
        mem_v, s = lif_step(mem_v, vc[:, sl], V_TH); v_sp.append(s)

    # ---- Phase 2: attention matmuls, hoisted out of the LIF recurrence so
    # they pipeline back-to-back on the MXU.  Per (t, b):
    #   kv[j,i]   = sum_n v[j,n] * k[i,n]
    #   attn[j,n] = 0.125 * sum_{i in head(j)} kv[j,i] * q[i,n]
    # Spikes are exactly 0/1 -> bf16 MXU operands are lossless; kv*0.125 with
    # counts <= N is exact in bf16.
    attn_pre = []
    for t in range(T):
        per_b = []
        for b in range(Bb):
            sb = slice(b * N, (b + 1) * N)
            kv = lax.dot_general(v_sp[t][:, sb].astype(jnp.bfloat16),
                                 k_sp[t][:, sb].astype(jnp.bfloat16),
                                 (((1,), (1,)), ((), ())),
                                 preferred_element_type=jnp.float32)   # (C, C)
            p = (kv * mask).astype(jnp.bfloat16)
            per_b.append(jnp.dot(p, q_sp[t][:, sb].astype(jnp.bfloat16),
                                 preferred_element_type=jnp.float32))  # (C, N)
        attn_pre.append(jnp.concatenate(per_b, axis=1))                # (C, W)

    # ---- Phase 3: attn LIF (threshold 0.5) ----------------------------------
    mem_a = zero
    a_sp = []
    for t in range(T):
        mem_a, s = lif_step(mem_a, attn_pre[t], V_TH_ATTN)
        a_sp.append(s)
    a_slab = jnp.concatenate(a_sp, axis=1)                             # (C, T*W)

    # ---- Phase 4: proj 1x1 conv (+ folded BN) on the whole slab -------------
    pc = jnp.dot(w_p_ref[...], a_slab,
                 preferred_element_type=jnp.float32) + b_p_ref[...]

    # ---- Phase 5: proj LIF; Phase 6: single lane-dense bf16 store -----------
    mem_p = zero
    outs = []
    for t in range(T):
        mem_p, s = lif_step(mem_p, pc[:, t * W:(t + 1) * W], V_TH)
        outs.append(s)
    out_ref[0] = jnp.concatenate(outs, axis=1).astype(out_ref.dtype)


def _fold_bn(w, b, gamma, beta, mean, var):
    """Fold inference-mode BatchNorm1d into a preceding 1x1 conv."""
    s = gamma / jnp.sqrt(var + BN_EPS)
    return w * s[:, None], s * (b - mean) + beta


def _pick_block_b(B, T, N):
    """Lane-dense batch block: Bb*N >= 128, Bb*T*N <= 2048, >=2 grid steps if possible."""
    bb = max(1, -(-128 // N))               # Bb*N >= 128 lanes
    bb = min(bb, max(1, 2048 // (T * N)))   # keep slab width <= 2048 lanes
    if B < 2 * bb:                          # tiny batch: lane density first
        bb = max(1, min(bb, B))
    return bb


def ssa_forward(q, k, v, params, num_heads, T, block_b=None):
    """Pallas SSA forward.  q/k/v: (B, C, N) (repeated over T) or (T, B, C, N)."""
    shared = (q is k) and (k is v)

    def expand(x):
        return jnp.broadcast_to(x[None], (T,) + x.shape) if x.ndim == 3 else x

    q = expand(q)
    k = q if shared else expand(k)
    v = q if shared else expand(v)
    Ts, B, C, N = q.shape
    Ch = C // num_heads

    bb = _pick_block_b(B, Ts, N) if block_b is None else block_b
    nb = -(-B // bb)                 # number of grid steps (>=2 on v7x when B allows)
    Bp = nb * bb                     # padded batch
    W = bb * N
    TW = Ts * W                      # lanes per grid step (lane-dense, mult of 128 here)

    def to_slab(x):
        if Bp != B:
            x = jnp.concatenate([x, jnp.zeros((Ts, Bp - B, C, N), x.dtype)], axis=1)
        # (T, Bp, C, N) -> (nb, C, T*bb*N) with lane = t*(bb*N) + b*N + n
        return jnp.transpose(x.reshape(Ts, nb, bb, C, N),
                             (1, 3, 0, 2, 4)).reshape(nb, C, TW)

    # fold BatchNorm (inference) into the 1x1-conv weights / biases (host side)
    w_in, b_in = params["in_proj_weight"], params["in_proj_bias"]
    wq, bq = _fold_bn(w_in[0:C], b_in[0:C], params["q_bn_gamma"],
                      params["q_bn_beta"], params["q_bn_mean"], params["q_bn_var"])
    wk, bk = _fold_bn(w_in[C:2 * C], b_in[C:2 * C], params["k_bn_gamma"],
                      params["k_bn_beta"], params["k_bn_mean"], params["k_bn_var"])
    wv, bv = _fold_bn(w_in[2 * C:], b_in[2 * C:], params["v_bn_gamma"],
                      params["v_bn_beta"], params["v_bn_mean"], params["v_bn_var"])
    wp, bp = _fold_bn(params["proj_weight"], params["proj_bias"],
                      params["proj_bn_gamma"], params["proj_bn_beta"],
                      params["proj_bn_mean"], params["proj_bn_var"])
    w_qkv = jnp.concatenate([wq, wk, wv], axis=0)                      # (3C, C)
    b_qkv = jnp.concatenate([bq, bk, bv], axis=0).reshape(3 * C, 1)
    b_p = bp.reshape(C, 1)

    # block-diagonal head mask, pre-scaled by the attention scale (0.125)
    hid = np.arange(C) // Ch
    mask = jnp.asarray((hid[:, None] == hid[None, :]).astype(np.float32) * ATTN_SCALE)

    kernel = functools.partial(ssa_kernel, Ts, N, bb, shared)

    def full_spec(shape):
        return pl.BlockSpec(shape, lambda i: (0,) * len(shape))

    slab_spec = pl.BlockSpec((1, C, TW), lambda i: (i, 0, 0))

    if shared:
        data_in = (to_slab(q),)
    else:
        data_in = (to_slab(q), to_slab(k), to_slab(v))
    data_specs = [slab_spec] * len(data_in)

    out_slab = pl.pallas_call(
        kernel,
        out_shape=jax.ShapeDtypeStruct((nb, C, TW), jnp.bfloat16),
        grid=(nb,),
        in_specs=data_specs + [full_spec((3 * C, C)), full_spec((3 * C, 1)),
                               full_spec((C, C)), full_spec((C, 1)),
                               full_spec((C, C))],
        out_specs=slab_spec,
        compiler_params=pltpu.CompilerParams(
            dimension_semantics=("parallel",)),
    )(*data_in, w_qkv, b_qkv, wp, b_p, mask)

    # (nb, C, T*bb*N) -> (T, Bp, C, N) -> drop batch padding, cast to f32
    out = out_slab.reshape(nb, C, Ts, bb, N).transpose(2, 0, 3, 1, 4)
    out = out.reshape(Ts, Bp, C, N)[:, :B]
    return out.astype(jnp.float32)


# ---------------- pure-JAX reference (for correctness check) ----------------

def _lif_ref(x, thresh):
    mem = jnp.zeros_like(x[0])
    outs = []
    for t in range(x.shape[0]):
        mem = mem + (x[t] - mem) * (1.0 / TAU)
        s = (mem >= thresh).astype(x.dtype)
        outs.append(s)
        mem = mem * (1.0 - s)
    return jnp.stack(outs, axis=0)


def ssa_ref(q, k, v, params, num_heads, T):
    def expand(x):
        return jnp.broadcast_to(x[None], (T,) + x.shape) if x.ndim == 3 else x
    q, k, v = expand(q), expand(k), expand(v)
    Ts, B, C, N = q.shape
    Ch = C // num_heads
    hp = lax.Precision.HIGHEST
    w_in, b_in = params["in_proj_weight"], params["in_proj_bias"]

    def conv_bn(x, wc, bc, g, be, m, va):
        y = jnp.einsum("oc,tbcn->tbon", wc, x, precision=hp) + bc[None, None, :, None]
        s = g / jnp.sqrt(va + BN_EPS)
        return y * s[None, None, :, None] + (be - m * s)[None, None, :, None]

    qs = _lif_ref(conv_bn(q, w_in[0:C], b_in[0:C], params["q_bn_gamma"],
                          params["q_bn_beta"], params["q_bn_mean"],
                          params["q_bn_var"]), V_TH)
    ks_ = _lif_ref(conv_bn(k, w_in[C:2 * C], b_in[C:2 * C], params["k_bn_gamma"],
                           params["k_bn_beta"], params["k_bn_mean"],
                           params["k_bn_var"]), V_TH)
    vs = _lif_ref(conv_bn(v, w_in[2 * C:], b_in[2 * C:], params["v_bn_gamma"],
                          params["v_bn_beta"], params["v_bn_mean"],
                          params["v_bn_var"]), V_TH)

    qh = qs.reshape(Ts, B, num_heads, Ch, N)
    kh = ks_.reshape(Ts, B, num_heads, Ch, N)
    vh = vs.reshape(Ts, B, num_heads, Ch, N)
    kv = jnp.einsum("tbhin,tbhjn->tbhij", kh, vh, precision=hp)        # k^T @ v
    att = jnp.einsum("tbhin,tbhij->tbhjn", qh, kv, precision=hp) * ATTN_SCALE
    att = _lif_ref(att.reshape(Ts, B, C, N), V_TH_ATTN)

    o = conv_bn(att, params["proj_weight"], params["proj_bias"],
                params["proj_bn_gamma"], params["proj_bn_beta"],
                params["proj_bn_mean"], params["proj_bn_var"])
    return _lif_ref(o, V_TH)


if __name__ == "__main__":
    T, B, C, N, H = 4, 16, 32, 16, 4   # dim=32, num_heads=4, seq len N=16
    key = jax.random.PRNGKey(0)
    ks = list(jax.random.split(key, 32))

    x = jax.random.normal(ks[0], (B, C, N), jnp.float32)    # shared q = k = v
    k2 = jax.random.normal(ks[1], (B, C, N), jnp.float32)   # distinct k / v path
    v2 = jax.random.normal(ks[2], (B, C, N), jnp.float32)

    w_in = jax.random.normal(ks[3], (3 * C, C), jnp.float32) * (2.5 / np.sqrt(C))
    b_in = 0.1 * jax.random.normal(ks[4], (3 * C,), jnp.float32)
    w_proj = jax.random.normal(ks[5], (C, C), jnp.float32) * (3.0 / np.sqrt(C))
    b_proj = 0.1 * jax.random.normal(ks[6], (C,), jnp.float32)

    def bn_group(i):
        g = 1.0 + 0.1 * jax.random.normal(ks[7 + 4 * i + 0], (C,), jnp.float32)
        be = 0.1 * jax.random.normal(ks[7 + 4 * i + 1], (C,), jnp.float32)
        m = 0.05 * jax.random.normal(ks[7 + 4 * i + 2], (C,), jnp.float32)
        va = 1.0 + 0.1 * jnp.abs(jax.random.normal(ks[7 + 4 * i + 3], (C,), jnp.float32))
        return g, be, m, va

    params = {"in_proj_weight": w_in, "in_proj_bias": b_in,
              "proj_weight": w_proj, "proj_bias": b_proj}
    for i, name in enumerate(["q", "k", "v", "proj"]):
        g, be, m, va = bn_group(i)
        params[f"{name}_bn_gamma"] = g
        params[f"{name}_bn_beta"] = be
        params[f"{name}_bn_mean"] = m
        params[f"{name}_bn_var"] = va

    def check(out, ref):
        assert out.shape == ref.shape
        # outputs are spike maps: every value must be exactly 0 or 1
        assert bool(jnp.all((out == 0.0) | (out == 1.0)))
        # A membrane potential sitting within float-rounding distance of the
        # LIF threshold can legitimately spike differently under the kernel's
        # BN-folded rounding vs. the conv-then-BN reference rounding (and such
        # a flip cascades through the spiking recurrence).  Allow a vanishing
        # fraction of flipped spikes (typically exactly zero); any real bug
        # (wrong mask / layout / recurrence) flips a large fraction.
        frac = float(jnp.mean(jnp.abs(out - ref) > 0.5))
        assert frac < 5e-3, f"spike mismatch fraction too large: {frac}"

    # shared-input path (q is k is v): single slab + fused (3C,C) conv matmul
    out = jax.block_until_ready(ssa_forward(x, x, x, params, num_heads=H, T=T))
    assert out.shape == (T, B, C, N)
    check(out, ssa_ref(x, x, x, params, num_heads=H, T=T))

    # distinct q/k/v path
    out2 = jax.block_until_ready(ssa_forward(x, k2, v2, params, num_heads=H, T=T))
    check(out2, ssa_ref(x, k2, v2, params, num_heads=H, T=T))

    print("KERNEL_OK")
</pallas_src>

<mosaic_0001>
module attributes {stable_mosaic.version = 11 : i64} {
  func.func @ssa_kernel(%arg0: i32, %arg1: memref<1x32x512xf32, #tpu.memory_space<vmem>>, %arg2: memref<96x32xf32, #tpu.memory_space<vmem>>, %arg3: memref<96x1xf32, #tpu.memory_space<vmem>>, %arg4: memref<32x32xf32, #tpu.memory_space<vmem>>, %arg5: memref<32x1xf32, #tpu.memory_space<vmem>>, %arg6: memref<32x32xf32, #tpu.memory_space<vmem>>, %arg7: memref<1x32x512xbf16, #tpu.memory_space<vmem>>) attributes {dimension_semantics = [#tpu.dimension_semantics<parallel>], iteration_bounds = array<i64: 2>, scalar_prefetch = 0 : i64, scratch_operands = 0 : i64, tpu.core_type = #tpu.core_type<tc>, window_params = [{transform_indices = @transform_0, window_bounds = array<i64: 1, 32, 512>}, {pipeline_mode = #tpu.pipeline_mode<synchronous>, transform_indices = @transform_1, window_bounds = array<i64: 96, 32>}, {pipeline_mode = #tpu.pipeline_mode<synchronous>, transform_indices = @transform_2, window_bounds = array<i64: 96, 1>}, {pipeline_mode = #tpu.pipeline_mode<synchronous>, transform_indices = @transform_3, window_bounds = array<i64: 32, 32>}, {pipeline_mode = #tpu.pipeline_mode<synchronous>, transform_indices = @transform_4, window_bounds = array<i64: 32, 1>}, {pipeline_mode = #tpu.pipeline_mode<synchronous>, transform_indices = @transform_5, window_bounds = array<i64: 32, 32>}, {transform_indices = @transform_6, window_bounds = array<i64: 1, 32, 512>}]} {
    %c0 = arith.constant 0 : index
    %c0_0 = arith.constant 0 : index
    %0 = vector.load %arg2[%c0, %c0_0] : memref<96x32xf32, #tpu.memory_space<vmem>>, vector<96x32xf32>
    %c0_1 = arith.constant 0 : index
    %c0_2 = arith.constant 0 : index
    %1 = vector.load %arg3[%c0_1, %c0_2] : memref<96x1xf32, #tpu.memory_space<vmem>>, vector<96x1xf32>
    %c0_3 = arith.constant 0 : index
    %c0_4 = arith.constant 0 : index
    %2 = vector.load %arg6[%c0_3, %c0_4] : memref<32x32xf32, #tpu.memory_space<vmem>>, vector<32x32xf32>
    %c0_5 = arith.constant 0 : index
    %c0_6 = arith.constant 0 : index
    %c0_7 = arith.constant 0 : index
    %3 = vector.load %arg1[%c0_5, %c0_6, %c0_7] : memref<1x32x512xf32, #tpu.memory_space<vmem>>, vector<1x32x512xf32>
    %4 = vector.shape_cast %3 : vector<1x32x512xf32> to vector<32x512xf32>
    %cst = arith.constant dense<0.000000e+00> : vector<96x512xf32>
    %5 = tpu.matmul %0, %4, %cst {dimension_numbers = #tpu.dot_dimension_numbers<[1], [0], [0], [1], [0, 0, 1, 1], [], []>} : vector<96x32xf32>, vector<32x512xf32>, vector<96x512xf32> -> vector<96x512xf32>
    %6 = vector.broadcast %1 : vector<96x1xf32> to vector<96x512xf32>
    %7 = arith.addf %5, %6 : vector<96x512xf32>
    %8 = vector.extract_strided_slice %7 {offsets = [0, 0], sizes = [32, 512], strides = [1, 1]} : vector<96x512xf32> to vector<32x512xf32>
    %9 = vector.extract_strided_slice %7 {offsets = [32, 0], sizes = [32, 512], strides = [1, 1]} : vector<96x512xf32> to vector<32x512xf32>
    %10 = vector.extract_strided_slice %7 {offsets = [64, 0], sizes = [32, 512], strides = [1, 1]} : vector<96x512xf32> to vector<32x512xf32>
    %cst_8 = arith.constant 0.000000e+00 : f32
    %11 = vector.broadcast %cst_8 : f32 to vector<32x128xf32>
    %12 = vector.extract_strided_slice %8 {offsets = [0, 0], sizes = [32, 128], strides = [1, 1]} : vector<32x512xf32> to vector<32x128xf32>
    %13 = arith.subf %12, %11 : vector<32x128xf32>
    %cst_9 = arith.constant 5.000000e-01 : f32
    %14 = vector.broadcast %cst_9 : f32 to vector<32x128xf32>
    %15 = arith.mulf %13, %14 : vector<32x128xf32>
    %16 = arith.addf %11, %15 : vector<32x128xf32>
    %cst_10 = arith.constant 1.000000e+00 : f32
    %17 = vector.broadcast %cst_10 : f32 to vector<32x128xf32>
    %18 = arith.cmpf oge, %16, %17 : vector<32x128xf32>
    %19 = arith.extui %18 : vector<32x128xi1> to vector<32x128xi32>
    %20 = arith.sitofp %19 : vector<32x128xi32> to vector<32x128xf32>
    %cst_11 = arith.constant 1.000000e+00 : f32
    %21 = vector.broadcast %cst_11 : f32 to vector<32x128xf32>
    %22 = arith.subf %21, %20 : vector<32x128xf32>
    %23 = arith.mulf %16, %22 : vector<32x128xf32>
    %24 = vector.extract_strided_slice %9 {offsets = [0, 0], sizes = [32, 128], strides = [1, 1]} : vector<32x512xf32> to vector<32x128xf32>
    %25 = arith.subf %24, %11 : vector<32x128xf32>
    %cst_12 = arith.constant 5.000000e-01 : f32
    %26 = vector.broadcast %cst_12 : f32 to vector<32x128xf32>
    %27 = arith.mulf %25, %26 : vector<32x128xf32>
    %28 = arith.addf %11, %27 : vector<32x128xf32>
    %cst_13 = arith.constant 1.000000e+00 : f32
    %29 = vector.broadcast %cst_13 : f32 to vector<32x128xf32>
    %30 = arith.cmpf oge, %28, %29 : vector<32x128xf32>
    %31 = arith.extui %30 : vector<32x128xi1> to vector<32x128xi32>
    %32 = arith.sitofp %31 : vector<32x128xi32> to vector<32x128xf32>
    %cst_14 = arith.constant 1.000000e+00 : f32
    %33 = vector.broadcast %cst_14 : f32 to vector<32x128xf32>
    %34 = arith.subf %33, %32 : vector<32x128xf32>
    %35 = arith.mulf %28, %34 : vector<32x128xf32>
    %36 = vector.extract_strided_slice %10 {offsets = [0, 0], sizes = [32, 128], strides = [1, 1]} : vector<32x512xf32> to vector<32x128xf32>
    %37 = arith.subf %36, %11 : vector<32x128xf32>
    %cst_15 = arith.constant 5.000000e-01 : f32
    %38 = vector.broadcast %cst_15 : f32 to vector<32x128xf32>
    %39 = arith.mulf %37, %38 : vector<32x128xf32>
    %40 = arith.addf %11, %39 : vector<32x128xf32>
    %cst_16 = arith.constant 1.000000e+00 : f32
    %41 = vector.broadcast %cst_16 : f32 to vector<32x128xf32>
    %42 = arith.cmpf oge, %40, %41 : vector<32x128xf32>
    %43 = arith.extui %42 : vector<32x128xi1> to vector<32x128xi32>
    %44 = arith.sitofp %43 : vector<32x128xi32> to vector<32x128xf32>
    %cst_17 = arith.constant 1.000000e+00 : f32
    %45 = vector.broadcast %cst_17 : f32 to vector<32x128xf32>
    %46 = arith.subf %45, %44 : vector<32x128xf32>
    %47 = arith.mulf %40, %46 : vector<32x128xf32>
    %48 = vector.extract_strided_slice %8 {offsets = [0, 128], sizes = [32, 128], strides = [1, 1]} : vector<32x512xf32> to vector<32x128xf32>
    %49 = arith.subf %48, %23 : vector<32x128xf32>
    %cst_18 = arith.constant 5.000000e-01 : f32
    %50 = vector.broadcast %cst_18 : f32 to vector<32x128xf32>
    %51 = arith.mulf %49, %50 : vector<32x128xf32>
    %52 = arith.addf %23, %51 : vector<32x128xf32>
    %cst_19 = arith.constant 1.000000e+00 : f32
    %53 = vector.broadcast %cst_19 : f32 to vector<32x128xf32>
    %54 = arith.cmpf oge, %52, %53 : vector<32x128xf32>
    %55 = arith.extui %54 : vector<32x128xi1> to vector<32x128xi32>
    %56 = arith.sitofp %55 : vector<32x128xi32> to vector<32x128xf32>
    %cst_20 = arith.constant 1.000000e+00 : f32
    %57 = vector.broadcast %cst_20 : f32 to vector<32x128xf32>
    %58 = arith.subf %57, %56 : vector<32x128xf32>
    %59 = arith.mulf %52, %58 : vector<32x128xf32>
    %60 = vector.extract_strided_slice %9 {offsets = [0, 128], sizes = [32, 128], strides = [1, 1]} : vector<32x512xf32> to vector<32x128xf32>
    %61 = arith.subf %60, %35 : vector<32x128xf32>
    %cst_21 = arith.constant 5.000000e-01 : f32
    %62 = vector.broadcast %cst_21 : f32 to vector<32x128xf32>
    %63 = arith.mulf %61, %62 : vector<32x128xf32>
    %64 = arith.addf %35, %63 : vector<32x128xf32>
    %cst_22 = arith.constant 1.000000e+00 : f32
    %65 = vector.broadcast %cst_22 : f32 to vector<32x128xf32>
    %66 = arith.cmpf oge, %64, %65 : vector<32x128xf32>
    %67 = arith.extui %66 : vector<32x128xi1> to vector<32x128xi32>
    %68 = arith.sitofp %67 : vector<32x128xi32> to vector<32x128xf32>
    %cst_23 = arith.constant 1.000000e+00 : f32
    %69 = vector.broadcast %cst_23 : f32 to vector<32x128xf32>
    %70 = arith.subf %69, %68 : vector<32x128xf32>
    %71 = arith.mulf %64, %70 : vector<32x128xf32>
    %72 = vector.extract_strided_slice %10 {offsets = [0, 128], sizes = [32, 128], strides = [1, 1]} : vector<32x512xf32> to vector<32x128xf32>
    %73 = arith.subf %72, %47 : vector<32x128xf32>
    %cst_24 = arith.constant 5.000000e-01 : f32
    %74 = vector.broadcast %cst_24 : f32 to vector<32x128xf32>
    %75 = arith.mulf %73, %74 : vector<32x128xf32>
    %76 = arith.addf %47, %75 : vector<32x128xf32>
    %cst_25 = arith.constant 1.000000e+00 : f32
    %77 = vector.broadcast %cst_25 : f32 to vector<32x128xf32>
    %78 = arith.cmpf oge, %76, %77 : vector<32x128xf32>
    %79 = arith.extui %78 : vector<32x128xi1> to vector<32x128xi32>
    %80 = arith.sitofp %79 : vector<32x128xi32> to vector<32x128xf32>
    %cst_26 = arith.constant 1.000000e+00 : f32
    %81 = vector.broadcast %cst_26 : f32 to vector<32x128xf32>
    %82 = arith.subf %81, %80 : vector<32x128xf32>
    %83 = arith.mulf %76, %82 : vector<32x128xf32>
    %84 = vector.extract_strided_slice %8 {offsets = [0, 256], sizes = [32, 128], strides = [1, 1]} : vector<32x512xf32> to vector<32x128xf32>
    %85 = arith.subf %84, %59 : vector<32x128xf32>
    %cst_27 = arith.constant 5.000000e-01 : f32
    %86 = vector.broadcast %cst_27 : f32 to vector<32x128xf32>
    %87 = arith.mulf %85, %86 : vector<32x128xf32>
    %88 = arith.addf %59, %87 : vector<32x128xf32>
    %cst_28 = arith.constant 1.000000e+00 : f32
    %89 = vector.broadcast %cst_28 : f32 to vector<32x128xf32>
    %90 = arith.cmpf oge, %88, %89 : vector<32x128xf32>
    %91 = arith.extui %90 : vector<32x128xi1> to vector<32x128xi32>
    %92 = arith.sitofp %91 : vector<32x128xi32> to vector<32x128xf32>
    %cst_29 = arith.constant 1.000000e+00 : f32
    %93 = vector.broadcast %cst_29 : f32 to vector<32x128xf32>
    %94 = arith.subf %93, %92 : vector<32x128xf32>
    %95 = arith.mulf %88, %94 : vector<32x128xf32>
    %96 = vector.extract_strided_slice %9 {offsets = [0, 256], sizes = [32, 128], strides = [1, 1]} : vector<32x512xf32> to vector<32x128xf32>
    %97 = arith.subf %96, %71 : vector<32x128xf32>
    %cst_30 = arith.constant 5.000000e-01 : f32
    %98 = vector.broadcast %cst_30 : f32 to vector<32x128xf32>
    %99 = arith.mulf %97, %98 : vector<32x128xf32>
    %100 = arith.addf %71, %99 : vector<32x128xf32>
    %cst_31 = arith.constant 1.000000e+00 : f32
    %101 = vector.broadcast %cst_31 : f32 to vector<32x128xf32>
    %102 = arith.cmpf oge, %100, %101 : vector<32x128xf32>
    %103 = arith.extui %102 : vector<32x128xi1> to vector<32x128xi32>
    %104 = arith.sitofp %103 : vector<32x128xi32> to vector<32x128xf32>
    %cst_32 = arith.constant 1.000000e+00 : f32
    %105 = vector.broadcast %cst_32 : f32 to vector<32x128xf32>
    %106 = arith.subf %105, %104 : vector<32x128xf32>
    %107 = arith.mulf %100, %106 : vector<32x128xf32>
    %108 = vector.extract_strided_slice %10 {offsets = [0, 256], sizes = [32, 128], strides = [1, 1]} : vector<32x512xf32> to vector<32x128xf32>
    %109 = arith.subf %108, %83 : vector<32x128xf32>
    %cst_33 = arith.constant 5.000000e-01 : f32
    %110 = vector.broadcast %cst_33 : f32 to vector<32x128xf32>
    %111 = arith.mulf %109, %110 : vector<32x128xf32>
    %112 = arith.addf %83, %111 : vector<32x128xf32>
    %cst_34 = arith.constant 1.000000e+00 : f32
    %113 = vector.broadcast %cst_34 : f32 to vector<32x128xf32>
    %114 = arith.cmpf oge, %112, %113 : vector<32x128xf32>
    %115 = arith.extui %114 : vector<32x128xi1> to vector<32x128xi32>
    %116 = arith.sitofp %115 : vector<32x128xi32> to vector<32x128xf32>
    %cst_35 = arith.constant 1.000000e+00 : f32
    %117 = vector.broadcast %cst_35 : f32 to vector<32x128xf32>
    %118 = arith.subf %117, %116 : vector<32x128xf32>
    %119 = arith.mulf %112, %118 : vector<32x128xf32>
    %120 = vector.extract_strided_slice %8 {offsets = [0, 384], sizes = [32, 128], strides = [1, 1]} : vector<32x512xf32> to vector<32x128xf32>
    %121 = arith.subf %120, %95 : vector<32x128xf32>
    %cst_36 = arith.constant 5.000000e-01 : f32
    %122 = vector.broadcast %cst_36 : f32 to vector<32x128xf32>
    %123 = arith.mulf %121, %122 : vector<32x128xf32>
    %124 = arith.addf %95, %123 : vector<32x128xf32>
    %cst_37 = arith.constant 1.000000e+00 : f32
    %125 = vector.broadcast %cst_37 : f32 to vector<32x128xf32>
    %126 = arith.cmpf oge, %124, %125 : vector<32x128xf32>
    %127 = arith.extui %126 : vector<32x128xi1> to vector<32x128xi32>
    %128 = arith.sitofp %127 : vector<32x128xi32> to vector<32x128xf32>
    %129 = vector.extract_strided_slice %9 {offsets = [0, 384], sizes = [32, 128], strides = [1, 1]} : vector<32x512xf32> to vector<32x128xf32>
    %130 = arith.subf %129, %107 : vector<32x128xf32>
    %cst_38 = arith.constant 5.000000e-01 : f32
    %131 = vector.broadcast %cst_38 : f32 to vector<32x128xf32>
    %132 = arith.mulf %130, %131 : vector<32x128xf32>
    %133 = arith.addf %107, %132 : vector<32x128xf32>
    %cst_39 = arith.constant 1.000000e+00 : f32
    %134 = vector.broadcast %cst_39 : f32 to vector<32x128xf32>
    %135 = arith.cmpf oge, %133, %134 : vector<32x128xf32>
    %136 = arith.extui %135 : vector<32x128xi1> to vector<32x128xi32>
    %137 = arith.sitofp %136 : vector<32x128xi32> to vector<32x128xf32>
    %138 = vector.extract_strided_slice %10 {offsets = [0, 384], sizes = [32, 128], strides = [1, 1]} : vector<32x512xf32> to vector<32x128xf32>
    %139 = arith.subf %138, %119 : vector<32x128xf32>
    %cst_40 = arith.constant 5.000000e-01 : f32
    %140 = vector.broadcast %cst_40 : f32 to vector<32x128xf32>
    %141 = arith.mulf %139, %140 : vector<32x128xf32>
    %142 = arith.addf %119, %141 : vector<32x128xf32>
    %cst_41 = arith.constant 1.000000e+00 : f32
    %143 = vector.broadcast %cst_41 : f32 to vector<32x128xf32>
    %144 = arith.cmpf oge, %142, %143 : vector<32x128xf32>
    %145 = arith.extui %144 : vector<32x128xi1> to vector<32x128xi32>
    %146 = arith.sitofp %145 : vector<32x128xi32> to vector<32x128xf32>
    %147 = vector.extract_strided_slice %44 {offsets = [0, 0], sizes = [32, 16], strides = [1, 1]} : vector<32x128xf32> to vector<32x16xf32>
    %148 = arith.truncf %147 : vector<32x16xf32> to vector<32x16xbf16>
    %149 = vector.extract_strided_slice %32 {offsets = [0, 0], sizes = [32, 16], strides = [1, 1]} : vector<32x128xf32> to vector<32x16xf32>
    %150 = arith.truncf %149 : vector<32x16xf32> to vector<32x16xbf16>
    %cst_42 = arith.constant dense<0.000000e+00> : vector<32x32xf32>
    %151 = tpu.matmul %148, %150, %cst_42 {dimension_numbers = #tpu.dot_dimension_numbers<[1], [1], [0], [0], [0, 0, 1, 0], [], []>} : vector<32x16xbf16>, vector<32x16xbf16>, vector<32x32xf32> -> vector<32x32xf32>
    %152 = arith.mulf %151, %2 : vector<32x32xf32>
    %153 = arith.truncf %152 : vector<32x32xf32> to vector<32x32xbf16>
    %154 = vector.extract_strided_slice %20 {offsets = [0, 0], sizes = [32, 16], strides = [1, 1]} : vector<32x128xf32> to vector<32x16xf32>
    %155 = arith.truncf %154 : vector<32x16xf32> to vector<32x16xbf16>
    %cst_43 = arith.constant dense<0.000000e+00> : vector<32x16xf32>
    %156 = tpu.matmul %153, %155, %cst_43 {dimension_numbers = #tpu.dot_dimension_numbers<[1], [0], [0], [1], [0, 0, 1, 1], [], []>} : vector<32x32xbf16>, vector<32x16xbf16>, vector<32x16xf32> -> vector<32x16xf32>
    %157 = vector.extract_strided_slice %44 {offsets = [0, 16], sizes = [32, 16], strides = [1, 1]} : vector<32x128xf32> to vector<32x16xf32>
    %158 = arith.truncf %157 : vector<32x16xf32> to vector<32x16xbf16>
    %159 = vector.extract_strided_slice %32 {offsets = [0, 16], sizes = [32, 16], strides = [1, 1]} : vector<32x128xf32> to vector<32x16xf32>
    %160 = arith.truncf %159 : vector<32x16xf32> to vector<32x16xbf16>
    %cst_44 = arith.constant dense<0.000000e+00> : vector<32x32xf32>
    %161 = tpu.matmul %158, %160, %cst_44 {dimension_numbers = #tpu.dot_dimension_numbers<[1], [1], [0], [0], [0, 0, 1, 0], [], []>} : vector<32x16xbf16>, vector<32x16xbf16>, vector<32x32xf32> -> vector<32x32xf32>
    %162 = arith.mulf %161, %2 : vector<32x32xf32>
    %163 = arith.truncf %162 : vector<32x32xf32> to vector<32x32xbf16>
    %164 = vector.extract_strided_slice %20 {offsets = [0, 16], sizes = [32, 16], strides = [1, 1]} : vector<32x128xf32> to vector<32x16xf32>
    %165 = arith.truncf %164 : vector<32x16xf32> to vector<32x16xbf16>
    %cst_45 = arith.constant dense<0.000000e+00> : vector<32x16xf32>
    %166 = tpu.matmul %163, %165, %cst_45 {dimension_numbers = #tpu.dot_dimension_numbers<[1], [0], [0], [1], [0, 0, 1, 1], [], []>} : vector<32x32xbf16>, vector<32x16xbf16>, vector<32x16xf32> -> vector<32x16xf32>
    %167 = vector.extract_strided_slice %44 {offsets = [0, 32], sizes = [32, 16], strides = [1, 1]} : vector<32x128xf32> to vector<32x16xf32>
    %168 = arith.truncf %167 : vector<32x16xf32> to vector<32x16xbf16>
    %169 = vector.extract_strided_slice %32 {offsets = [0, 32], sizes = [32, 16], strides = [1, 1]} : vector<32x128xf32> to vector<32x16xf32>
    %170 = arith.truncf %169 : vector<32x16xf32> to vector<32x16xbf16>
    %cst_46 = arith.constant dense<0.000000e+00> : vector<32x32xf32>
    %171 = tpu.matmul %168, %170, %cst_46 {dimension_numbers = #tpu.dot_dimension_numbers<[1], [1], [0], [0], [0, 0, 1, 0], [], []>} : vector<32x16xbf16>, vector<32x16xbf16>, vector<32x32xf32> -> vector<32x32xf32>
    %172 = arith.mulf %171, %2 : vector<32x32xf32>
    %173 = arith.truncf %172 : vector<32x32xf32> to vector<32x32xbf16>
    %174 = vector.extract_strided_slice %20 {offsets = [0, 32], sizes = [32, 16], strides = [1, 1]} : vector<32x128xf32> to vector<32x16xf32>
    %175 = arith.truncf %174 : vector<32x16xf32> to vector<32x16xbf16>
    %cst_47 = arith.constant dense<0.000000e+00> : vector<32x16xf32>
    %176 = tpu.matmul %173, %175, %cst_47 {dimension_numbers = #tpu.dot_dimension_numbers<[1], [0], [0], [1], [0, 0, 1, 1], [], []>} : vector<32x32xbf16>, vector<32x16xbf16>, vector<32x16xf32> -> vector<32x16xf32>
    %177 = vector.extract_strided_slice %44 {offsets = [0, 48], sizes = [32, 16], strides = [1, 1]} : vector<32x128xf32> to vector<32x16xf32>
    %178 = arith.truncf %177 : vector<32x16xf32> to vector<32x16xbf16>
    %179 = vector.extract_strided_slice %32 {offsets = [0, 48], sizes = [32, 16], strides = [1, 1]} : vector<32x128xf32> to vector<32x16xf32>
    %180 = arith.truncf %179 : vector<32x16xf32> to vector<32x16xbf16>
    %cst_48 = arith.constant dense<0.000000e+00> : vector<32x32xf32>
    %181 = tpu.matmul %178, %180, %cst_48 {dimension_numbers = #tpu.dot_dimension_numbers<[1], [1], [0], [0], [0, 0, 1, 0], [], []>} : vector<32x16xbf16>, vector<32x16xbf16>, vector<32x32xf32> -> vector<32x32xf32>
    %182 = arith.mulf %181, %2 : vector<32x32xf32>
    %183 = arith.truncf %182 : vector<32x32xf32> to vector<32x32xbf16>
    %184 = vector.extract_strided_slice %20 {offsets = [0, 48], sizes = [32, 16], strides = [1, 1]} : vector<32x128xf32> to vector<32x16xf32>
    %185 = arith.truncf %184 : vector<32x16xf32> to vector<32x16xbf16>
    %cst_49 = arith.constant dense<0.000000e+00> : vector<32x16xf32>
    %186 = tpu.matmul %183, %185, %cst_49 {dimension_numbers = #tpu.dot_dimension_numbers<[1], [0], [0], [1], [0, 0, 1, 1], [], []>} : vector<32x32xbf16>, vector<32x16xbf16>, vector<32x16xf32> -> vector<32x16xf32>
    %187 = vector.extract_strided_slice %44 {offsets = [0, 64], sizes = [32, 16], strides = [1, 1]} : vector<32x128xf32> to vector<32x16xf32>
    %188 = arith.truncf %187 : vector<32x16xf32> to vector<32x16xbf16>
    %189 = vector.extract_strided_slice %32 {offsets = [0, 64], sizes = [32, 16], strides = [1, 1]} : vector<32x128xf32> to vector<32x16xf32>
    %190 = arith.truncf %189 : vector<32x16xf32> to vector<32x16xbf16>
    %cst_50 = arith.constant dense<0.000000e+00> : vector<32x32xf32>
    %191 = tpu.matmul %188, %190, %cst_50 {dimension_numbers = #tpu.dot_dimension_numbers<[1], [1], [0], [0], [0, 0, 1, 0], [], []>} : vector<32x16xbf16>, vector<32x16xbf16>, vector<32x32xf32> -> vector<32x32xf32>
    %192 = arith.mulf %191, %2 : vector<32x32xf32>
    %193 = arith.truncf %192 : vector<32x32xf32> to vector<32x32xbf16>
    %194 = vector.extract_strided_slice %20 {offsets = [0, 64], sizes = [32, 16], strides = [1, 1]} : vector<32x128xf32> to vector<32x16xf32>
    %195 = arith.truncf %194 : vector<32x16xf32> to vector<32x16xbf16>
    %cst_51 = arith.constant dense<0.000000e+00> : vector<32x16xf32>
    %196 = tpu.matmul %193, %195, %cst_51 {dimension_numbers = #tpu.dot_dimension_numbers<[1], [0], [0], [1], [0, 0, 1, 1], [], []>} : vector<32x32xbf16>, vector<32x16xbf16>, vector<32x16xf32> -> vector<32x16xf32>
    %197 = vector.extract_strided_slice %44 {offsets = [0, 80], sizes = [32, 16], strides = [1, 1]} : vector<32x128xf32> to vector<32x16xf32>
    %198 = arith.truncf %197 : vector<32x16xf32> to vector<32x16xbf16>
    %199 = vector.extract_strided_slice %32 {offsets = [0, 80], sizes = [32, 16], strides = [1, 1]} : vector<32x128xf32> to vector<32x16xf32>
    %200 = arith.truncf %199 : vector<32x16xf32> to vector<32x16xbf16>
    %cst_52 = arith.constant dense<0.000000e+00> : vector<32x32xf32>
    %201 = tpu.matmul %198, %200, %cst_52 {dimension_numbers = #tpu.dot_dimension_numbers<[1], [1], [0], [0], [0, 0, 1, 0], [], []>} : vector<32x16xbf16>, vector<32x16xbf16>, vector<32x32xf32> -> vector<32x32xf32>
    %202 = arith.mulf %201, %2 : vector<32x32xf32>
    %203 = arith.truncf %202 : vector<32x32xf32> to vector<32x32xbf16>
    %204 = vector.extract_strided_slice %20 {offsets = [0, 80], sizes = [32, 16], strides = [1, 1]} : vector<32x128xf32> to vector<32x16xf32>
    %205 = arith.truncf %204 : vector<32x16xf32> to vector<32x16xbf16>
    %cst_53 = arith.constant dense<0.000000e+00> : vector<32x16xf32>
    %206 = tpu.matmul %203, %205, %cst_53 {dimension_numbers = #tpu.dot_dimension_numbers<[1], [0], [0], [1], [0, 0, 1, 1], [], []>} : vector<32x32xbf16>, vector<32x16xbf16>, vector<32x16xf32> -> vector<32x16xf32>
    %207 = vector.extract_strided_slice %44 {offsets = [0, 96], sizes = [32, 16], strides = [1, 1]} : vector<32x128xf32> to vector<32x16xf32>
    %208 = arith.truncf %207 : vector<32x16xf32> to vector<32x16xbf16>
    %209 = vector.extract_strided_slice %32 {offsets = [0, 96], sizes = [32, 16], strides = [1, 1]} : vector<32x128xf32> to vector<32x16xf32>
    %210 = arith.truncf %209 : vector<32x16xf32> to vector<32x16xbf16>
    %cst_54 = arith.constant dense<0.000000e+00> : vector<32x32xf32>
    %211 = tpu.matmul %208, %210, %cst_54 {dimension_numbers = #tpu.dot_dimension_numbers<[1], [1], [0], [0], [0, 0, 1, 0], [], []>} : vector<32x16xbf16>, vector<32x16xbf16>, vector<32x32xf32> -> vector<32x32xf32>
    %212 = arith.mulf %211, %2 : vector<32x32xf32>
    %213 = arith.truncf %212 : vector<32x32xf32> to vector<32x32xbf16>
    %214 = vector.extract_strided_slice %20 {offsets = [0, 96], sizes = [32, 16], strides = [1, 1]} : vector<32x128xf32> to vector<32x16xf32>
    %215 = arith.truncf %214 : vector<32x16xf32> to vector<32x16xbf16>
    %cst_55 = arith.constant dense<0.000000e+00> : vector<32x16xf32>
    %216 = tpu.matmul %213, %215, %cst_55 {dimension_numbers = #tpu.dot_dimension_numbers<[1], [0], [0], [1], [0, 0, 1, 1], [], []>} : vector<32x32xbf16>, vector<32x16xbf16>, vector<32x16xf32> -> vector<32x16xf32>
    %217 = vector.extract_strided_slice %44 {offsets = [0, 112], sizes = [32, 16], strides = [1, 1]} : vector<32x128xf32> to vector<32x16xf32>
    %218 = arith.truncf %217 : vector<32x16xf32> to vector<32x16xbf16>
    %219 = vector.extract_strided_slice %32 {offsets = [0, 112], sizes = [32, 16], strides = [1, 1]} : vector<32x128xf32> to vector<32x16xf32>
    %220 = arith.truncf %219 : vector<32x16xf32> to vector<32x16xbf16>
    %cst_56 = arith.constant dense<0.000000e+00> : vector<32x32xf32>
    %221 = tpu.matmul %218, %220, %cst_56 {dimension_numbers = #tpu.dot_dimension_numbers<[1], [1], [0], [0], [0, 0, 1, 0], [], []>} : vector<32x16xbf16>, vector<32x16xbf16>, vector<32x32xf32> -> vector<32x32xf32>
    %222 = arith.mulf %221, %2 : vector<32x32xf32>
    %223 = arith.truncf %222 : vector<32x32xf32> to vector<32x32xbf16>
    %224 = vector.extract_strided_slice %20 {offsets = [0, 112], sizes = [32, 16], strides = [1, 1]} : vector<32x128xf32> to vector<32x16xf32>
    %225 = arith.truncf %224 : vector<32x16xf32> to vector<32x16xbf16>
    %cst_57 = arith.constant dense<0.000000e+00> : vector<32x16xf32>
    %226 = tpu.matmul %223, %225, %cst_57 {dimension_numbers = #tpu.dot_dimension_numbers<[1], [0], [0], [1], [0, 0, 1, 1], [], []>} : vector<32x32xbf16>, vector<32x16xbf16>, vector<32x16xf32> -> vector<32x16xf32>
    %227 = tpu.concatenate %156, %166, %176, %186, %196, %206, %216, %226 in 1 : vector<32x16xf32>, vector<32x16xf32>, vector<32x16xf32>, vector<32x16xf32>, vector<32x16xf32>, vector<32x16xf32>, vector<32x16xf32>, vector<32x16xf32> -> vector<32x128xf32>
    %228 = vector.extract_strided_slice %80 {offsets = [0, 0], sizes = [32, 16], strides = [1, 1]} : vector<32x128xf32> to vector<32x16xf32>
    %229 = arith.truncf %228 : vector<32x16xf32> to vector<32x16xbf16>
    %230 = vector.extract_strided_slice %68 {offsets = [0, 0], sizes = [32, 16], strides = [1, 1]} : vector<32x128xf32> to vector<32x16xf32>
    %231 = arith.truncf %230 : vector<32x16xf32> to vector<32x16xbf16>
    %cst_58 = arith.constant dense<0.000000e+00> : vector<32x32xf32>
    %232 = tpu.matmul %229, %231, %cst_58 {dimension_numbers = #tpu.dot_dimension_numbers<[1], [1], [0], [0], [0, 0, 1, 0], [], []>} : vector<32x16xbf16>, vector<32x16xbf16>, vector<32x32xf32> -> vector<32x32xf32>
    %233 = arith.mulf %232, %2 : vector<32x32xf32>
    %234 = arith.truncf %233 : vector<32x32xf32> to vector<32x32xbf16>
    %235 = vector.extract_strided_slice %56 {offsets = [0, 0], sizes = [32, 16], strides = [1, 1]} : vector<32x128xf32> to vector<32x16xf32>
    %236 = arith.truncf %235 : vector<32x16xf32> to vector<32x16xbf16>
    %cst_59 = arith.constant dense<0.000000e+00> : vector<32x16xf32>
    %237 = tpu.matmul %234, %236, %cst_59 {dimension_numbers = #tpu.dot_dimension_numbers<[1], [0], [0], [1], [0, 0, 1, 1], [], []>} : vector<32x32xbf16>, vector<32x16xbf16>, vector<32x16xf32> -> vector<32x16xf32>
    %238 = vector.extract_strided_slice %80 {offsets = [0, 16], sizes = [32, 16], strides = [1, 1]} : vector<32x128xf32> to vector<32x16xf32>
    %239 = arith.truncf %238 : vector<32x16xf32> to vector<32x16xbf16>
    %240 = vector.extract_strided_slice %68 {offsets = [0, 16], sizes = [32, 16], strides = [1, 1]} : vector<32x128xf32> to vector<32x16xf32>
    %241 = arith.truncf %240 : vector<32x16xf32> to vector<32x16xbf16>
    %cst_60 = arith.constant dense<0.000000e+00> : vector<32x32xf32>
    %242 = tpu.matmul %239, %241, %cst_60 {dimension_numbers = #tpu.dot_dimension_numbers<[1], [1], [0], [0], [0, 0, 1, 0], [], []>} : vector<32x16xbf16>, vector<32x16xbf16>, vector<32x32xf32> -> vector<32x32xf32>
    %243 = arith.mulf %242, %2 : vector<32x32xf32>
    %244 = arith.truncf %243 : vector<32x32xf32> to vector<32x32xbf16>
    %245 = vector.extract_strided_slice %56 {offsets = [0, 16], sizes = [32, 16], strides = [1, 1]} : vector<32x128xf32> to vector<32x16xf32>
    %246 = arith.truncf %245 : vector<32x16xf32> to vector<32x16xbf16>
    %cst_61 = arith.constant dense<0.000000e+00> : vector<32x16xf32>
    %247 = tpu.matmul %244, %246, %cst_61 {dimension_numbers = #tpu.dot_dimension_numbers<[1], [0], [0], [1], [0, 0, 1, 1], [], []>} : vector<32x32xbf16>, vector<32x16xbf16>, vector<32x16xf32> -> vector<32x16xf32>
    %248 = vector.extract_strided_slice %80 {offsets = [0, 32], sizes = [32, 16], strides = [1, 1]} : vector<32x128xf32> to vector<32x16xf32>
    %249 = arith.truncf %248 : vector<32x16xf32> to vector<32x16xbf16>
    %250 = vector.extract_strided_slice %68 {offsets = [0, 32], sizes = [32, 16], strides = [1, 1]} : vector<32x128xf32> to vector<32x16xf32>
    %251 = arith.truncf %250 : vector<32x16xf32> to vector<32x16xbf16>
    %cst_62 = arith.constant dense<0.000000e+00> : vector<32x32xf32>
    %252 = tpu.matmul %249, %251, %cst_62 {dimension_numbers = #tpu.dot_dimension_numbers<[1], [1], [0], [0], [0, 0, 1, 0], [], []>} : vector<32x16xbf16>, vector<32x16xbf16>, vector<32x32xf32> -> vector<32x32xf32>
    %253 = arith.mulf %252, %2 : vector<32x32xf32>
    %254 = arith.truncf %253 : vector<32x32xf32> to vector<32x32xbf16>
    %255 = vector.extract_strided_slice %56 {offsets = [0, 32], sizes = [32, 16], strides = [1, 1]} : vector<32x128xf32> to vector<32x16xf32>
    %256 = arith.truncf %255 : vector<32x16xf32> to vector<32x16xbf16>
    %cst_63 = arith.constant dense<0.000000e+00> : vector<32x16xf32>
    %257 = tpu.matmul %254, %256, %cst_63 {dimension_numbers = #tpu.dot_dimension_numbers<[1], [0], [0], [1], [0, 0, 1, 1], [], []>} : vector<32x32xbf16>, vector<32x16xbf16>, vector<32x16xf32> -> vector<32x16xf32>
    %258 = vector.extract_strided_slice %80 {offsets = [0, 48], sizes = [32, 16], strides = [1, 1]} : vector<32x128xf32> to vector<32x16xf32>
    %259 = arith.truncf %258 : vector<32x16xf32> to vector<32x16xbf16>
    %260 = vector.extract_strided_slice %68 {offsets = [0, 48], sizes = [32, 16], strides = [1, 1]} : vector<32x128xf32> to vector<32x16xf32>
    %261 = arith.truncf %260 : vector<32x16xf32> to vector<32x16xbf16>
    %cst_64 = arith.constant dense<0.000000e+00> : vector<32x32xf32>
    %262 = tpu.matmul %259, %261, %cst_64 {dimension_numbers = #tpu.dot_dimension_numbers<[1], [1], [0], [0], [0, 0, 1, 0], [], []>} : vector<32x16xbf16>, vector<32x16xbf16>, vector<32x32xf32> -> vector<32x32xf32>
    %263 = arith.mulf %262, %2 : vector<32x32xf32>
    %264 = arith.truncf %263 : vector<32x32xf32> to vector<32x32xbf16>
    %265 = vector.extract_strided_slice %56 {offsets = [0, 48], sizes = [32, 16], strides = [1, 1]} : vector<32x128xf32> to vector<32x16xf32>
    %266 = arith.truncf %265 : vector<32x16xf32> to vector<32x16xbf16>
    %cst_65 = arith.constant dense<0.000000e+00> : vector<32x16xf32>
    %267 = tpu.matmul %264, %266, %cst_65 {dimension_numbers = #tpu.dot_dimension_numbers<[1], [0], [0], [1], [0, 0, 1, 1], [], []>} : vector<32x32xbf16>, vector<32x16xbf16>, vector<32x16xf32> -> vector<32x16xf32>
    %268 = vector.extract_strided_slice %80 {offsets = [0, 64], sizes = [32, 16], strides = [1, 1]} : vector<32x128xf32> to vector<32x16xf32>
    %269 = arith.truncf %268 : vector<32x16xf32> to vector<32x16xbf16>
    %270 = vector.extract_strided_slice %68 {offsets = [0, 64], sizes = [32, 16], strides = [1, 1]} : vector<32x128xf32> to vector<32x16xf32>
    %271 = arith.truncf %270 : vector<32x16xf32> to vector<32x16xbf16>
    %cst_66 = arith.constant dense<0.000000e+00> : vector<32x32xf32>
    %272 = tpu.matmul %269, %271, %cst_66 {dimension_numbers = #tpu.dot_dimension_numbers<[1], [1], [0], [0], [0, 0, 1, 0], [], []>} : vector<32x16xbf16>, vector<32x16xbf16>, vector<32x32xf32> -> vector<32x32xf32>
    %273 = arith.mulf %272, %2 : vector<32x32xf32>
    %274 = arith.truncf %273 : vector<32x32xf32> to vector<32x32xbf16>
    %275 = vector.extract_strided_slice %56 {offsets = [0, 64], sizes = [32, 16], strides = [1, 1]} : vector<32x128xf32> to vector<32x16xf32>
    %276 = arith.truncf %275 : vector<32x16xf32> to vector<32x16xbf16>
    %cst_67 = arith.constant dense<0.000000e+00> : vector<32x16xf32>
    %277 = tpu.matmul %274, %276, %cst_67 {dimension_numbers = #tpu.dot_dimension_numbers<[1], [0], [0], [1], [0, 0, 1, 1], [], []>} : vector<32x32xbf16>, vector<32x16xbf16>, vector<32x16xf32> -> vector<32x16xf32>
    %278 = vector.extract_strided_slice %80 {offsets = [0, 80], sizes = [32, 16], strides = [1, 1]} : vector<32x128xf32> to vector<32x16xf32>
    %279 = arith.truncf %278 : vector<32x16xf32> to vector<32x16xbf16>
    %280 = vector.extract_strided_slice %68 {offsets = [0, 80], sizes = [32, 16], strides = [1, 1]} : vector<32x128xf32> to vector<32x16xf32>
    %281 = arith.truncf %280 : vector<32x16xf32> to vector<32x16xbf16>
    %cst_68 = arith.constant dense<0.000000e+00> : vector<32x32xf32>
    %282 = tpu.matmul %279, %281, %cst_68 {dimension_numbers = #tpu.dot_dimension_numbers<[1], [1], [0], [0], [0, 0, 1, 0], [], []>} : vector<32x16xbf16>, vector<32x16xbf16>, vector<32x32xf32> -> vector<32x32xf32>
    %283 = arith.mulf %282, %2 : vector<32x32xf32>
    %284 = arith.truncf %283 : vector<32x32xf32> to vector<32x32xbf16>
    %285 = vector.extract_strided_slice %56 {offsets = [0, 80], sizes = [32, 16], strides = [1, 1]} : vector<32x128xf32> to vector<32x16xf32>
    %286 = arith.truncf %285 : vector<32x16xf32> to vector<32x16xbf16>
    %cst_69 = arith.constant dense<0.000000e+00> : vector<32x16xf32>
    %287 = tpu.matmul %284, %286, %cst_69 {dimension_numbers = #tpu.dot_dimension_numbers<[1], [0], [0], [1], [0, 0, 1, 1], [], []>} : vector<32x32xbf16>, vector<32x16xbf16>, vector<32x16xf32> -> vector<32x16xf32>
    %288 = vector.extract_strided_slice %80 {offsets = [0, 96], sizes = [32, 16], strides = [1, 1]} : vector<32x128xf32> to vector<32x16xf32>
    %289 = arith.truncf %288 : vector<32x16xf32> to vector<32x16xbf16>
    %290 = vector.extract_strided_slice %68 {offsets = [0, 96], sizes = [32, 16], strides = [1, 1]} : vector<32x128xf32> to vector<32x16xf32>
    %291 = arith.truncf %290 : vector<32x16xf32> to vector<32x16xbf16>
    %cst_70 = arith.constant dense<0.000000e+00> : vector<32x32xf32>
    %292 = tpu.matmul %289, %291, %cst_70 {dimension_numbers = #tpu.dot_dimension_numbers<[1], [1], [0], [0], [0, 0, 1, 0], [], []>} : vector<32x16xbf16>, vector<32x16xbf16>, vector<32x32xf32> -> vector<32x32xf32>
    %293 = arith.mulf %292, %2 : vector<32x32xf32>
    %294 = arith.truncf %293 : vector<32x32xf32> to vector<32x32xbf16>
    %295 = vector.extract_strided_slice %56 {offsets = [0, 96], sizes = [32, 16], strides = [1, 1]} : vector<32x128xf32> to vector<32x16xf32>
    %296 = arith.truncf %295 : vector<32x16xf32> to vector<32x16xbf16>
    %cst_71 = arith.constant dense<0.000000e+00> : vector<32x16xf32>
    %297 = tpu.matmul %294, %296, %cst_71 {dimension_numbers = #tpu.dot_dimension_numbers<[1], [0], [0], [1], [0, 0, 1, 1], [], []>} : vector<32x32xbf16>, vector<32x16xbf16>, vector<32x16xf32> -> vector<32x16xf32>
    %298 = vector.extract_strided_slice %80 {offsets = [0, 112], sizes = [32, 16], strides = [1, 1]} : vector<32x128xf32> to vector<32x16xf32>
    %299 = arith.truncf %298 : vector<32x16xf32> to vector<32x16xbf16>
    %300 = vector.extract_strided_slice %68 {offsets = [0, 112], sizes = [32, 16], strides = [1, 1]} : vector<32x128xf32> to vector<32x16xf32>
    %301 = arith.truncf %300 : vector<32x16xf32> to vector<32x16xbf16>
    %cst_72 = arith.constant dense<0.000000e+00> : vector<32x32xf32>
    %302 = tpu.matmul %299, %301, %cst_72 {dimension_numbers = #tpu.dot_dimension_numbers<[1], [1], [0], [0], [0, 0, 1, 0], [], []>} : vector<32x16xbf16>, vector<32x16xbf16>, vector<32x32xf32> -> vector<32x32xf32>
    %303 = arith.mulf %302, %2 : vector<32x32xf32>
    %304 = arith.truncf %303 : vector<32x32xf32> to vector<32x32xbf16>
    %305 = vector.extract_strided_slice %56 {offsets = [0, 112], sizes = [32, 16], strides = [1, 1]} : vector<32x128xf32> to vector<32x16xf32>
    %306 = arith.truncf %305 : vector<32x16xf32> to vector<32x16xbf16>
    %cst_73 = arith.constant dense<0.000000e+00> : vector<32x16xf32>
    %307 = tpu.matmul %304, %306, %cst_73 {dimension_numbers = #tpu.dot_dimension_numbers<[1], [0], [0], [1], [0, 0, 1, 1], [], []>} : vector<32x32xbf16>, vector<32x16xbf16>, vector<32x16xf32> -> vector<32x16xf32>
    %308 = tpu.concatenate %237, %247, %257, %267, %277, %287, %297, %307 in 1 : vector<32x16xf32>, vector<32x16xf32>, vector<32x16xf32>, vector<32x16xf32>, vector<32x16xf32>, vector<32x16xf32>, vector<32x16xf32>, vector<32x16xf32> -> vector<32x128xf32>
    %309 = vector.extract_strided_slice %116 {offsets = [0, 0], sizes = [32, 16], strides = [1, 1]} : vector<32x128xf32> to vector<32x16xf32>
    %310 = arith.truncf %309 : vector<32x16xf32> to vector<32x16xbf16>
    %311 = vector.extract_strided_slice %104 {offsets = [0, 0], sizes = [32, 16], strides = [1, 1]} : vector<32x128xf32> to vector<32x16xf32>
    %312 = arith.truncf %311 : vector<32x16xf32> to vector<32x16xbf16>
    %cst_74 = arith.constant dense<0.000000e+00> : vector<32x32xf32>
    %313 = tpu.matmul %310, %312, %cst_74 {dimension_numbers = #tpu.dot_dimension_numbers<[1], [1], [0], [0], [0, 0, 1, 0], [], []>} : vector<32x16xbf16>, vector<32x16xbf16>, vector<32x32xf32> -> vector<32x32xf32>
    %314 = arith.mulf %313, %2 : vector<32x32xf32>
    %315 = arith.truncf %314 : vector<32x32xf32> to vector<32x32xbf16>
    %316 = vector.extract_strided_slice %92 {offsets = [0, 0], sizes = [32, 16], strides = [1, 1]} : vector<32x128xf32> to vector<32x16xf32>
    %317 = arith.truncf %316 : vector<32x16xf32> to vector<32x16xbf16>
    %cst_75 = arith.constant dense<0.000000e+00> : vector<32x16xf32>
    %318 = tpu.matmul %315, %317, %cst_75 {dimension_numbers = #tpu.dot_dimension_numbers<[1], [0], [0], [1], [0, 0, 1, 1], [], []>} : vector<32x32xbf16>, vector<32x16xbf16>, vector<32x16xf32> -> vector<32x16xf32>
    %319 = vector.extract_strided_slice %116 {offsets = [0, 16], sizes = [32, 16], strides = [1, 1]} : vector<32x128xf32> to vector<32x16xf32>
    %320 = arith.truncf %319 : vector<32x16xf32> to vector<32x16xbf16>
    %321 = vector.extract_strided_slice %104 {offsets = [0, 16], sizes = [32, 16], strides = [1, 1]} : vector<32x128xf32> to vector<32x16xf32>
    %322 = arith.truncf %321 : vector<32x16xf32> to vector<32x16xbf16>
    %cst_76 = arith.constant dense<0.000000e+00> : vector<32x32xf32>
    %323 = tpu.matmul %320, %322, %cst_76 {dimension_numbers = #tpu.dot_dimension_numbers<[1], [1], [0], [0], [0, 0, 1, 0], [], []>} : vector<32x16xbf16>, vector<32x16xbf16>, vector<32x32xf32> -> vector<32x32xf32>
    %324 = arith.mulf %323, %2 : vector<32x32xf32>
    %325 = arith.truncf %324 : vector<32x32xf32> to vector<32x32xbf16>
    %326 = vector.extract_strided_slice %92 {offsets = [0, 16], sizes = [32, 16], strides = [1, 1]} : vector<32x128xf32> to vector<32x16xf32>
    %327 = arith.truncf %326 : vector<32x16xf32> to vector<32x16xbf16>
    %cst_77 = arith.constant dense<0.000000e+00> : vector<32x16xf32>
    %328 = tpu.matmul %325, %327, %cst_77 {dimension_numbers = #tpu.dot_dimension_numbers<[1], [0], [0], [1], [0, 0, 1, 1], [], []>} : vector<32x32xbf16>, vector<32x16xbf16>, vector<32x16xf32> -> vector<32x16xf32>
    %329 = vector.extract_strided_slice %116 {offsets = [0, 32], sizes = [32, 16], strides = [1, 1]} : vector<32x128xf32> to vector<32x16xf32>
    %330 = arith.truncf %329 : vector<32x16xf32> to vector<32x16xbf16>
    %331 = vector.extract_strided_slice %104 {offsets = [0, 32], sizes = [32, 16], strides = [1, 1]} : vector<32x128xf32> to vector<32x16xf32>
    %332 = arith.truncf %331 : vector<32x16xf32> to vector<32x16xbf16>
    %cst_78 = arith.constant dense<0.000000e+00> : vector<32x32xf32>
    %333 = tpu.matmul %330, %332, %cst_78 {dimension_numbers = #tpu.dot_dimension_numbers<[1], [1], [0], [0], [0, 0, 1, 0], [], []>} : vector<32x16xbf16>, vector<32x16xbf16>, vector<32x32xf32> -> vector<32x32xf32>
    %334 = arith.mulf %333, %2 : vector<32x32xf32>
    %335 = arith.truncf %334 : vector<32x32xf32> to vector<32x32xbf16>
    %336 = vector.extract_strided_slice %92 {offsets = [0, 32], sizes = [32, 16], strides = [1, 1]} : vector<32x128xf32> to vector<32x16xf32>
    %337 = arith.truncf %336 : vector<32x16xf32> to vector<32x16xbf16>
    %cst_79 = arith.constant dense<0.000000e+00> : vector<32x16xf32>
    %338 = tpu.matmul %335, %337, %cst_79 {dimension_numbers = #tpu.dot_dimension_numbers<[1], [0], [0], [1], [0, 0, 1, 1], [], []>} : vector<32x32xbf16>, vector<32x16xbf16>, vector<32x16xf32> -> vector<32x16xf32>
    %339 = vector.extract_strided_slice %116 {offsets = [0, 48], sizes = [32, 16], strides = [1, 1]} : vector<32x128xf32> to vector<32x16xf32>
    %340 = arith.truncf %339 : vector<32x16xf32> to vector<32x16xbf16>
    %341 = vector.extract_strided_slice %104 {offsets = [0, 48], sizes = [32, 16], strides = [1, 1]} : vector<32x128xf32> to vector<32x16xf32>
    %342 = arith.truncf %341 : vector<32x16xf32> to vector<32x16xbf16>
    %cst_80 = arith.constant dense<0.000000e+00> : vector<32x32xf32>
    %343 = tpu.matmul %340, %342, %cst_80 {dimension_numbers = #tpu.dot_dimension_numbers<[1], [1], [0], [0], [0, 0, 1, 0], [], []>} : vector<32x16xbf16>, vector<32x16xbf16>, vector<32x32xf32> -> vector<32x32xf32>
    %344 = arith.mulf %343, %2 : vector<32x32xf32>
    %345 = arith.truncf %344 : vector<32x32xf32> to vector<32x32xbf16>
    %346 = vector.extract_strided_slice %92 {offsets = [0, 48], sizes = [32, 16], strides = [1, 1]} : vector<32x128xf32> to vector<32x16xf32>
    %347 = arith.truncf %346 : vector<32x16xf32> to vector<32x16xbf16>
    %cst_81 = arith.constant dense<0.000000e+00> : vector<32x16xf32>
    %348 = tpu.matmul %345, %347, %cst_81 {dimension_numbers = #tpu.dot_dimension_numbers<[1], [0], [0], [1], [0, 0, 1, 1], [], []>} : vector<32x32xbf16>, vector<32x16xbf16>, vector<32x16xf32> -> vector<32x16xf32>
    %349 = vector.extract_strided_slice %116 {offsets = [0, 64], sizes = [32, 16], strides = [1, 1]} : vector<32x128xf32> to vector<32x16xf32>
    %350 = arith.truncf %349 : vector<32x16xf32> to vector<32x16xbf16>
    %351 = vector.extract_strided_slice %104 {offsets = [0, 64], sizes = [32, 16], strides = [1, 1]} : vector<32x128xf32> to vector<32x16xf32>
    %352 = arith.truncf %351 : vector<32x16xf32> to vector<32x16xbf16>
    %cst_82 = arith.constant dense<0.000000e+00> : vector<32x32xf32>
    %353 = tpu.matmul %350, %352, %cst_82 {dimension_numbers = #tpu.dot_dimension_numbers<[1], [1], [0], [0], [0, 0, 1, 0], [], []>} : vector<32x16xbf16>, vector<32x16xbf16>, vector<32x32xf32> -> vector<32x32xf32>
    %354 = arith.mulf %353, %2 : vector<32x32xf32>
    %355 = arith.truncf %354 : vector<32x32xf32> to vector<32x32xbf16>
    %356 = vector.extract_strided_slice %92 {offsets = [0, 64], sizes = [32, 16], strides = [1, 1]} : vector<32x128xf32> to vector<32x16xf32>
    %357 = arith.truncf %356 : vector<32x16xf32> to vector<32x16xbf16>
    %cst_83 = arith.constant dense<0.000000e+00> : vector<32x16xf32>
    %358 = tpu.matmul %355, %357, %cst_83 {dimension_numbers = #tpu.dot_dimension_numbers<[1], [0], [0], [1], [0, 0, 1, 1], [], []>} : vector<32x32xbf16>, vector<32x16xbf16>, vector<32x16xf32> -> vector<32x16xf32>
    %359 = vector.extract_strided_slice %116 {offsets = [0, 80], sizes = [32, 16], strides = [1, 1]} : vector<32x128xf32> to vector<32x16xf32>
    %360 = arith.truncf %359 : vector<32x16xf32> to vector<32x16xbf16>
    %361 = vector.extract_strided_slice %104 {offsets = [0, 80], sizes = [32, 16], strides = [1, 1]} : vector<32x128xf32> to vector<32x16xf32>
    %362 = arith.truncf %361 : vector<32x16xf32> to vector<32x16xbf16>
    %cst_84 = arith.constant dense<0.000000e+00> : vector<32x32xf32>
    %363 = tpu.matmul %360, %362, %cst_84 {dimension_numbers = #tpu.dot_dimension_numbers<[1], [1], [0], [0], [0, 0, 1, 0], [], []>} : vector<32x16xbf16>, vector<32x16xbf16>, vector<32x32xf32> -> vector<32x32xf32>
    %364 = arith.mulf %363, %2 : vector<32x32xf32>
    %365 = arith.truncf %364 : vector<32x32xf32> to vector<32x32xbf16>
    %366 = vector.extract_strided_slice %92 {offsets = [0, 80], sizes = [32, 16], strides = [1, 1]} : vector<32x128xf32> to vector<32x16xf32>
    %367 = arith.truncf %366 : vector<32x16xf32> to vector<32x16xbf16>
    %cst_85 = arith.constant dense<0.000000e+00> : vector<32x16xf32>
    %368 = tpu.matmul %365, %367, %cst_85 {dimension_numbers = #tpu.dot_dimension_numbers<[1], [0], [0], [1], [0, 0, 1, 1], [], []>} : vector<32x32xbf16>, vector<32x16xbf16>, vector<32x16xf32> -> vector<32x16xf32>
    %369 = vector.extract_strided_slice %116 {offsets = [0, 96], sizes = [32, 16], strides = [1, 1]} : vector<32x128xf32> to vector<32x16xf32>
    %370 = arith.truncf %369 : vector<32x16xf32> to vector<32x16xbf16>
    %371 = vector.extract_strided_slice %104 {offsets = [0, 96], sizes = [32, 16], strides = [1, 1]} : vector<32x128xf32> to vector<32x16xf32>
    %372 = arith.truncf %371 : vector<32x16xf32> to vector<32x16xbf16>
    %cst_86 = arith.constant dense<0.000000e+00> : vector<32x32xf32>
    %373 = tpu.matmul %370, %372, %cst_86 {dimension_numbers = #tpu.dot_dimension_numbers<[1], [1], [0], [0], [0, 0, 1, 0], [], []>} : vector<32x16xbf16>, vector<32x16xbf16>, vector<32x32xf32> -> vector<32x32xf32>
    %374 = arith.mulf %373, %2 : vector<32x32xf32>
    %375 = arith.truncf %374 : vector<32x32xf32> to vector<32x32xbf16>
    %376 = vector.extract_strided_slice %92 {offsets = [0, 96], sizes = [32, 16], strides = [1, 1]} : vector<32x128xf32> to vector<32x16xf32>
    %377 = arith.truncf %376 : vector<32x16xf32> to vector<32x16xbf16>
    %cst_87 = arith.constant dense<0.000000e+00> : vector<32x16xf32>
    %378 = tpu.matmul %375, %377, %cst_87 {dimension_numbers = #tpu.dot_dimension_numbers<[1], [0], [0], [1], [0, 0, 1, 1], [], []>} : vector<32x32xbf16>, vector<32x16xbf16>, vector<32x16xf32> -> vector<32x16xf32>
    %379 = vector.extract_strided_slice %116 {offsets = [0, 112], sizes = [32, 16], strides = [1, 1]} : vector<32x128xf32> to vector<32x16xf32>
    %380 = arith.truncf %379 : vector<32x16xf32> to vector<32x16xbf16>
    %381 = vector.extract_strided_slice %104 {offsets = [0, 112], sizes = [32, 16], strides = [1, 1]} : vector<32x128xf32> to vector<32x16xf32>
    %382 = arith.truncf %381 : vector<32x16xf32> to vector<32x16xbf16>
    %cst_88 = arith.constant dense<0.000000e+00> : vector<32x32xf32>
    %383 = tpu.matmul %380, %382, %cst_88 {dimension_numbers = #tpu.dot_dimension_numbers<[1], [1], [0], [0], [0, 0, 1, 0], [], []>} : vector<32x16xbf16>, vector<32x16xbf16>, vector<32x32xf32> -> vector<32x32xf32>
    %384 = arith.mulf %383, %2 : vector<32x32xf32>
    %385 = arith.truncf %384 : vector<32x32xf32> to vector<32x32xbf16>
    %386 = vector.extract_strided_slice %92 {offsets = [0, 112], sizes = [32, 16], strides = [1, 1]} : vector<32x128xf32> to vector<32x16xf32>
    %387 = arith.truncf %386 : vector<32x16xf32> to vector<32x16xbf16>
    %cst_89 = arith.constant dense<0.000000e+00> : vector<32x16xf32>
    %388 = tpu.matmul %385, %387, %cst_89 {dimension_numbers = #tpu.dot_dimension_numbers<[1], [0], [0], [1], [0, 0, 1, 1], [], []>} : vector<32x32xbf16>, vector<32x16xbf16>, vector<32x16xf32> -> vector<32x16xf32>
    %389 = tpu.concatenate %318, %328, %338, %348, %358, %368, %378, %388 in 1 : vector<32x16xf32>, vector<32x16xf32>, vector<32x16xf32>, vector<32x16xf32>, vector<32x16xf32>, vector<32x16xf32>, vector<32x16xf32>, vector<32x16xf32> -> vector<32x128xf32>
    %390 = vector.extract_strided_slice %146 {offsets = [0, 0], sizes = [32, 16], strides = [1, 1]} : vector<32x128xf32> to vector<32x16xf32>
    %391 = arith.truncf %390 : vector<32x16xf32> to vector<32x16xbf16>
    %392 = vector.extract_strided_slice %137 {offsets = [0, 0], sizes = [32, 16], strides = [1, 1]} : vector<32x128xf32> to vector<32x16xf32>
    %393 = arith.truncf %392 : vector<32x16xf32> to vector<32x16xbf16>
    %cst_90 = arith.constant dense<0.000000e+00> : vector<32x32xf32>
    %394 = tpu.matmul %391, %393, %cst_90 {dimension_numbers = #tpu.dot_dimension_numbers<[1], [1], [0], [0], [0, 0, 1, 0], [], []>} : vector<32x16xbf16>, vector<32x16xbf16>, vector<32x32xf32> -> vector<32x32xf32>
    %395 = arith.mulf %394, %2 : vector<32x32xf32>
    %396 = arith.truncf %395 : vector<32x32xf32> to vector<32x32xbf16>
    %397 = vector.extract_strided_slice %128 {offsets = [0, 0], sizes = [32, 16], strides = [1, 1]} : vector<32x128xf32> to vector<32x16xf32>
    %398 = arith.truncf %397 : vector<32x16xf32> to vector<32x16xbf16>
    %cst_91 = arith.constant dense<0.000000e+00> : vector<32x16xf32>
    %399 = tpu.matmul %396, %398, %cst_91 {dimension_numbers = #tpu.dot_dimension_numbers<[1], [0], [0], [1], [0, 0, 1, 1], [], []>} : vector<32x32xbf16>, vector<32x16xbf16>, vector<32x16xf32> -> vector<32x16xf32>
    %400 = vector.extract_strided_slice %146 {offsets = [0, 16], sizes = [32, 16], strides = [1, 1]} : vector<32x128xf32> to vector<32x16xf32>
    %401 = arith.truncf %400 : vector<32x16xf32> to vector<32x16xbf16>
    %402 = vector.extract_strided_slice %137 {offsets = [0, 16], sizes = [32, 16], strides = [1, 1]} : vector<32x128xf32> to vector<32x16xf32>
    %403 = arith.truncf %402 : vector<32x16xf32> to vector<32x16xbf16>
    %cst_92 = arith.constant dense<0.000000e+00> : vector<32x32xf32>
    %404 = tpu.matmul %401, %403, %cst_92 {dimension_numbers = #tpu.dot_dimension_numbers<[1], [1], [0], [0], [0, 0, 1, 0], [], []>} : vector<32x16xbf16>, vector<32x16xbf16>, vector<32x32xf32> -> vector<32x32xf32>
    %405 = arith.mulf %404, %2 : vector<32x32xf32>
    %406 = arith.truncf %405 : vector<32x32xf32> to vector<32x32xbf16>
    %407 = vector.extract_strided_slice %128 {offsets = [0, 16], sizes = [32, 16], strides = [1, 1]} : vector<32x128xf32> to vector<32x16xf32>
    %408 = arith.truncf %407 : vector<32x16xf32> to vector<32x16xbf16>
    %cst_93 = arith.constant dense<0.000000e+00> : vector<32x16xf32>
    %409 = tpu.matmul %406, %408, %cst_93 {dimension_numbers = #tpu.dot_dimension_numbers<[1], [0], [0], [1], [0, 0, 1, 1], [], []>} : vector<32x32xbf16>, vector<32x16xbf16>, vector<32x16xf32> -> vector<32x16xf32>
    %410 = vector.extract_strided_slice %146 {offsets = [0, 32], sizes = [32, 16], strides = [1, 1]} : vector<32x128xf32> to vector<32x16xf32>
    %411 = arith.truncf %410 : vector<32x16xf32> to vector<32x16xbf16>
    %412 = vector.extract_strided_slice %137 {offsets = [0, 32], sizes = [32, 16], strides = [1, 1]} : vector<32x128xf32> to vector<32x16xf32>
    %413 = arith.truncf %412 : vector<32x16xf32> to vector<32x16xbf16>
    %cst_94 = arith.constant dense<0.000000e+00> : vector<32x32xf32>
    %414 = tpu.matmul %411, %413, %cst_94 {dimension_numbers = #tpu.dot_dimension_numbers<[1], [1], [0], [0], [0, 0, 1, 0], [], []>} : vector<32x16xbf16>, vector<32x16xbf16>, vector<32x32xf32> -> vector<32x32xf32>
    %415 = arith.mulf %414, %2 : vector<32x32xf32>
    %416 = arith.truncf %415 : vector<32x32xf32> to vector<32x32xbf16>
    %417 = vector.extract_strided_slice %128 {offsets = [0, 32], sizes = [32, 16], strides = [1, 1]} : vector<32x128xf32> to vector<32x16xf32>
    %418 = arith.truncf %417 : vector<32x16xf32> to vector<32x16xbf16>
    %cst_95 = arith.constant dense<0.000000e+00> : vector<32x16xf32>
    %419 = tpu.matmul %416, %418, %cst_95 {dimension_numbers = #tpu.dot_dimension_numbers<[1], [0], [0], [1], [0, 0, 1, 1], [], []>} : vector<32x32xbf16>, vector<32x16xbf16>, vector<32x16xf32> -> vector<32x16xf32>
    %420 = vector.extract_strided_slice %146 {offsets = [0, 48], sizes = [32, 16], strides = [1, 1]} : vector<32x128xf32> to vector<32x16xf32>
    %421 = arith.truncf %420 : vector<32x16xf32> to vector<32x16xbf16>
    %422 = vector.extract_strided_slice %137 {offsets = [0, 48], sizes = [32, 16], strides = [1, 1]} : vector<32x128xf32> to vector<32x16xf32>
    %423 = arith.truncf %422 : vector<32x16xf32> to vector<32x16xbf16>
    %cst_96 = arith.constant dense<0.000000e+00> : vector<32x32xf32>
    %424 = tpu.matmul %421, %423, %cst_96 {dimension_numbers = #tpu.dot_dimension_numbers<[1], [1], [0], [0], [0, 0, 1, 0], [], []>} : vector<32x16xbf16>, vector<32x16xbf16>, vector<32x32xf32> -> vector<32x32xf32>
    %425 = arith.mulf %424, %2 : vector<32x32xf32>
    %426 = arith.truncf %425 : vector<32x32xf32> to vector<32x32xbf16>
    %427 = vector.extract_strided_slice %128 {offsets = [0, 48], sizes = [32, 16], strides = [1, 1]} : vector<32x128xf32> to vector<32x16xf32>
    %428 = arith.truncf %427 : vector<32x16xf32> to vector<32x16xbf16>
    %cst_97 = arith.constant dense<0.000000e+00> : vector<32x16xf32>
    %429 = tpu.matmul %426, %428, %cst_97 {dimension_numbers = #tpu.dot_dimension_numbers<[1], [0], [0], [1], [0, 0, 1, 1], [], []>} : vector<32x32xbf16>, vector<32x16xbf16>, vector<32x16xf32> -> vector<32x16xf32>
    %430 = vector.extract_strided_slice %146 {offsets = [0, 64], sizes = [32, 16], strides = [1, 1]} : vector<32x128xf32> to vector<32x16xf32>
    %431 = arith.truncf %430 : vector<32x16xf32> to vector<32x16xbf16>
    %432 = vector.extract_strided_slice %137 {offsets = [0, 64], sizes = [32, 16], strides = [1, 1]} : vector<32x128xf32> to vector<32x16xf32>
    %433 = arith.truncf %432 : vector<32x16xf32> to vector<32x16xbf16>
    %cst_98 = arith.constant dense<0.000000e+00> : vector<32x32xf32>
    %434 = tpu.matmul %431, %433, %cst_98 {dimension_numbers = #tpu.dot_dimension_numbers<[1], [1], [0], [0], [0, 0, 1, 0], [], []>} : vector<32x16xbf16>, vector<32x16xbf16>, vector<32x32xf32> -> vector<32x32xf32>
    %435 = arith.mulf %434, %2 : vector<32x32xf32>
    %436 = arith.truncf %435 : vector<32x32xf32> to vector<32x32xbf16>
    %437 = vector.extract_strided_slice %128 {offsets = [0, 64], sizes = [32, 16], strides = [1, 1]} : vector<32x128xf32> to vector<32x16xf32>
    %438 = arith.truncf %437 : vector<32x16xf32> to vector<32x16xbf16>
    %cst_99 = arith.constant dense<0.000000e+00> : vector<32x16xf32>
    %439 = tpu.matmul %436, %438, %cst_99 {dimension_numbers = #tpu.dot_dimension_numbers<[1], [0], [0], [1], [0, 0, 1, 1], [], []>} : vector<32x32xbf16>, vector<32x16xbf16>, vector<32x16xf32> -> vector<32x16xf32>
    %440 = vector.extract_strided_slice %146 {offsets = [0, 80], sizes = [32, 16], strides = [1, 1]} : vector<32x128xf32> to vector<32x16xf32>
    %441 = arith.truncf %440 : vector<32x16xf32> to vector<32x16xbf16>
    %442 = vector.extract_strided_slice %137 {offsets = [0, 80], sizes = [32, 16], strides = [1, 1]} : vector<32x128xf32> to vector<32x16xf32>
    %443 = arith.truncf %442 : vector<32x16xf32> to vector<32x16xbf16>
    %cst_100 = arith.constant dense<0.000000e+00> : vector<32x32xf32>
    %444 = tpu.matmul %441, %443, %cst_100 {dimension_numbers = #tpu.dot_dimension_numbers<[1], [1], [0], [0], [0, 0, 1, 0], [], []>} : vector<32x16xbf16>, vector<32x16xbf16>, vector<32x32xf32> -> vector<32x32xf32>
    %445 = arith.mulf %444, %2 : vector<32x32xf32>
    %446 = arith.truncf %445 : vector<32x32xf32> to vector<32x32xbf16>
    %447 = vector.extract_strided_slice %128 {offsets = [0, 80], sizes = [32, 16], strides = [1, 1]} : vector<32x128xf32> to vector<32x16xf32>
    %448 = arith.truncf %447 : vector<32x16xf32> to vector<32x16xbf16>
    %cst_101 = arith.constant dense<0.000000e+00> : vector<32x16xf32>
    %449 = tpu.matmul %446, %448, %cst_101 {dimension_numbers = #tpu.dot_dimension_numbers<[1], [0], [0], [1], [0, 0, 1, 1], [], []>} : vector<32x32xbf16>, vector<32x16xbf16>, vector<32x16xf32> -> vector<32x16xf32>
    %450 = vector.extract_strided_slice %146 {offsets = [0, 96], sizes = [32, 16], strides = [1, 1]} : vector<32x128xf32> to vector<32x16xf32>
    %451 = arith.truncf %450 : vector<32x16xf32> to vector<32x16xbf16>
    %452 = vector.extract_strided_slice %137 {offsets = [0, 96], sizes = [32, 16], strides = [1, 1]} : vector<32x128xf32> to vector<32x16xf32>
    %453 = arith.truncf %452 : vector<32x16xf32> to vector<32x16xbf16>
    %cst_102 = arith.constant dense<0.000000e+00> : vector<32x32xf32>
    %454 = tpu.matmul %451, %453, %cst_102 {dimension_numbers = #tpu.dot_dimension_numbers<[1], [1], [0], [0], [0, 0, 1, 0], [], []>} : vector<32x16xbf16>, vector<32x16xbf16>, vector<32x32xf32> -> vector<32x32xf32>
    %455 = arith.mulf %454, %2 : vector<32x32xf32>
    %456 = arith.truncf %455 : vector<32x32xf32> to vector<32x32xbf16>
    %457 = vector.extract_strided_slice %128 {offsets = [0, 96], sizes = [32, 16], strides = [1, 1]} : vector<32x128xf32> to vector<32x16xf32>
    %458 = arith.truncf %457 : vector<32x16xf32> to vector<32x16xbf16>
    %cst_103 = arith.constant dense<0.000000e+00> : vector<32x16xf32>
    %459 = tpu.matmul %456, %458, %cst_103 {dimension_numbers = #tpu.dot_dimension_numbers<[1], [0], [0], [1], [0, 0, 1, 1], [], []>} : vector<32x32xbf16>, vector<32x16xbf16>, vector<32x16xf32> -> vector<32x16xf32>
    %460 = vector.extract_strided_slice %146 {offsets = [0, 112], sizes = [32, 16], strides = [1, 1]} : vector<32x128xf32> to vector<32x16xf32>
    %461 = arith.truncf %460 : vector<32x16xf32> to vector<32x16xbf16>
    %462 = vector.extract_strided_slice %137 {offsets = [0, 112], sizes = [32, 16], strides = [1, 1]} : vector<32x128xf32> to vector<32x16xf32>
    %463 = arith.truncf %462 : vector<32x16xf32> to vector<32x16xbf16>
    %cst_104 = arith.constant dense<0.000000e+00> : vector<32x32xf32>
    %464 = tpu.matmul %461, %463, %cst_104 {dimension_numbers = #tpu.dot_dimension_numbers<[1], [1], [0], [0], [0, 0, 1, 0], [], []>} : vector<32x16xbf16>, vector<32x16xbf16>, vector<32x32xf32> -> vector<32x32xf32>
    %465 = arith.mulf %464, %2 : vector<32x32xf32>
    %466 = arith.truncf %465 : vector<32x32xf32> to vector<32x32xbf16>
    %467 = vector.extract_strided_slice %128 {offsets = [0, 112], sizes = [32, 16], strides = [1, 1]} : vector<32x128xf32> to vector<32x16xf32>
    %468 = arith.truncf %467 : vector<32x16xf32> to vector<32x16xbf16>
    %cst_105 = arith.constant dense<0.000000e+00> : vector<32x16xf32>
    %469 = tpu.matmul %466, %468, %cst_105 {dimension_numbers = #tpu.dot_dimension_numbers<[1], [0], [0], [1], [0, 0, 1, 1], [], []>} : vector<32x32xbf16>, vector<32x16xbf16>, vector<32x16xf32> -> vector<32x16xf32>
    %470 = tpu.concatenate %399, %409, %419, %429, %439, %449, %459, %469 in 1 : vector<32x16xf32>, vector<32x16xf32>, vector<32x16xf32>, vector<32x16xf32>, vector<32x16xf32>, vector<32x16xf32>, vector<32x16xf32>, vector<32x16xf32> -> vector<32x128xf32>
    %471 = arith.subf %227, %11 : vector<32x128xf32>
    %cst_106 = arith.constant 5.000000e-01 : f32
    %472 = vector.broadcast %cst_106 : f32 to vector<32x128xf32>
    %473 = arith.mulf %471, %472 : vector<32x128xf32>
    %474 = arith.addf %11, %473 : vector<32x128xf32>
    %cst_107 = arith.constant 5.000000e-01 : f32
    %475 = vector.broadcast %cst_107 : f32 to vector<32x128xf32>
    %476 = arith.cmpf oge, %474, %475 : vector<32x128xf32>
    %477 = arith.extui %476 : vector<32x128xi1> to vector<32x128xi32>
    %478 = arith.sitofp %477 : vector<32x128xi32> to vector<32x128xf32>
    %cst_108 = arith.constant 1.000000e+00 : f32
    %479 = vector.broadcast %cst_108 : f32 to vector<32x128xf32>
    %480 = arith.subf %479, %478 : vector<32x128xf32>
    %481 = arith.mulf %474, %480 : vector<32x128xf32>
    %482 = arith.subf %308, %481 : vector<32x128xf32>
    %cst_109 = arith.constant 5.000000e-01 : f32
    %483 = vector.broadcast %cst_109 : f32 to vector<32x128xf32>
    %484 = arith.mulf %482, %483 : vector<32x128xf32>
    %485 = arith.addf %481, %484 : vector<32x128xf32>
    %cst_110 = arith.constant 5.000000e-01 : f32
    %486 = vector.broadcast %cst_110 : f32 to vector<32x128xf32>
    %487 = arith.cmpf oge, %485, %486 : vector<32x128xf32>
    %488 = arith.extui %487 : vector<32x128xi1> to vector<32x128xi32>
    %489 = arith.sitofp %488 : vector<32x128xi32> to vector<32x128xf32>
    %cst_111 = arith.constant 1.000000e+00 : f32
    %490 = vector.broadcast %cst_111 : f32 to vector<32x128xf32>
    %491 = arith.subf %490, %489 : vector<32x128xf32>
    %492 = arith.mulf %485, %491 : vector<32x128xf32>
    %493 = arith.subf %389, %492 : vector<32x128xf32>
    %cst_112 = arith.constant 5.000000e-01 : f32
    %494 = vector.broadcast %cst_112 : f32 to vector<32x128xf32>
    %495 = arith.mulf %493, %494 : vector<32x128xf32>
    %496 = arith.addf %492, %495 : vector<32x128xf32>
    %cst_113 = arith.constant 5.000000e-01 : f32
    %497 = vector.broadcast %cst_113 : f32 to vector<32x128xf32>
    %498 = arith.cmpf oge, %496, %497 : vector<32x128xf32>
    %499 = arith.extui %498 : vector<32x128xi1> to vector<32x128xi32>
    %500 = arith.sitofp %499 : vector<32x128xi32> to vector<32x128xf32>
    %cst_114 = arith.constant 1.000000e+00 : f32
    %501 = vector.broadcast %cst_114 : f32 to vector<32x128xf32>
    %502 = arith.subf %501, %500 : vector<32x128xf32>
    %503 = arith.mulf %496, %502 : vector<32x128xf32>
    %504 = arith.subf %470, %503 : vector<32x128xf32>
    %cst_115 = arith.constant 5.000000e-01 : f32
    %505 = vector.broadcast %cst_115 : f32 to vector<32x128xf32>
    %506 = arith.mulf %504, %505 : vector<32x128xf32>
    %507 = arith.addf %503, %506 : vector<32x128xf32>
    %cst_116 = arith.constant 5.000000e-01 : f32
    %508 = vector.broadcast %cst_116 : f32 to vector<32x128xf32>
    %509 = arith.cmpf oge, %507, %508 : vector<32x128xf32>
    %510 = arith.extui %509 : vector<32x128xi1> to vector<32x128xi32>
    %511 = arith.sitofp %510 : vector<32x128xi32> to vector<32x128xf32>
    %512 = tpu.concatenate %478, %489, %500, %511 in 1 : vector<32x128xf32>, vector<32x128xf32>, vector<32x128xf32>, vector<32x128xf32> -> vector<32x512xf32>
    %c0_117 = arith.constant 0 : index
    %c0_118 = arith.constant 0 : index
    %513 = vector.load %arg4[%c0_117, %c0_118] : memref<32x32xf32, #tpu.memory_space<vmem>>, vector<32x32xf32>
    %cst_119 = arith.constant dense<0.000000e+00> : vector<32x512xf32>
    %514 = tpu.matmul %513, %512, %cst_119 {dimension_numbers = #tpu.dot_dimension_numbers<[1], [0], [0], [1], [0, 0, 1, 1], [], []>} : vector<32x32xf32>, vector<32x512xf32>, vector<32x512xf32> -> vector<32x512xf32>
    %c0_120 = arith.constant 0 : index
    %c0_121 = arith.constant 0 : index
    %515 = vector.load %arg5[%c0_120, %c0_121] : memref<32x1xf32, #tpu.memory_space<vmem>>, vector<32x1xf32>
    %516 = vector.broadcast %515 : vector<32x1xf32> to vector<32x512xf32>
    %517 = arith.addf %514, %516 : vector<32x512xf32>
    %518 = vector.extract_strided_slice %517 {offsets = [0, 0], sizes = [32, 128], strides = [1, 1]} : vector<32x512xf32> to vector<32x128xf32>
    %519 = arith.subf %518, %11 : vector<32x128xf32>
    %cst_122 = arith.constant 5.000000e-01 : f32
    %520 = vector.broadcast %cst_122 : f32 to vector<32x128xf32>
    %521 = arith.mulf %519, %520 : vector<32x128xf32>
    %522 = arith.addf %11, %521 : vector<32x128xf32>
    %cst_123 = arith.constant 1.000000e+00 : f32
    %523 = vector.broadcast %cst_123 : f32 to vector<32x128xf32>
    %524 = arith.cmpf oge, %522, %523 : vector<32x128xf32>
    %525 = arith.extui %524 : vector<32x128xi1> to vector<32x128xi32>
    %526 = arith.sitofp %525 : vector<32x128xi32> to vector<32x128xf32>
    %cst_124 = arith.constant 1.000000e+00 : f32
    %527 = vector.broadcast %cst_124 : f32 to vector<32x128xf32>
    %528 = arith.subf %527, %526 : vector<32x128xf32>
    %529 = arith.mulf %522, %528 : vector<32x128xf32>
    %530 = vector.extract_strided_slice %517 {offsets = [0, 128], sizes = [32, 128], strides = [1, 1]} : vector<32x512xf32> to vector<32x128xf32>
    %531 = arith.subf %530, %529 : vector<32x128xf32>
    %cst_125 = arith.constant 5.000000e-01 : f32
    %532 = vector.broadcast %cst_125 : f32 to vector<32x128xf32>
    %533 = arith.mulf %531, %532 : vector<32x128xf32>
    %534 = arith.addf %529, %533 : vector<32x128xf32>
    %cst_126 = arith.constant 1.000000e+00 : f32
    %535 = vector.broadcast %cst_126 : f32 to vector<32x128xf32>
    %536 = arith.cmpf oge, %534, %535 : vector<32x128xf32>
    %537 = arith.extui %536 : vector<32x128xi1> to vector<32x128xi32>
    %538 = arith.sitofp %537 : vector<32x128xi32> to vector<32x128xf32>
    %cst_127 = arith.constant 1.000000e+00 : f32
    %539 = vector.broadcast %cst_127 : f32 to vector<32x128xf32>
    %540 = arith.subf %539, %538 : vector<32x128xf32>
    %541 = arith.mulf %534, %540 : vector<32x128xf32>
    %542 = vector.extract_strided_slice %517 {offsets = [0, 256], sizes = [32, 128], strides = [1, 1]} : vector<32x512xf32> to vector<32x128xf32>
    %543 = arith.subf %542, %541 : vector<32x128xf32>
    %cst_128 = arith.constant 5.000000e-01 : f32
    %544 = vector.broadcast %cst_128 : f32 to vector<32x128xf32>
    %545 = arith.mulf %543, %544 : vector<32x128xf32>
    %546 = arith.addf %541, %545 : vector<32x128xf32>
    %cst_129 = arith.constant 1.000000e+00 : f32
    %547 = vector.broadcast %cst_129 : f32 to vector<32x128xf32>
    %548 = arith.cmpf oge, %546, %547 : vector<32x128xf32>
    %549 = arith.extui %548 : vector<32x128xi1> to vector<32x128xi32>
    %550 = arith.sitofp %549 : vector<32x128xi32> to vector<32x128xf32>
    %cst_130 = arith.constant 1.000000e+00 : f32
    %551 = vector.broadcast %cst_130 : f32 to vector<32x128xf32>
    %552 = arith.subf %551, %550 : vector<32x128xf32>
    %553 = arith.mulf %546, %552 : vector<32x128xf32>
    %554 = vector.extract_strided_slice %517 {offsets = [0, 384], sizes = [32, 128], strides = [1, 1]} : vector<32x512xf32> to vector<32x128xf32>
    %555 = arith.subf %554, %553 : vector<32x128xf32>
    %cst_131 = arith.constant 5.000000e-01 : f32
    %556 = vector.broadcast %cst_131 : f32 to vector<32x128xf32>
    %557 = arith.mulf %555, %556 : vector<32x128xf32>
    %558 = arith.addf %553, %557 : vector<32x128xf32>
    %cst_132 = arith.constant 1.000000e+00 : f32
    %559 = vector.broadcast %cst_132 : f32 to vector<32x128xf32>
    %560 = arith.cmpf oge, %558, %559 : vector<32x128xf32>
    %561 = arith.extui %560 : vector<32x128xi1> to vector<32x128xi32>
    %562 = arith.sitofp %561 : vector<32x128xi32> to vector<32x128xf32>
    %563 = tpu.concatenate %526, %538, %550, %562 in 1 : vector<32x128xf32>, vector<32x128xf32>, vector<32x128xf32>, vector<32x128xf32> -> vector<32x512xf32>
    %564 = arith.truncf %563 : vector<32x512xf32> to vector<32x512xbf16>
    %c0_133 = arith.constant 0 : index
    %c0_134 = arith.constant 0 : index
    %c0_135 = arith.constant 0 : index
    %565 = vector.load %arg7[%c0_133, %c0_134, %c0_135] : memref<1x32x512xbf16, #tpu.memory_space<vmem>>, vector<1x32x512xbf16>
    %566 = vector.shape_cast %565 : vector<1x32x512xbf16> to vector<32x512xbf16>
    %567 = vector.shape_cast %564 : vector<32x512xbf16> to vector<1x32x512xbf16>
    tpu.vector_store %arg7[%c0_133, %c0_134, %c0_135], %567 {strides = array<i32>} : memref<1x32x512xbf16, #tpu.memory_space<vmem>>, vector<1x32x512xbf16>,
    return
  }
  func.func @transform_0(%arg0: i32) -> (i32, i32, i32) {
    %c0_i32 = arith.constant 0 : i32
    %c0_i32_0 = arith.constant 0 : i32
    %c0_i32_1 = arith.constant 0 : i32
    return %arg0, %c0_i32, %c0_i32_0 : i32, i32, i32
  }
  func.func @transform_1(%arg0: i32) -> (i32, i32) {
    %c0_i32 = arith.constant 0 : i32
    %c0_i32_0 = arith.constant 0 : i32
    %c0_i32_1 = arith.constant 0 : i32
    return %c0_i32, %c0_i32_0 : i32, i32
  }
  func.func @transform_2(%arg0: i32) -> (i32, i32) {
    %c0_i32 = arith.constant 0 : i32
    %c0_i32_0 = arith.constant 0 : i32
    %c0_i32_1 = arith.constant 0 : i32
    return %c0_i32, %c0_i32_0 : i32, i32
  }
  func.func @transform_3(%arg0: i32) -> (i32, i32) {
    %c0_i32 = arith.constant 0 : i32
    %c0_i32_0 = arith.constant 0 : i32
    %c0_i32_1 = arith.constant 0 : i32
    return %c0_i32, %c0_i32_0 : i32, i32
  }
  func.func @transform_4(%arg0: i32) -> (i32, i32) {
    %c0_i32 = arith.constant 0 : i32
    %c0_i32_0 = arith.constant 0 : i32
    %c0_i32_1 = arith.constant 0 : i32
    return %c0_i32, %c0_i32_0 : i32, i32
  }
  func.func @transform_5(%arg0: i32) -> (i32, i32) {
    %c0_i32 = arith.constant 0 : i32
    %c0_i32_0 = arith.constant 0 : i32
    %c0_i32_1 = arith.constant 0 : i32
    return %c0_i32, %c0_i32_0 : i32, i32
  }
  func.func @transform_6(%arg0: i32) -> (i32, i32, i32) {
    %c0_i32 = arith.constant 0 : i32
    %c0_i32_0 = arith.constant 0 : i32
    %c0_i32_1 = arith.constant 0 : i32
    return %arg0, %c0_i32, %c0_i32_0 : i32, i32, i32
  }
}

</mosaic_0001>

<bundles_post_ra>
// kernel: tpu_custom_call.1
= control target key start
LH: loop header
LB: loop body
LE: loop exit
PB: predicated region body
PF: predicated region fallthrough
CT: control target
= control target key end

     0   :  { %11 = vsyncpa [#allocation3], 0  ;;  %s10622_s0 = inlined_call_operand.vmem [shape: f32[2,32,512], index: 0, kind: input, shape index: {}]   ;;  %s10623_s1 = inlined_call_operand.vmem [shape: f32[96,32], index: 1, kind: input, shape index: {}]   ;;  %s10624_s2 = inlined_call_operand.vmem [shape: f32[96,1], index: 2, kind: input, shape index: {}]   ;;  %s10625_s3 = inlined_call_operand.hbm [shape: f32[32,32], index: 3, kind: input, shape index: {}]   ;;  %s10626_s4 = inlined_call_operand.vmem [shape: f32[32,1], index: 4, kind: input, shape index: {}]   ;;  %s10627_s5 = inlined_call_operand.hbm [shape: f32[32,32], index: 5, kind: input, shape index: {}]   ;;  %s10628_s6 = inlined_call_operand.hbm [shape: bf16[2,32,512], index: 6, kind: output, shape index: {}]  }
   0x1   :  { %12 = vsyncpa [#allocation6], 0 }
   0x2   :  { %13 = vsyncpa [#allocation4], 0 }
   0x3   :  { %15 = vsyncpa [#allocation4 + $0x1], 0  ;;  %s7994_s21 = smov 0   ;;  %s7996_s22 = smov 0  }
   0x4   :  { %s7998_s23 = smov 0   ;;  %s8000_s24 = smov 0  }
   0x5 LB: > { %s8015_s25 = sadd.s32 4294967295, %s7941_s24   ;;  %s6558_s26 = sadd.s32 4294967294, %s7941_s24   ;;  %s7941_s24 = sphi %s8000_s24, %s10986_s24   ;;  %s7937_s23 = sphi %s7998_s23, %s10985_s23   ;;  %s7933_s22 = sphi %s7996_s22, %s10984_s22   ;;  %s7929_s21 = sphi %s7994_s21, %s10983_s21  }
   0x6   : > { %s8019_s27 = sadd.s32 1, %s7941_s24   ;;  %s159_s28 = sadd.s32 1, %s7937_s23 }
   0x7   : > { %s156_s29 = ssub.s32 %s7941_s24, %s8019_s27  ;;  %p169_p0 = scmp.ne.s32.totalorder %s7937_s23, %s7933_s22 }
   0x8   : > { %p157_p1 = scmp.eq.s32.totalorder %s156_s29, 0  ;;  %p170_p2 = scmp.eq.s32.totalorder %s8015_s25, 1 }
   0x9   : > { %p175_p3 = scmp.ne.s32.totalorder %s7933_s22, %s7929_s21  ;;  %p176_p4 = scmp.eq.s32.totalorder %s6558_s26, 1 }
   0xa   : > { %s8030_s30 = scalar_select %p157_p1, %s7937_s23, %s159_s28  }
   0xb   : > { %p8032_p5 = por %p170_p2, %p169_p0  ;;  %p8036_p6 = por %p176_p4, %p175_p3 }
   0xc   : > { %p6559_p7 = scmp.ge.s32.totalorder %s7941_s24, 1  ;;  %p183_p8 = scmp.lt.s32.totalorder %s7941_s24, 3 }
   0xd   : > { %s10718_s7 = scalar_select %p8032_p5, 1, 0 }
   0xe   : > { %s10719_s8 = scalar_select %p8036_p6, 1, 0 }
   0xf   : > { %p10629_p9 = scmp.eq.s32.totalorder %s8015_s25, 0  ;;  %p8043_p10 = pnand %p6559_p7, %p183_p8 }
  0x10   : > { %s7943_s10 = smov [#allocation2]   ;;  %s7944_s13 = smov [#allocation5]  }
  0x11   : > { %s10720_s9 = scalar_select %p8043_p10, 1, 0 }
  0x12   : > { %s201_s11 = sshll.u32 %s7943_s10, 4  ;;  %p7742_p11 = pneg %p8043_p10  ;;  %s202_s11 = int_to_ptr.vmem [resolvable:$true] %s201_s11 }
  0x13   : > { %s217_s14 = sshll.u32 %s7944_s13, 4  ;;  %s7815_s17 = scalar_lea.hbm %s10625_s3, 512  ;;  %s8055_s14 = int_to_ptr.vmem [resolvable:$true] %s217_s14 }
  0x14   : > { %p8051_p12 = pnand %p10629_p9, %p7742_p11  ;;  %p7816_p13 = scmp.ne.s32.totalorder %s10625_s3, %s7815_s17 }
  0x15   : > { %p7822_p3 = scmp.lt.u32.totalorder %s7815_s17, %s10625_s3 }
  0x16   : > { %p7817_p0 = pneg %p8051_p12 }
  0x18   : > { %p7818_p1 = pnand %p7817_p0, %p7816_p13 }
  0x1a   : > { %p7819_p2 = pneg %p7818_p1 }
  0x1c   : > { %p7824_p4 = pnand %p7822_p3, %p7819_p2 }
  0x1e   : > { %7827 = shalt.err (!%p7824_p4)
}
  0x1f   : > { %s7828_s28 = scalar_lea.vmem %s202_s11, 512  ;;  %p7836_p9 = scmp.lt.s32.totalorder %s202_s11, %s202_s11 }
  0x20   : > { %p7829_p7 = scmp.ne.s32.totalorder %s202_s11, %s7828_s28  ;;  %p7837_p6 = scmp.lt.s32.totalorder %s7828_s28, %s7828_s28 }
  0x22   : > { %p7831_p8 = pnand %p7829_p7, %p7817_p0  ;;  %p7838_p5 = por %p7837_p6, %p7836_p9 }
  0x24   : > { %p7832_p11 = pneg %p7831_p8 }
  0x26   : > { %p7839_p10 = pnand %p7838_p5, %p7832_p11 }
  0x28   : > { %7842 = shalt.err (!%p7839_p10)
}
  0x29   : > { %s7945_s29 = smov 128   ;;  %s7946_s10 = smov 8  }
  0x2a   : > { %7745 = dma.hbm_to_vmem [thread:$0]  (!%p8051_p12), %s10625_s3, 512, %s202_s11, [#allocation3], %s7945_s29, %s7945_s29, %s7946_s10  }
  0x2b   : > { %s7843_s18 = scalar_lea.hbm %s10627_s5, 512 }
  0x2c   : > { %p7844_p13 = scmp.ne.s32.totalorder %s10627_s5, %s7843_s18  ;;  %p7850_p9 = scmp.lt.u32.totalorder %s7843_s18, %s10627_s5 }
  0x2e   : > { %p7846_p5 = pnand %p7844_p13, %p7817_p0 }
  0x30   : > { %p7847_p6 = pneg %p7846_p5 }
  0x32   : > { %p7852_p10 = pnand %p7850_p9, %p7847_p6 }
  0x34   : > { %7855 = shalt.err (!%p7852_p10)
}
  0x35   : > { %s7856_s11 = scalar_lea.vmem %s8055_s14, 512  ;;  %p7864_p4 = scmp.lt.s32.totalorder %s8055_s14, %s8055_s14 }
  0x36   : > { %p7857_p1 = scmp.ne.s32.totalorder %s8055_s14, %s7856_s11  ;;  %p7865_p7 = scmp.lt.s32.totalorder %s7856_s11, %s7856_s11 }
  0x38   : > { %p7859_p2 = pnand %p7857_p1, %p7817_p0  ;;  %p7866_p8 = por %p7865_p7, %p7864_p4 }
  0x3a   : > { %p7860_p3 = pneg %p7859_p2 }
  0x3c   : > { %p7867_p11 = pnand %p7866_p8, %p7860_p3 }
  0x3e   : > { %7870 = shalt.err (!%p7867_p11)
}
  0x3f   : > { %7748 = dma.hbm_to_vmem [thread:$0]  (!%p8051_p12), %s10627_s5, 512, %s8055_s14, [#allocation6], %s7945_s29, %s7945_s29, %s7946_s10  }
  0x40   : > { %p10722_p13 = scmp.ne.s32.totalorder %s10720_s9, 0 }
  0x42   : > { %241 = sbr.rel (%p10722_p13) target bundleno = 8401 (0x20d1), region = 44 }
  0x49   : > { %p10723_p5 = scmp.eq.s32.totalorder %s8015_s25, 0 }
  0x4b   : > { %7916 = dma.done.wait (%p10723_p5), [#allocation3], 512   ;;  %p10724_p0 = pmov %p10723_p5 }
  0x4d   : > { %7918 = vsyncadd (%p10724_p0), [#allocation3], 4294966784  ;;  %p10725_p6 = pmov %p10724_p0 }
  0x4e   : > { %p10726_p9 = pmov %p10724_p0 }
  0x4f   : > { %7920 = dma.done.wait (%p10725_p6), [#allocation6], 512  }
  0x50   : > { %7922 = vsyncadd (%p10726_p9), [#allocation6], 4294966784  ;;  %p275_p10 = scmp.lt.s32.totalorder %s8015_s25, 1  ;;  %v10634_v0 = vmov 0.0   ;;  %v7948_v1 = vmov 0   ;;  %v281_v26 = vld [vmem:[%s10623_s1] sm:$0xff] }
  0x51   : > { %486 = vmatprep.mubr.f32.mxu0 %v10634_v0  ;;  %623 = vmatprep.mubr.f32.mxu1 %v10634_v0  ;;  %vm385_vm0 = vcmask 261120   ;;  %v297_v27 = vld [vmem:[%s10624_s2 + $0x20] sm:$0xff]  ;;  %v299_v28 = vld [vmem:[%s10624_s2 + $0x30] sm:$0xff]  ;;  %v298_v29 = vld [vmem:[%s10624_s2 + $0x28] sm:$0xff]  ;;  %vm1048_vm3 = vcmask 130048   ;;  %s7951_s20 = smov 96  }
  0x52   : > { %s276_s9 = scalar_select %p275_p10, %s8015_s25, 1  ;;  %7805 = vset.pattern.permute.xlu0 %v7948_v1  ;;  %7806 = vset.pattern.permute.xlu1 %v7948_v1  ;;  %v282_v30 = vld [vmem:[%s10623_s1 + $0x8] sm:$0xff]  ;;  %v300_v31 = vld [vmem:[%s10624_s2 + $0x38] sm:$0xff]  ;;  %v301_v32 = vld [vmem:[%s10624_s2 + $0x40] sm:$0xff] }
  0x53   : > { %347 = vperm.xlu0 %7805, %v297_v27   ;;  %357 = vperm.xlu1 %7806, %v299_v28   ;;  %v283_v33 = vld [vmem:[%s10623_s1 + $0x10] sm:$0xff]  ;;  %v302_v34 = vld [vmem:[%s10624_s2 + $0x48] sm:$0xff]  ;;  %v284_v36 = vld [vmem:[%s10623_s1 + $0x18] sm:$0xff]  ;;  %s7952_s26 = smov 80   ;;  %s7953_s28 = smov 64  }
  0x54   : > { %s6854_s12 = sshll.u32 %s276_s9, 7  ;;  %v303_v35 = vld [vmem:[%s10624_s2 + $0x50] sm:$0xff]  ;;  %v304_v37 = vld [vmem:[%s10624_s2 + $0x58] sm:$0xff]  ;;  %v285_v38 = vld [vmem:[%s10623_s1 + $0x20] sm:$0xff]  ;;  %s7949_s9 = smov 112  }
  0x55   : > { %s279_s10 = scalar_lea.vmem %s10622_s0, %s6854_s12  ;;  %v286_v39 = vld [vmem:[%s10623_s1 + $0x28] sm:$0xff]  ;;  %v287_v40 = vld [vmem:[%s10623_s1 + $0x30] sm:$0xff]  ;;  %v288_v41 = vld [vmem:[%s10623_s1 + $0x38] sm:$0xff]  ;;  %s7954_s11 = smov 48  }
  0x56   : > { %v310_v2 = vld [vmem:[%s279_s10 + $0x8] sm:$0xff]  ;;  %v312_v4 = vld [vmem:[%s279_s10 + $0x18] sm:$0xff]  ;;  %v309_v7 = vld [vmem:[%s279_s10] sm:$0xff]  ;;  %s7955_s13 = smov 32   ;;  %s7956_s15 = smov 16  }
  0x57   : > { %v314_v3 = vld [vmem:[%s279_s10 + $0x28] sm:$0xff]  ;;  %v316_v6 = vld [vmem:[%s279_s10 + $0x38] sm:$0xff]  ;;  %v313_v8 = vld [vmem:[%s279_s10 + $0x20] sm:$0xff]  ;;  %352 = vperm.xlu0 %7805, %v298_v29   ;;  %362 = vperm.xlu1 %7806, %v300_v31   ;;  %p10981_p1 = scmp.ne.s32.totalorder %s10718_s7, 0 }
  0x58   : > { %v7632_v5 = vpack.c.bf16 %v314_v3, %v310_v2  ;;  %v7640_v9 = vpack.c.bf16 %v316_v6, %v312_v4  ;;  %v7634_v10 = vpack.c.bf16 %v313_v8, %v309_v7  ;;  %v311_v11 = vld [vmem:[%s279_s10 + $0x10] sm:$0xff]  ;;  %v318_v13 = vld [vmem:[%s279_s10 + $0x48] sm:$0xff]  ;;  %v320_v16 = vld [vmem:[%s279_s10 + $0x58] sm:$0xff] }
  0x59   : > { %v315_v12 = vld [vmem:[%s279_s10 + $0x30] sm:$0xff]  ;;  %v322_v15 = vld [vmem:[%s279_s10 + $0x68] sm:$0xff]  ;;  %v324_v17 = vld [vmem:[%s279_s10 + $0x78] sm:$0xff] }
  0x5a   : > { %7633 = vmatprep.subr.bf16.mxu0 %v7632_v5  ;;  %v7642_v14 = vpack.c.bf16 %v315_v12, %v311_v11  ;;  %7641 = vmatprep.subr.bf16.mxu1 %v7640_v9  ;;  %v7636_v18 = vpack.c.bf16 %v322_v15, %v318_v13  ;;  %v7644_v19 = vpack.c.bf16 %v324_v17, %v320_v16  ;;  %v317_v20 = vld [vmem:[%s279_s10 + $0x40] sm:$0xff]  ;;  %v319_v22 = vld [vmem:[%s279_s10 + $0x50] sm:$0xff]  ;;  %v290_v43 = vld [vmem:[%s10623_s1 + $0x48] sm:$0xff] }
  0x5b   : > { %7635 = vmatpush1.bf16.msra.mxu0 %v7634_v10  ;;  %v321_v21 = vld [vmem:[%s279_s10 + $0x60] sm:$0xff]  ;;  %v323_v24 = vld [vmem:[%s279_s10 + $0x70] sm:$0xff]  ;;  %367 = vperm.xlu0 %7805, %v301_v32   ;;  %v292_v45 = vld [vmem:[%s10623_s1 + $0x58] sm:$0xff]  ;;  %s7957_s10 = smov [#allocation7]  }
  0x5c   : > { %7643 = vmatpush1.bf16.msra.mxu1 %v7642_v14  ;;  %v7638_v23 = vpack.c.bf16 %v321_v21, %v317_v20  ;;  %7637 = vmatprep.subr.bf16.mxu0 %v7636_v18  ;;  %v7646_v25 = vpack.c.bf16 %v323_v24, %v319_v22  ;;  %v289_v42 = vld [vmem:[%s10623_s1 + $0x40] sm:$0xff]  ;;  %v291_v44 = vld [vmem:[%s10623_s1 + $0x50] sm:$0xff]  ;;  %s7875_s16 = sshll.u32 %s7957_s10, 4  ;;  %s7876_s16 = int_to_ptr.vmem [resolvable:$false] %s7875_s16 }
  0x5d   : > { %7645 = vmatprep.subr.bf16.mxu1 %v7644_v19  ;;  %372 = vperm.xlu1 %7806, %v302_v34   ;;  %s7877_s17 = scalar_lea.vmem %s7876_s16, 2048 }
  0x5f   : > { %7639 = vmatpush1.bf16.msra.mxu0 %v7638_v23  ;;  %377 = vperm.xlu0 %7805, %v303_v35  }
  0x60   : > { %7647 = vmatpush1.bf16.msra.mxu1 %v7646_v25 }
  0x61   : > { %382 = vperm.xlu1 %7806, %v304_v37  }
  0x62   : > { %6569 = vmatmul.mubr.msk.f32.vlgmr.msra.gmra.mrb[0].mxu0 %vm385_vm0, %v281_v26 }
  0x63   : > { %6581 = vmatmul.mubr.msk.f32.vlgmr.msra.gmra.mrb[0].mxu1 %vm385_vm0, %v281_v26  ;;  %492 = vmatprep.mubr.f32.mxu0 %v10634_v0 }
  0x64   : > { %629 = vmatprep.mubr.f32.mxu1 %v10634_v0 }
  0x66   : > { %6570 = vmatmul.mubr.msk.f32.gmra.mrb[2].mxu0 %vm385_vm0, %v282_v30 }
  0x67   : > { %6582 = vmatmul.mubr.msk.f32.gmra.mrb[2].mxu1 %vm385_vm0, %v282_v30  ;;  %498 = vmatprep.mubr.f32.mxu0 %v10634_v0 }
  0x68   : > { %635 = vmatprep.mubr.f32.mxu1 %v10634_v0 }
  0x6a   : > { %6571 = vmatmul.mubr.msk.f32.gmra.mrb[4].mxu0 %vm385_vm0, %v283_v33 }
  0x6b   : > { %6583 = vmatmul.mubr.msk.f32.gmra.mrb[4].mxu1 %vm385_vm0, %v283_v33  ;;  %504 = vmatprep.mubr.f32.mxu0 %v10634_v0 }
  0x6c   : > { %641 = vmatprep.mubr.f32.mxu1 %v10634_v0 }
  0x6e   : > { %6572 = vmatmul.mubr.msk.f32.gmra.mrb[6].mxu0 %vm385_vm0, %v284_v36 }
  0x6f   : > { %6584 = vmatmul.mubr.msk.f32.gmra.mrb[6].mxu1 %vm385_vm0, %v284_v36  ;;  %510 = vmatprep.mubr.f32.mxu0 %v10634_v0 }
  0x70   : > { %647 = vmatprep.mubr.f32.mxu1 %v10634_v0 }
  0x72   : > { %6573 = vmatmul.mubr.msk.f32.gmra.mrb[8].mxu0 %vm385_vm0, %v285_v38 }
  0x73   : > { %6585 = vmatmul.mubr.msk.f32.gmra.mrb[8].mxu1 %vm385_vm0, %v285_v38  ;;  %516 = vmatprep.mubr.f32.mxu0 %v10634_v0 }
  0x74   : > { %653 = vmatprep.mubr.f32.mxu1 %v10634_v0 }
  0x76   : > { %6574 = vmatmul.mubr.msk.f32.gmra.mrb[10].mxu0 %vm385_vm0, %v286_v39 }
  0x77   : > { %6586 = vmatmul.mubr.msk.f32.gmra.mrb[10].mxu1 %vm385_vm0, %v286_v39  ;;  %522 = vmatprep.mubr.f32.mxu0 %v10634_v0 }
  0x78   : > { %659 = vmatprep.mubr.f32.mxu1 %v10634_v0 }
  0x7a   : > { %6575 = vmatmul.mubr.msk.f32.gmra.mrb[12].mxu0 %vm385_vm0, %v287_v40 }
  0x7b   : > { %6587 = vmatmul.mubr.msk.f32.gmra.mrb[12].mxu1 %vm385_vm0, %v287_v40  ;;  %528 = vmatprep.mubr.f32.mxu0 %v10634_v0 }
  0x7c   : > { %665 = vmatprep.mubr.f32.mxu1 %v10634_v0 }
  0x7e   : > { %6576 = vmatmul.mubr.msk.f32.gmra.mrb[14].mxu0 %vm385_vm0, %v288_v41 }
  0x7f   : > { %6588 = vmatmul.mubr.msk.f32.gmra.mrb[14].mxu1 %vm385_vm0, %v288_v41  ;;  %534 = vmatprep.mubr.f32.mxu0 %v10634_v0 }
  0x80   : > { %671 = vmatprep.mubr.f32.mxu1 %v10634_v0 }
  0x82   : > { %6577 = vmatmul.mubr.msk.f32.gmra.mrb[16].mxu0 %vm385_vm0, %v289_v42 }
  0x83   : > { %6589 = vmatmul.mubr.msk.f32.gmra.mrb[16].mxu1 %vm385_vm0, %v289_v42  ;;  %540 = vmatprep.mubr.f32.mxu0 %v10634_v0 }
  0x84   : > { %677 = vmatprep.mubr.f32.mxu1 %v10634_v0 }
  0x86   : > { %6578 = vmatmul.mubr.msk.f32.gmra.mrb[18].mxu0 %vm385_vm0, %v290_v43 }
  0x87   : > { %6590 = vmatmul.mubr.msk.f32.gmra.mrb[18].mxu1 %vm385_vm0, %v290_v43  ;;  %546 = vmatprep.mubr.f32.mxu0 %v10634_v0 }
  0x88   : > { %683 = vmatprep.mubr.f32.mxu1 %v10634_v0 }
  0x8a   : > { %6579 = vmatmul.mubr.msk.f32.gmra.mrb[20].mxu0 %vm385_vm0, %v291_v44 }
  0x8b   : > { %6591 = vmatmul.mubr.msk.f32.gmra.mrb[20].mxu1 %vm385_vm0, %v291_v44  ;;  %552 = vmatprep.mubr.f32.mxu0 %v10634_v0 }
  0x8c   : > { %689 = vmatprep.mubr.f32.mxu1 %v10634_v0 }
  0x8e   : > { %6580 = vmatmul.mubr.msk.f32.gmra.mrb[22].mxu0 %vm385_vm0, %v292_v45 }
  0x8f   : > { %6592 = vmatmul.mubr.msk.f32.gmra.mrb[22].mxu1 %vm385_vm0, %v292_v45 }
  0xd2   : > { %v348_v61 = vpop.permute.xlu0 %347  ;;  %v358_v12 = vpop.permute.xlu1 %357 }
  0xd6   : > { %v353_v6 = vpop.permute.xlu0 %352  ;;  %v363_v30 = vpop.permute.xlu1 %362 }
 0x135   : > { %v8227_v46 = vpop.f32.mrb[0].mxu0 }
 0x136   : > { %v8229_v47 = vpop.f32.mrb[1].mxu0  ;;  %v8231_v48 = vpop.f32.mrb[0].mxu1 }
 0x137   : > { %v8233_v49 = vpop.f32.mrb[1].mxu1 }
 0x139   : > { %v8235_v50 = vpop.f32.mrb[2].mxu0 }
 0x13a   : > { %v8237_v51 = vpop.f32.mrb[3].mxu0  ;;  %v8239_v52 = vpop.f32.mrb[2].mxu1 }
 0x13b   : > { %v8241_v53 = vpop.f32.mrb[3].mxu1 }
 0x13d   : > { %v8243_v54 = vpop.f32.mrb[4].mxu0 }
 0x13e   : > { %v8245_v55 = vpop.f32.mrb[5].mxu0  ;;  %v8247_v56 = vpop.f32.mrb[4].mxu1 }
 0x13f   : > { %v8249_v57 = vpop.f32.mrb[5].mxu1 }
 0x141   : > { %v8251_v58 = vpop.f32.mrb[6].mxu0 }
 0x142   : > { %v8253_v59 = vpop.f32.mrb[7].mxu0  ;;  %v8255_v60 = vpop.f32.mrb[6].mxu1 }
 0x143   : > { %v8257_v62 = vpop.f32.mrb[7].mxu1 }
 0x144   : > { %10727 = vst [vmem:[#allocation11_spill] sm:$0xff] %v8257_v62 }
 0x145   : > { %v512_v63 = vpop.f32.mrb[8].mxu0 }
 0x146   : > { %v513_v1 = vadd.f32 %v512_v63, %v348_v61  ;;  %v514_v2 = vpop.f32.mrb[9].mxu0  ;;  %v649_v3 = vpop.f32.mrb[8].mxu1 }
 0x147   : > { %v651_v4 = vpop.f32.mrb[9].mxu1  ;;  %v515_v18 = vadd.f32 %v514_v2, %v348_v61  ;;  %v8263_v29 = vadd.f32 %v649_v3, %v348_v61  ;;  %v8276_v63 = vpop.permute.xlu0 %367 }
 0x148   : > { %v724_v5 = vmul.f32 0.5, %v513_v1  ;;  %v8269_v37 = vadd.f32 %v651_v4, %v348_v61 }
 0x149   : > { %v518_v7 = vpop.f32.mrb[10].mxu0 }
 0x14a   : > { %vm732_vm1 = vcmp.ge.f32.partialorder %v724_v5, 1.0  ;;  %v519_v8 = vadd.f32 %v518_v7, %v353_v6  ;;  %v520_v9 = vpop.f32.mrb[11].mxu0  ;;  %v655_v10 = vpop.f32.mrb[10].mxu1 }
 0x14b   : > { %v6597_v11 = vsel %vm732_vm1, 1.0, %v10634_v0  ;;  %v657_v13 = vpop.f32.mrb[11].mxu1  ;;  %v521_v28 = vadd.f32 %v520_v9, %v353_v6  ;;  %v8271_v38 = vadd.f32 %v655_v10, %v353_v6 }
 0x14c   : > { %v744_v14 = vsub.f32 1.0, %v6597_v11  ;;  %v725_v15 = vmul.f32 0.5, %v519_v8  ;;  %v8278_v1 = vadd.f32 %v657_v13, %v353_v6 }
 0x14d   : > { %v524_v16 = vpop.f32.mrb[12].mxu0 }
 0x14e   : > { %v748_v17 = vmul.f32 %v744_v14, %v724_v5  ;;  %vm733_vm2 = vcmp.ge.f32.partialorder %v725_v15, 1.0  ;;  %v525_v19 = vadd.f32 %v524_v16, %v358_v12  ;;  %v526_v20 = vpop.f32.mrb[13].mxu0  ;;  %v661_v21 = vpop.f32.mrb[12].mxu1 }
 0x14f   : > { %v6598_v22 = vsel %vm733_vm2, 1.0, %v10634_v0  ;;  %v663_v23 = vpop.f32.mrb[13].mxu1  ;;  %v527_v2 = vadd.f32 %v526_v20, %v358_v12  ;;  %v8280_v61 = vadd.f32 %v661_v21, %v358_v12 }
 0x150   : > { %v812_v24 = vsub.f32 %v515_v18, %v748_v17  ;;  %v745_v25 = vsub.f32 1.0, %v6598_v22  ;;  %v8261_v26 = vpack.c.bf16 %v6598_v22, %v6597_v11  ;;  %v726_v27 = vmul.f32 0.5, %v525_v19  ;;  %v8289_v18 = vpop.permute.xlu1 %372 }
 0x151   : > { %v530_v31 = vpop.f32.mrb[14].mxu0  ;;  %v8282_v3 = vadd.f32 %v663_v23, %v358_v12 }
 0x152   : > { %v816_v32 = vmul.f32 0.5, %v812_v24  ;;  %v749_v33 = vmul.f32 %v745_v25, %v725_v15  ;;  %vm734_vm4 = vcmp.ge.f32.partialorder %v726_v27, 1.0  ;;  %v531_v34 = vadd.f32 %v530_v31, %v363_v30  ;;  %v532_v35 = vpop.f32.mrb[15].mxu0  ;;  %1181 = vrot.lane.b32.xlu0 %v8261_v26, %s7949_s9  ;;  %7668 = vmatprep.subr.msk.bf16.mxu0 %vm1048_vm3, %v8261_v26  ;;  %v667_v36 = vpop.f32.mrb[14].mxu1 }
 0x153   : > { %v6599_v39 = vsel %vm734_vm4, 1.0, %v10634_v0  ;;  %v1056_v40 = vsel %vm1048_vm3, %v8261_v26, 0  ;;  %v669_v41 = vpop.f32.mrb[15].mxu1  ;;  %v533_v14 = vadd.f32 %v532_v35, %v363_v30  ;;  %v8293_v20 = vadd.f32 %v667_v36, %v363_v30 }
 0x154   : > { %v820_v42 = vadd.f32 %v816_v32, %v748_v17  ;;  %v813_v43 = vsub.f32 %v521_v28, %v749_v33  ;;  %v746_v44 = vsub.f32 1.0, %v6599_v39  ;;  %v727_v45 = vmul.f32 0.5, %v531_v34  ;;  %7121 = vmatpush3.bf16.xpose.msra.mxu0 %v1056_v40 }
 0x155   : > { %v536_v4 = vpop.f32.mrb[16].mxu0  ;;  %v8295_v21 = vadd.f32 %v669_v41, %v363_v30 }
 0x156   : > { %vm824_vm5 = vcmp.ge.f32.partialorder %v820_v42, 1.0  ;;  %v817_v5 = vmul.f32 0.5, %v813_v43  ;;  %v750_v7 = vmul.f32 %v746_v44, %v726_v27  ;;  %vm735_vm6 = vcmp.ge.f32.partialorder %v727_v45, 1.0  ;;  %v673_v8 = vpop.f32.mrb[16].mxu1  ;;  %v538_v9 = vpop.f32.mrb[17].mxu0 }
 0x157   : > { %v6609_v10 = vsel %vm824_vm5, 1.0, %v10634_v0  ;;  %v6600_v11 = vsel %vm735_vm6, 1.0, %v10634_v0  ;;  %v537_v6 = vadd.f32 %v536_v4, %v8276_v63  ;;  %v8287_v13 = vpop.f32.mrb[17].mxu1  ;;  %v539_v43 = vadd.f32 %v538_v9, %v8276_v63 }
 0x158   : > { %v821_v15 = vadd.f32 %v817_v5, %v749_v33  ;;  %v836_v16 = vsub.f32 1.0, %v6609_v10  ;;  %v814_v12 = vsub.f32 %v527_v2, %v750_v7  ;;  %v747_v17 = vsub.f32 1.0, %v6600_v11 }
 0x159   : > { %v8291_v19 = vpack.c.bf16 %v6600_v11, %v6599_v39  ;;  %v752_v22 = vmul.f32 0.5, %v537_v6  ;;  %v542_v23 = vpop.f32.mrb[18].mxu0  ;;  %v8301_v33 = vadd.f32 %v673_v8, %v8276_v63 }
 0x15a   : > { %vm825_vm7 = vcmp.ge.f32.partialorder %v821_v15, 1.0  ;;  %v840_v24 = vmul.f32 %v836_v16, %v820_v42  ;;  %v818_v25 = vmul.f32 0.5, %v814_v12  ;;  %v751_v27 = vmul.f32 %v747_v17, %v727_v45  ;;  %v8297_v28 = vpop.f32.mrb[18].mxu1  ;;  %v544_v31 = vpop.f32.mrb[19].mxu0 }
 0x15b   : > { %v6610_v32 = vsel %vm825_vm7, 1.0, %v10634_v0  ;;  %vm760_vm8 = vcmp.ge.f32.partialorder %v752_v22, 1.0  ;;  %v543_v34 = vadd.f32 %v542_v23, %v8289_v18  ;;  %v8304_v35 = vpop.f32.mrb[19].mxu1  ;;  %1183 = vrot.lane.b32.xlu1 %v8291_v19, %s7949_s9  ;;  %7669 = vmatprep.subr.msk.bf16.mxu0 %vm1048_vm3, %v8291_v19  ;;  %v8324_v16 = vpop.permute.xlu0 %377 }
 0x15c   : > { %v908_v30 = vsub.f32 %v8263_v29, %v840_v24  ;;  %v837_v36 = vsub.f32 1.0, %v6610_v32  ;;  %v8311_v39 = vpack.c.bf16 %v6610_v32, %v6609_v10  ;;  %v822_v40 = vadd.f32 %v818_v25, %v750_v7 }
 0x15d   : > { %v815_v41 = vsub.f32 %v533_v14, %v751_v27  ;;  %v6601_v42 = vsel %vm760_vm8, 1.0, %v10634_v0  ;;  %v753_v44 = vmul.f32 0.5, %v543_v34  ;;  %v548_v45 = vpop.f32.mrb[20].mxu0  ;;  %v545_v7 = vadd.f32 %v544_v31, %v8289_v18 }
 0x15e   : > { %10728 = vst [vmem:[#allocation12_spill] sm:$0xff] %v8311_v39  ;;  %v912_v2 = vmul.f32 0.5, %v908_v30  ;;  %v841_v4 = vmul.f32 %v837_v36, %v821_v15  ;;  %vm826_vm9 = vcmp.ge.f32.partialorder %v822_v40, 1.0  ;;  %v772_v5 = vsub.f32 1.0, %v6601_v42  ;;  %v8315_v8 = vpop.f32.mrb[20].mxu1  ;;  %v8317_v11 = vpop.f32.mrb[21].mxu0 }
 0x15f   : > { %v6611_v29 = vsel %vm826_vm9, 1.0, %v10634_v0  ;;  %v819_v10 = vmul.f32 0.5, %v815_v41  ;;  %vm761_vm10 = vcmp.ge.f32.partialorder %v753_v44, 1.0  ;;  %v8321_v14 = vpop.f32.mrb[21].mxu1  ;;  %v1059_v25 = vsel %vm1048_vm3, %v8291_v19, 0 }
 0x160   : > { %v916_v6 = vadd.f32 %v912_v2, %v840_v24  ;;  %v909_v9 = vsub.f32 %v8271_v38, %v841_v4  ;;  %v838_v15 = vsub.f32 1.0, %v6611_v29  ;;  %v776_v12 = vmul.f32 %v772_v5, %v752_v22  ;;  %7123 = vmatpush3.bf16.xpose.msra.mxu0 %v1059_v25 }
 0x161   : > { %v823_v17 = vadd.f32 %v819_v10, %v751_v27  ;;  %v6602_v23 = vsel %vm761_vm10, 1.0, %v10634_v0  ;;  %v549_v32 = vadd.f32 %v548_v45, %v8324_v16  ;;  %v8330_v34 = vpop.f32.mrb[22].mxu0 }
 0x162   : > { %vm920_vm11 = vcmp.ge.f32.partialorder %v916_v6, 1.0  ;;  %v913_v31 = vmul.f32 0.5, %v909_v9  ;;  %v842_v30 = vmul.f32 %v838_v15, %v822_v40  ;;  %v844_v24 = vsub.f32 %v539_v43, %v776_v12  ;;  %v8332_v38 = vpop.f32.mrb[22].mxu1  ;;  %v8334_v36 = vpop.f32.mrb[23].mxu0 }
 0x163   : > { %v6621_v22 = vsel %vm920_vm11, 1.0, %v10634_v0  ;;  %vm827_vm12 = vcmp.ge.f32.partialorder %v823_v17, 1.0  ;;  %v773_v27 = vsub.f32 1.0, %v6602_v23  ;;  %v8337_v41 = vpack.c.bf16 %v6602_v23, %v6601_v42  ;;  %v8339_v2 = vpop.f32.mrb[23].mxu1 }
 0x164   : > { %v932_v45 = vsub.f32 1.0, %v6621_v22  ;;  %v917_v5 = vadd.f32 %v913_v31, %v841_v4  ;;  %v910_v10 = vsub.f32 %v8280_v61, %v842_v30  ;;  %v6612_v40 = vsel %vm827_vm12, 1.0, %v10634_v0  ;;  %v293_v61 = vld [vmem:[%s10624_s2] sm:$0xff] }
 0x165   : > { %v839_v43 = vsub.f32 1.0, %v6612_v40  ;;  %v8343_v9 = vpack.c.bf16 %v6612_v40, %v6611_v29  ;;  %v848_v15 = vmul.f32 0.5, %v844_v24  ;;  %v777_v25 = vmul.f32 %v773_v27, %v753_v44  ;;  %7124 = vmatprep.mubr.msk.bf16.mxu0 %vm1048_vm3, %v8337_v41  ;;  %1175 = vrot.lane.b32.xlu0 %v8337_v41, %s7949_s9 }
 0x166   : > { %v936_v42 = vmul.f32 %v932_v45, %v916_v6  ;;  %vm921_vm13 = vcmp.ge.f32.partialorder %v917_v5, 1.0  ;;  %v914_v23 = vmul.f32 0.5, %v910_v10  ;;  %v754_v39 = vmul.f32 0.5, %v549_v32 }
 0x167   : > { %10729 = vst [vmem:[#allocation13_spill] sm:$0xff] %v8343_v9  ;;  %v6622_v4 = vsel %vm921_vm13, 1.0, %v10634_v0  ;;  %v843_v29 = vmul.f32 %v839_v43, %v823_v17  ;;  %v852_v31 = vadd.f32 %v848_v15, %v776_v12  ;;  %v845_v24 = vsub.f32 %v545_v7, %v777_v25  ;;  %v295_v7 = vld [vmem:[%s10624_s2 + $0x10] sm:$0xff] }
 0x168   : > { %v996_v44 = vsub.f32 %v8269_v37, %v936_v42  ;;  %v933_v27 = vsub.f32 1.0, %v6622_v4  ;;  %v8354_v40 = vpack.c.bf16 %v6622_v4, %v6621_v22  ;;  %v918_v9 = vadd.f32 %v914_v23, %v842_v30 }
 0x169   : > { %v911_v6 = vsub.f32 %v8293_v20, %v843_v29  ;;  %vm856_vm14 = vcmp.ge.f32.partialorder %v852_v31, 1.0  ;;  %v849_v45 = vmul.f32 0.5, %v845_v24  ;;  %vm762_vm15 = vcmp.ge.f32.partialorder %v754_v39, 1.0  ;;  %327 = vperm.xlu0 %7805, %v293_v61  }
 0x16a   : > { %10730 = vst [vmem:[#allocation14_spill] sm:$0xff] %v8354_v40  ;;  %v1000_v32 = vmul.f32 0.5, %v996_v44  ;;  %v937_v10 = vmul.f32 %v933_v27, %v917_v5  ;;  %vm922_vm1 = vcmp.ge.f32.partialorder %v918_v9, 1.0  ;;  %v6613_v62 = vsel %vm856_vm14, 1.0, %v10634_v0 }
 0x16b   : > { %v6623_v37 = vsel %vm922_vm1, 1.0, %v10634_v0  ;;  %v915_v12 = vmul.f32 0.5, %v911_v6  ;;  %v868_v17 = vsub.f32 1.0, %v6613_v62  ;;  %v853_v30 = vadd.f32 %v849_v45, %v777_v25 }
 0x16c   : > { %v1004_v22 = vadd.f32 %v1000_v32, %v936_v42  ;;  %v997_v20 = vsub.f32 %v8278_v1, %v937_v10  ;;  %v934_v43 = vsub.f32 1.0, %v6623_v37  ;;  %v8364_v15 = vsel %vm762_vm15, 1.0, %v10634_v0 }
 0x16d   : > { %v919_v5 = vadd.f32 %v915_v12, %v843_v29  ;;  %v872_v23 = vmul.f32 %v868_v17, %v852_v31  ;;  %v680_v61 = vadd.f32 %v8297_v28, %v8289_v18  ;;  %vm857_vm2 = vcmp.ge.f32.partialorder %v853_v30, 1.0  ;;  %337 = vperm.xlu0 %7805, %v295_v7  }
 0x16e   : > { %v1001_v4 = vmul.f32 0.5, %v997_v20  ;;  %v938_v24 = vmul.f32 %v934_v43, %v918_v9  ;;  %v6614_v44 = vsel %vm857_vm2, 1.0, %v10634_v0  ;;  %v774_v25 = vsub.f32 1.0, %v8364_v15 }
 0x16f   : > { %vm1008_vm4 = vcmp.ge.f32.partialorder %v1004_v22, 1.0  ;;  %vm923_vm5 = vcmp.ge.f32.partialorder %v919_v5, 1.0  ;;  %v940_v1 = vsub.f32 %v8301_v33, %v872_v23  ;;  %v869_v42 = vsub.f32 1.0, %v6614_v44 }
 0x170   : > { %v1005_v27 = vadd.f32 %v1001_v4, %v937_v10  ;;  %v998_v29 = vsub.f32 %v8282_v3, %v938_v24  ;;  %v6624_v31 = vsel %vm923_vm5, 1.0, %v10634_v0  ;;  %v8373_v6 = vpack.c.bf16 %v6614_v44, %v6613_v62  ;;  %v8381_v62 = vpop.permute.xlu1 %382 }
 0x171   : > { %v935_v28 = vsub.f32 1.0, %v6624_v31  ;;  %v8375_v45 = vpack.c.bf16 %v6624_v31, %v6623_v37  ;;  %v944_v9 = vmul.f32 0.5, %v940_v1  ;;  %v873_v32 = vmul.f32 %v869_v42, %v853_v30 }
 0x172   : > { %v6633_v7 = vsel %vm1008_vm4, 1.0, %v10634_v0  ;;  %vm1009_vm6 = vcmp.ge.f32.partialorder %v1005_v27, 1.0  ;;  %v1002_v12 = vmul.f32 0.5, %v998_v29  ;;  %v778_v17 = vmul.f32 %v774_v25, %v754_v39 }
 0x173   : > { %10731 = vst [vmem:[#allocation15_spill] sm:$0xff] %v8375_v45  ;;  %v6634_v33 = vsel %vm1009_vm6, 1.0, %v10634_v0  ;;  %v939_v22 = vmul.f32 %v935_v28, %v919_v5  ;;  %v948_v10 = vadd.f32 %v944_v9, %v872_v23  ;;  %v941_v20 = vsub.f32 %v680_v61, %v873_v32 }
 0x174   : > { %v8379_v3 = vpack.c.bf16 %v6634_v33, %v6633_v7  ;;  %v1006_v43 = vadd.f32 %v1002_v12, %v938_v24  ;;  %v551_v37 = vadd.f32 %v8317_v11, %v8324_v16  ;;  %v555_v39 = vadd.f32 %v8330_v34, %v8381_v62 }
 0x175   : > { %v999_v30 = vsub.f32 %v8295_v21, %v939_v22  ;;  %vm952_vm7 = vcmp.ge.f32.partialorder %v948_v10, 1.0  ;;  %v945_v4 = vmul.f32 0.5, %v941_v20  ;;  %v676_v24 = vadd.f32 %v8287_v13, %v8276_v63 }
 0x176   : > { %10732 = vst [vmem:[#allocation16_spill] sm:$0xff] %v8379_v3  ;;  %v6625_v44 = vsel %vm952_vm7, 1.0, %v10634_v0  ;;  %v846_v5 = vsub.f32 %v551_v37, %v778_v17  ;;  %v755_v42 = vmul.f32 0.5, %v555_v39  ;;  %vm1010_vm8 = vcmp.ge.f32.partialorder %v1006_v43, 1.0 }
 0x177   : > { %v1003_v23 = vmul.f32 0.5, %v999_v30  ;;  %v964_v61 = vsub.f32 1.0, %v6625_v44  ;;  %v949_v25 = vadd.f32 %v945_v4, %v873_v32  ;;  %v682_v21 = vadd.f32 %v8304_v35, %v8289_v18 }
 0x178   : > { %v850_v1 = vmul.f32 0.5, %v846_v5  ;;  %vm763_vm10 = vcmp.ge.f32.partialorder %v755_v42, 1.0  ;;  %v6635_v63 = vsel %vm1010_vm8, 1.0, %v10634_v0  ;;  %v686_v43 = vadd.f32 %v8315_v8, %v8324_v16 }
 0x179   : > { %v1007_v11 = vadd.f32 %v1003_v23, %v939_v22  ;;  %v968_v27 = vmul.f32 %v964_v61, %v948_v10  ;;  %vm953_vm9 = vcmp.ge.f32.partialorder %v949_v25, 1.0  ;;  %v6604_v32 = vsel %vm763_vm10, 1.0, %v10634_v0 }
 0x17a   : > { %v6626_v34 = vsel %vm953_vm9, 1.0, %v10634_v0  ;;  %v854_v29 = vadd.f32 %v850_v1, %v778_v17  ;;  %v775_v33 = vsub.f32 1.0, %v6604_v32  ;;  %v8403_v22 = vpack.c.bf16 %v6604_v32, %v8364_v15  ;;  %v294_v15 = vld [vmem:[%s10624_s2 + $0x8] sm:$0xff] }
 0x17b   : > { %vm1011_vm11 = vcmp.ge.f32.partialorder %v1007_v11, 1.0  ;;  %v1020_v31 = vsub.f32 %v676_v24, %v968_v27  ;;  %v965_v28 = vsub.f32 1.0, %v6626_v34  ;;  %v8394_v9 = vpack.c.bf16 %v6626_v34, %v6625_v44 }
 0x17c   : > { %v6636_v13 = vsel %vm1011_vm11, 1.0, %v10634_v0  ;;  %vm858_vm12 = vcmp.ge.f32.partialorder %v854_v29, 1.0  ;;  %v779_v30 = vmul.f32 %v775_v33, %v755_v42  ;;  %v557_v4 = vadd.f32 %v8334_v36, %v8381_v62  ;;  %1177 = vrot.lane.b32.xlu1 %v8403_v22, %s7949_s9  ;;  %7125 = vmatmul.mubr.msk.bf16.vlgmr.msra.gmra.mrb[24].mxu0 %vm1048_vm3, %v8403_v22  ;;  %v296_v36 = vld [vmem:[%s10624_s2 + $0x18] sm:$0xff] }
 0x17d   : > { %10733 = vst [vmem:[#allocation17_spill] sm:$0xff] %v8394_v9  ;;  %v8399_v7 = vpack.c.bf16 %v6636_v13, %v6635_v63  ;;  %v1024_v12 = vmul.f32 0.5, %v1020_v31  ;;  %v969_v18 = vmul.f32 %v965_v28, %v949_v25  ;;  %v6615_v35 = vsel %vm858_vm12, 1.0, %v10634_v0 }
 0x17e   : > { %v870_v17 = vsub.f32 1.0, %v6615_v35  ;;  %v847_v5 = vsub.f32 %v557_v4, %v779_v30  ;;  %v688_v28 = vadd.f32 %v8321_v14, %v8324_v16  ;;  %v692_v13 = vadd.f32 %v8332_v38, %v8381_v62 }
 0x17f   : > { %10734 = vst [vmem:[#allocation18_spill] sm:$0xff] %v8399_v7  ;;  %v1028_v10 = vadd.f32 %v1024_v12, %v968_v27  ;;  %v1021_v20 = vsub.f32 %v682_v21, %v969_v18  ;;  %v694_v14 = vadd.f32 %v8339_v2, %v8381_v62 }
 0x180   : > { %v874_v37 = vmul.f32 %v870_v17, %v854_v29  ;;  %v851_v61 = vmul.f32 0.5, %v847_v5  ;;  %332 = vperm.xlu1 %7806, %v294_v15  }
 0x181   : > { %v1025_v39 = vmul.f32 0.5, %v1021_v20  ;;  %vm1032_vm13 = vcmp.ge.f32.partialorder %v1028_v10, 1.0 }
 0x182   : > { %v942_v44 = vsub.f32 %v686_v43, %v874_v37  ;;  %v6637_v25 = vsel %vm1032_vm13, 1.0, %v10634_v0  ;;  %v855_v42 = vadd.f32 %v851_v61, %v779_v30 }
 0x183   : > { %v1029_v8 = vadd.f32 %v1025_v39, %v969_v18 }
 0x184   : > { %v946_v23 = vmul.f32 0.5, %v942_v44  ;;  %vm859_vm1 = vcmp.ge.f32.partialorder %v855_v42, 1.0  ;;  %342 = vperm.xlu1 %7806, %v296_v36  }
 0x185   : > { %vm1033_vm14 = vcmp.ge.f32.partialorder %v1029_v8, 1.0  ;;  %v6616_v21 = vsel %vm859_vm1, 1.0, %v10634_v0 }
 0x186   : > { %v6638_v24 = vsel %vm1033_vm14, 1.0, %v10634_v0  ;;  %v950_v1 = vadd.f32 %v946_v23, %v874_v37  ;;  %v871_v29 = vsub.f32 1.0, %v6616_v21  ;;  %v8425_v31 = vpack.c.bf16 %v6616_v21, %v6615_v35 }
 0x187   : > { %v8421_v11 = vpack.c.bf16 %v6638_v24, %v6637_v25 }
 0x188   : > { %vm954_vm15 = vcmp.ge.f32.partialorder %v950_v1, 1.0  ;;  %v875_v32 = vmul.f32 %v871_v29, %v855_v42 }
 0x189   : > { %10735 = vst [vmem:[#allocation19_spill] sm:$0xff] %v8421_v11  ;;  %v6627_v27 = vsel %vm954_vm15, 1.0, %v10634_v0 }
 0x18a   : > { %v966_v34 = vsub.f32 1.0, %v6627_v27  ;;  %v943_v18 = vsub.f32 %v692_v13, %v875_v32 }
 0x18c   : > { %v970_v63 = vmul.f32 %v966_v34, %v950_v1  ;;  %v947_v33 = vmul.f32 0.5, %v943_v18 }
 0x18e   : > { %v1022_v12 = vsub.f32 %v688_v28, %v970_v63  ;;  %v951_v20 = vadd.f32 %v947_v33, %v875_v32 }
 0x190   : > { %v1026_v17 = vmul.f32 0.5, %v1022_v12  ;;  %vm955_vm2 = vcmp.ge.f32.partialorder %v951_v20, 1.0 }
 0x191   : > { %v6628_v43 = vsel %vm955_vm2, 1.0, %v10634_v0 }
 0x192   : > { %v1030_v10 = vadd.f32 %v1026_v17, %v970_v63  ;;  %v967_v37 = vsub.f32 1.0, %v6628_v43  ;;  %v8432_v35 = vpack.c.bf16 %v6628_v43, %v6627_v27 }
 0x194   : > { %10736 = vst [vmem:[#allocation20_spill] sm:$0xff] %v8432_v35  ;;  %v971_v16 = vmul.f32 %v967_v37, %v951_v20  ;;  %vm1034_vm4 = vcmp.ge.f32.partialorder %v1030_v10, 1.0 }
 0x195   : > { %v6639_v39 = vsel %vm1034_vm4, 1.0, %v10634_v0 }
 0x196   : > { %v1023_v30 = vsub.f32 %v694_v14, %v971_v16 }
 0x198   : > { %v1027_v4 = vmul.f32 0.5, %v1023_v30 }
 0x19a   : > { %v1031_v38 = vadd.f32 %v1027_v4, %v971_v16 }
 0x19c   : > { %vm1035_vm5 = vcmp.ge.f32.partialorder %v1031_v38, 1.0 }
 0x19d   : > { %v6640_v15 = vsel %vm1035_vm5, 1.0, %v10634_v0 }
 0x19e   : > { %v8438_v44 = vpack.c.bf16 %v6640_v15, %v6639_v39 }
 0x1a0   : > { %10737 = vst [vmem:[#allocation21_spill] sm:$0xff] %v8438_v44 }
 0x1c4   : > { %v1182_v5 = vpop.permute.xlu0 %1181 }
 0x1c5   : > { %7670 = vmatprep.subr.msk.bf16.mxu0 %vm1048_vm3, %v1182_v5  ;;  %v1192_v8 = vsel %vm1048_vm3, %v1182_v5, 0 }
 0x1c6   : > { %7137 = vmatpush3.bf16.xpose.msra.mxu0 %v1192_v8 }
 0x1cd   : > { %v1184_v23 = vpop.permute.xlu1 %1183 }
 0x1ce   : > { %7671 = vmatprep.subr.msk.bf16.mxu0 %vm1048_vm3, %v1184_v23  ;;  %v1195_v2 = vsel %vm1048_vm3, %v1184_v23, 0 }
 0x1cf   : > { %7139 = vmatpush3.bf16.xpose.msra.mxu0 %v1195_v2 }
 0x1d7   : > { %v1176_v62 = vpop.permute.xlu0 %1175 }
 0x1d8   : > { %7140 = vmatprep.mubr.msk.bf16.mxu0 %vm1048_vm3, %v1176_v62 }
 0x1e8   : > { %v328_v61 = vpop.permute.xlu0 %327 }
 0x1e9   : > { %v489_v36 = vadd.f32 %v8227_v46, %v328_v61  ;;  %v491_v34 = vadd.f32 %v8229_v47, %v328_v61  ;;  %v626_v43 = vadd.f32 %v8231_v48, %v328_v61 }
 0x1eb   : > { %v696_v25 = vmul.f32 0.5, %v489_v36  ;;  %v628_v36 = vadd.f32 %v8233_v49, %v328_v61 }
 0x1ec   : > { %v8446_v24 = vpop.permute.xlu0 %337 }
 0x1ed   : > { %vm704_vm6 = vcmp.ge.f32.partialorder %v696_v25, 1.0  ;;  %v501_v42 = vadd.f32 %v8243_v54, %v8446_v24  ;;  %v503_v54 = vadd.f32 %v8245_v55, %v8446_v24  ;;  %v638_v38 = vadd.f32 %v8247_v56, %v8446_v24 }
 0x1ee   : > { %v6593_v1 = vsel %vm704_vm6, 1.0, %v10634_v0  ;;  %v1178_v28 = vpop.permute.xlu1 %1177 }
 0x1ef   : > { %v716_v27 = vsub.f32 1.0, %v6593_v1  ;;  %v8452_v21 = vmul.f32 0.5, %v501_v42  ;;  %7141 = vmatmul.mubr.msk.bf16.vlgmr.msra.gmra.mrb[28].mxu0 %vm1048_vm3, %v1178_v28 }
 0x1f1   : > { %v720_v29 = vmul.f32 %v716_v27, %v696_v25  ;;  %vm706_vm7 = vcmp.ge.f32.partialorder %v8452_v21, 1.0 }
 0x1f2   : > { %v6595_v63 = vsel %vm706_vm7, 1.0, %v10634_v0 }
 0x1f3   : > { %v780_v46 = vsub.f32 %v491_v34, %v720_v29  ;;  %v718_v13 = vsub.f32 1.0, %v6595_v63 }
 0x1f5   : > { %v784_v32 = vmul.f32 0.5, %v780_v46  ;;  %v722_v12 = vmul.f32 %v718_v13, %v8452_v21  ;;  %v10636_v46 = vmov 1.0|1.0  }
 0x1f7   : > { %v8463_v18 = vadd.f32 %v784_v32, %v720_v29  ;;  %v782_v47 = vsub.f32 %v503_v54, %v722_v12  ;;  %v640_v54 = vadd.f32 %v8249_v57, %v8446_v24 }
 0x1f9   : > { %vm792_vm8 = vcmp.ge.f32.partialorder %v8463_v18, 1.0  ;;  %v786_v33 = vmul.f32 0.5, %v782_v47 }
 0x1fa   : > { %v8469_v17 = vsel %vm792_vm8, 1.0, %v10634_v0 }
 0x1fb   : > { %v804_v10 = vsub.f32 1.0, %v8469_v17  ;;  %v8472_v20 = vadd.f32 %v786_v33, %v722_v12 }
 0x1fd   : > { %v808_v55 = vmul.f32 %v804_v10, %v8463_v18  ;;  %vm794_vm9 = vcmp.ge.f32.partialorder %v8472_v20, 1.0 }
 0x1fe   : > { %v8480_v14 = vsel %vm794_vm9, 1.0, %v10634_v0 }
 0x1ff   : > { %v876_v37 = vsub.f32 %v626_v43, %v808_v55  ;;  %v806_v16 = vsub.f32 1.0, %v8480_v14  ;;  %v8486_v39 = vpop.permute.xlu1 %332 }
 0x200   : > { %v495_v15 = vadd.f32 %v8235_v50, %v8486_v39  ;;  %v497_v61 = vadd.f32 %v8237_v51, %v8486_v39 }
 0x201   : > { %v880_v30 = vmul.f32 0.5, %v876_v37  ;;  %v810_v4 = vmul.f32 %v806_v16, %v8472_v20 }
 0x202   : > { %v697_v8 = vmul.f32 0.5, %v495_v15 }
 0x203   : > { %v8488_v48 = vadd.f32 %v880_v30, %v808_v55  ;;  %v878_v5 = vsub.f32 %v638_v38, %v810_v4  ;;  %v8498_v2 = vpop.permute.xlu1 %342 }
 0x204   : > { %vm705_vm11 = vcmp.ge.f32.partialorder %v697_v8, 1.0  ;;  %v507_v27 = vadd.f32 %v8251_v58, %v8498_v2  ;;  %v509_v57 = vadd.f32 %v8253_v59, %v8498_v2 }
 0x205   : > { %vm888_vm10 = vcmp.ge.f32.partialorder %v8488_v48, 1.0  ;;  %v882_v62 = vmul.f32 0.5, %v878_v5  ;;  %v6594_v42 = vsel %vm705_vm11, 1.0, %v10634_v0  ;;  %vm6643_vm12 = vmpackc.low %vm705_vm11, %vm704_vm6 }
 0x206   : > { %v8496_v23 = vsel %vm888_vm10, 1.0, %v10634_v0  ;;  %v717_v29 = vsub.f32 1.0, %v6594_v42  ;;  %v8509_v28 = vpack.c.bf16 %v6594_v42, %v6593_v1  ;;  %7128 = vmatprep.subr.msk.bf16.mxu1 %vm6643_vm12, %v10636_v46  ;;  %v699_v49 = vmul.f32 0.5, %v507_v27 }
 0x207   : > { %v900_v56 = vsub.f32 1.0, %v8496_v23  ;;  %v8507_v34 = vadd.f32 %v882_v62, %v810_v4  ;;  %7129 = vmatpush3.bf16.msk.msra.mxu1 %vm6643_vm12, %v10636_v46  ;;  %v644_v27 = vadd.f32 %v8255_v60, %v8498_v2  ;;  %v10742_v60 = vmov 0 }
 0x208   : > { %v721_v25 = vmul.f32 %v717_v29, %v697_v8  ;;  %1254 = vrot.lane.b32.xlu0 %v8509_v28, %s7949_s9  ;;  %vm707_vm14 = vcmp.ge.f32.partialorder %v699_v49, 1.0 }
 0x209   : > { %v904_v50 = vmul.f32 %v900_v56, %v8488_v48  ;;  %vm890_vm13 = vcmp.ge.f32.partialorder %v8507_v34, 1.0  ;;  %v6596_v47 = vsel %vm707_vm14, 1.0, %v10634_v0  ;;  %vm6645_vm15 = vmpackc.low %vm707_vm14, %vm706_vm7  ;;  %v632_v56 = vadd.f32 %v8239_v52, %v8486_v39 }
 0x20a   : > { %v8521_v58 = vsel %vm890_vm13, 1.0, %v10634_v0  ;;  %v781_v12 = vsub.f32 %v497_v61, %v721_v25  ;;  %v719_v33 = vsub.f32 1.0, %v6596_v47  ;;  %v8532_v43 = vpack.c.bf16 %v6596_v47, %v6595_v63  ;;  %7130 = vmatprep.subr.msk.bf16.mxu1 %vm6645_vm15, %v10636_v46 }
 0x20b   : > { %v972_v13 = vsub.f32 %v628_v36, %v904_v50  ;;  %v902_v32 = vsub.f32 1.0, %v8521_v58  ;;  %7131 = vmatpush3.bf16.msk.msra.mxu1 %vm6645_vm15, %v10636_v46 }
 0x20c   : > { %v785_v55 = vmul.f32 0.5, %v781_v12  ;;  %1319 = vrot.lane.b32.xlu0 %v8261_v26, %s7951_s20  ;;  %v723_v24 = vmul.f32 %v719_v33, %v699_v49  ;;  %1256 = vrot.lane.b32.xlu1 %v8532_v43, %s7949_s9  ;;  %v10748_v33 = vld [vmem:[#allocation11_spill] sm:$0xff] }
 0x20d   : > { %v976_v1 = vmul.f32 0.5, %v972_v13  ;;  %v906_v10 = vmul.f32 %v902_v32, %v8507_v34  ;;  %v634_v32 = vadd.f32 %v8241_v53, %v8486_v39 }
 0x20e   : > { %v789_v37 = vadd.f32 %v785_v55, %v721_v25  ;;  %v783_v63 = vsub.f32 %v509_v57, %v723_v24 }
 0x20f   : > { %v8529_v51 = vadd.f32 %v976_v1, %v904_v50  ;;  %v974_v21 = vsub.f32 %v640_v54, %v906_v10 }
 0x210   : > { %vm793_vm1 = vcmp.ge.f32.partialorder %v789_v37, 1.0  ;;  %1315 = vrot.lane.b32.xlu0 %v8337_v41, %s7951_s20  ;;  %v787_v4 = vmul.f32 0.5, %v783_v63  ;;  %1321 = vrot.lane.b32.xlu1 %v8291_v19, %s7951_s20 }
 0x211   : > { %v978_v16 = vmul.f32 0.5, %v974_v21  ;;  %v6606_v30 = vsel %vm793_vm1, 1.0, %v10634_v0  ;;  %vm8551_vm2 = vmpackc.low %vm793_vm1, %vm792_vm8  ;;  %vm2251_vm1 = vcmask 392192  }
 0x212   : > { %v805_v15 = vsub.f32 1.0, %v6606_v30  ;;  %v8556_v5 = vpack.c.bf16 %v6606_v30, %v8469_v17  ;;  %v791_v8 = vadd.f32 %v787_v4, %v723_v24  ;;  %v10752_v30 = vmov 0 }
 0x213   : > { %v8545_v38 = vadd.f32 %v978_v16, %v906_v10  ;;  %v646_v10 = vadd.f32 %v10748_v33, %v8498_v2  ;;  %v10749_v2 = vmov 0 }
 0x214   : > { %v809_v62 = vmul.f32 %v805_v15, %v789_v37  ;;  %1390 = vrot.lane.b32.xlu0 %v8509_v28, %s7951_s20  ;;  %vm795_vm4 = vcmp.ge.f32.partialorder %v791_v8, 1.0  ;;  %1317 = vrot.lane.b32.xlu1 %v8403_v22, %s7951_s20 }
 0x215   : > { %v6608_v36 = vsel %vm795_vm4, 1.0, %v10634_v0  ;;  %vm8567_vm5 = vmpackc.low %vm795_vm4, %vm794_vm9  ;;  %vm2261_vm4 = vcmask 654336  }
 0x216   : > { %v877_v18 = vsub.f32 %v632_v56, %v809_v62  ;;  %v807_v42 = vsub.f32 1.0, %v6608_v36  ;;  %v8572_v52 = vpack.c.bf16 %v6608_v36, %v8480_v14  ;;  %v8680_v56 = vld [vmem:[#allocation5] sm:$0xff] }
 0x218   : > { %v881_v50 = vmul.f32 0.5, %v877_v18  ;;  %1455 = vrot.lane.b32.xlu0 %v8261_v26, %s7952_s26  ;;  %v811_v29 = vmul.f32 %v807_v42, %v791_v8  ;;  %1392 = vrot.lane.b32.xlu1 %v8532_v43, %s7951_s20  ;;  %v8676_v8 = vld [vmem:[#allocation5 + $0x18] sm:$0xff] }
 0x21a   : > { %v885_v20 = vadd.f32 %v881_v50, %v809_v62  ;;  %v879_v13 = vsub.f32 %v644_v27, %v811_v29  ;;  %v8682_v62 = vld [vmem:[#allocation5 + $0x8] sm:$0xff] }
 0x21c   : > { %vm889_vm6 = vcmp.ge.f32.partialorder %v885_v20, 1.0  ;;  %1451 = vrot.lane.b32.xlu0 %v8337_v41, %s7952_s26  ;;  %v883_v49 = vmul.f32 0.5, %v879_v13  ;;  %1457 = vrot.lane.b32.xlu1 %v8291_v19, %s7952_s26 }
 0x21d   : > { %v6618_v14 = vsel %vm889_vm6, 1.0, %v10634_v0  ;;  %vm8587_vm7 = vmpackc.low %vm889_vm6, %vm888_vm10  ;;  %vm984_vm10 = vcmp.ge.f32.partialorder %v8529_v51, 1.0  ;;  %vm2271_vm6 = vcmask 916480  }
 0x21e   : > { %v10743_v60 = vsel %vm8587_vm7, 4294967295, %v10742_v60  ;;  %v901_v61 = vsub.f32 1.0, %v6618_v14  ;;  %v8592_v25 = vpack.c.bf16 %v6618_v14, %v8496_v23  ;;  %v887_v1 = vadd.f32 %v883_v49, %v811_v29 }
 0x21f   : > { %10744 = vst [vmem:[#allocation22_spill] sm:$0xff] %v10743_v60  ;;  %v10745_v23 = vmov 0 }
 0x220   : > { %v905_v54 = vmul.f32 %v901_v61, %v885_v20  ;;  %1526 = vrot.lane.b32.xlu0 %v8509_v28, %s7952_s26  ;;  %vm891_vm8 = vcmp.ge.f32.partialorder %v887_v1, 1.0  ;;  %1453 = vrot.lane.b32.xlu1 %v8403_v22, %s7952_s26 }
 0x221   : > { %v6620_v12 = vsel %vm891_vm8, 1.0, %v10634_v0  ;;  %vm8603_vm9 = vmpackc.low %vm891_vm8, %vm890_vm13  ;;  %vm986_vm13 = vcmp.ge.f32.partialorder %v8545_v38, 1.0  ;;  %v8674_v38 = vld [vmem:[#allocation5 + $0x10] sm:$0xff] }
 0x222   : > { %v973_v48 = vsub.f32 %v634_v32, %v905_v54  ;;  %v10746_v23 = vsel %vm8603_vm9, 4294967295, %v10745_v23  ;;  %v903_v47 = vsub.f32 1.0, %v6620_v12  ;;  %v8608_v53 = vpack.c.bf16 %v6620_v12, %v8521_v58 }
 0x223   : > { %10747 = vst [vmem:[#allocation23_spill] sm:$0xff] %v10746_v23  ;;  %v6629_v58 = vsel %vm984_vm10, 1.0, %v10634_v0  ;;  %v6631_v63 = vsel %vm986_vm13, 1.0, %v10634_v0 }
 0x224   : > { %v977_v39 = vmul.f32 0.5, %v973_v48  ;;  %1591 = vrot.lane.b32.xlu0 %v8261_v26, %s7953_s28  ;;  %v907_v55 = vmul.f32 %v903_v47, %v887_v1  ;;  %1528 = vrot.lane.b32.xlu1 %v8532_v43, %s7952_s26 }
 0x226   : > { %v981_v34 = vadd.f32 %v977_v39, %v905_v54  ;;  %v975_v57 = vsub.f32 %v646_v10, %v907_v55 }
 0x228   : > { %vm985_vm11 = vcmp.ge.f32.partialorder %v981_v34, 1.0  ;;  %1587 = vrot.lane.b32.xlu0 %v8337_v41, %s7953_s28  ;;  %v979_v21 = vmul.f32 0.5, %v975_v57  ;;  %1593 = vrot.lane.b32.xlu1 %v8291_v19, %s7953_s28 }
 0x229   : > { %v6630_v24 = vsel %vm985_vm11, 1.0, %v10634_v0  ;;  %vm8623_vm12 = vmpackc.low %vm985_vm11, %vm984_vm10 }
 0x22a   : > { %v10750_v2 = vsel %vm8623_vm12, 4294967295, %v10749_v2  ;;  %v8627_v37 = vpack.c.bf16 %v6630_v24, %v6629_v58  ;;  %v983_v51 = vadd.f32 %v979_v21, %v907_v55 }
 0x22b   : > { %10751 = vst [vmem:[#allocation11_spill] sm:$0xff] %v10750_v2 }
 0x22c   : > { %1662 = vrot.lane.b32.xlu0 %v8509_v28, %s7953_s28  ;;  %vm987_vm14 = vcmp.ge.f32.partialorder %v983_v51, 1.0  ;;  %1589 = vrot.lane.b32.xlu1 %v8403_v22, %s7953_s28 }
 0x22d   : > { %v6632_v16 = vsel %vm987_vm14, 1.0, %v10634_v0  ;;  %vm8636_vm15 = vmpackc.low %vm987_vm14, %vm986_vm13 }
 0x22e   : > { %v10753_v30 = vsel %vm8636_vm15, 4294967295, %v10752_v30  ;;  %v8640_v4 = vpack.c.bf16 %v6632_v16, %v6631_v63 }
 0x22f   : > { %10754 = vst [vmem:[#allocation24_spill] sm:$0xff] %v10753_v30 }
 0x230   : > { %1727 = vrot.lane.b32.xlu0 %v8261_v26, %s7954_s11  ;;  %1664 = vrot.lane.b32.xlu1 %v8532_v43, %s7953_s28 }
 0x234   : > { %1723 = vrot.lane.b32.xlu0 %v8337_v41, %s7954_s11  ;;  %1729 = vrot.lane.b32.xlu1 %v8291_v19, %s7954_s11 }
 0x238   : > { %1798 = vrot.lane.b32.xlu0 %v8509_v28, %s7954_s11  ;;  %1725 = vrot.lane.b32.xlu1 %v8403_v22, %s7954_s11 }
 0x23c   : > { %1863 = vrot.lane.b32.xlu0 %v8261_v26, %s7955_s13  ;;  %1800 = vrot.lane.b32.xlu1 %v8532_v43, %s7954_s11 }
 0x240   : > { %1859 = vrot.lane.b32.xlu0 %v8337_v41, %s7955_s13  ;;  %1865 = vrot.lane.b32.xlu1 %v8291_v19, %s7955_s13 }
 0x244   : > { %1934 = vrot.lane.b32.xlu0 %v8509_v28, %s7955_s13  ;;  %1861 = vrot.lane.b32.xlu1 %v8403_v22, %s7955_s13 }
 0x248   : > { %1999 = vrot.lane.b32.xlu0 %v8261_v26, %s7956_s15  ;;  %1936 = vrot.lane.b32.xlu1 %v8532_v43, %s7955_s13 }
 0x24c   : > { %1995 = vrot.lane.b32.xlu0 %v8337_v41, %s7956_s15  ;;  %2001 = vrot.lane.b32.xlu1 %v8291_v19, %s7956_s15 }
 0x24f   : > { %v7126_v15 = vpop.f32.mrb[24].mxu0 }
 0x250   : > { %2070 = vrot.lane.b32.xlu0 %v8509_v28, %s7956_s15  ;;  %v1095_v26 = vpop.f32.mrb[25].mxu0  ;;  %1997 = vrot.lane.b32.xlu1 %v8403_v22, %s7956_s15  ;;  %v1112_v18 = vmul.f32 %v7126_v15, %v8674_v38  ;;  %v10755_v28 = vld [vmem:[#allocation12_spill] sm:$0xff]  ;;  %v10756_v22 = vld [vmem:[#allocation13_spill] sm:$0xff] }
 0x251   : > { %v7127_v41 = vpop.f32.mrb[26].mxu0  ;;  %v1110_v42 = vmul.f32 %v1095_v26, %v8680_v56 }
 0x252   : > { %v1113_v19 = vmul.f32 %v7127_v41, %v8676_v8  ;;  %v1098_v36 = vpop.f32.mrb[27].mxu0 }
 0x253   : > { %v1111_v50 = vmul.f32 %v1098_v36, %v8682_v62 }
 0x254   : > { %v1115_v27 = vpack.c.bf16 %v1113_v19, %v1112_v18  ;;  %2412 = vrot.lane.b32.xlu0 %v10755_v28, %s7949_s9  ;;  %2072 = vrot.lane.b32.xlu1 %v8532_v43, %s7956_s15 }
 0x255   : > { %v1114_v29 = vpack.c.bf16 %v1111_v50, %v1110_v42 }
 0x257   : > { %7132 = vmatprep.mubr.msk.bf16.mxu1 %vm385_vm0, %v1114_v29 }
 0x258   : > { %7133 = vmatmul.mubr.msk.bf16.vlgmr.msra.gmra.mrb[24].mxu1 %vm385_vm0, %v1115_v27  ;;  %2406 = vrot.lane.b32.xlu0 %v8373_v6, %s7949_s9 }
 0x259   : > { %2414 = vrot.lane.b32.xlu1 %v10756_v22, %s7949_s9 }
 0x25c   : > { %2485 = vrot.lane.b32.xlu0 %v8556_v5, %s7949_s9 }
 0x25d   : > { %2408 = vrot.lane.b32.xlu1 %v8425_v31, %s7949_s9 }
 0x260   : > { %2550 = vrot.lane.b32.xlu0 %v10755_v28, %s7951_s20 }
 0x261   : > { %2487 = vrot.lane.b32.xlu1 %v8572_v52, %s7949_s9 }
 0x264   : > { %2546 = vrot.lane.b32.xlu0 %v8373_v6, %s7951_s20 }
 0x265   : > { %2552 = vrot.lane.b32.xlu1 %v10756_v22, %s7951_s20 }
 0x268   : > { %2621 = vrot.lane.b32.xlu0 %v8556_v5, %s7951_s20 }
 0x269   : > { %2548 = vrot.lane.b32.xlu1 %v8425_v31, %s7951_s20 }
 0x26c   : > { %2686 = vrot.lane.b32.xlu0 %v10755_v28, %s7952_s26 }
 0x26d   : > { %2623 = vrot.lane.b32.xlu1 %v8572_v52, %s7951_s20 }
 0x270   : > { %2682 = vrot.lane.b32.xlu0 %v8373_v6, %s7952_s26 }
 0x271   : > { %2688 = vrot.lane.b32.xlu1 %v10756_v22, %s7952_s26 }
 0x274   : > { %2757 = vrot.lane.b32.xlu0 %v8556_v5, %s7952_s26 }
 0x275   : > { %2684 = vrot.lane.b32.xlu1 %v8425_v31, %s7952_s26 }
 0x278   : > { %2822 = vrot.lane.b32.xlu0 %v10755_v28, %s7953_s28 }
 0x279   : > { %2759 = vrot.lane.b32.xlu1 %v8572_v52, %s7952_s26 }
 0x27a   : > { %v1255_v43 = vpop.permute.xlu0 %1254 }
 0x27b   : > { %7144 = vmatprep.subr.bf16.mxu1 %v1255_v43 }
 0x27c   : > { %7145 = vmatpush3.bf16.msra.mxu1 %v1255_v43  ;;  %2818 = vrot.lane.b32.xlu0 %v8373_v6, %s7953_s28 }
 0x27d   : > { %2824 = vrot.lane.b32.xlu1 %v10756_v22, %s7953_s28 }
 0x27e   : > { %v8736_v20 = vpop.permute.xlu0 %1319  ;;  %v1257_v13 = vpop.permute.xlu1 %1256 }
 0x27f   : > { %7146 = vmatprep.subr.bf16.mxu1 %v1257_v13  ;;  %v1330_v36 = vsel %vm1048_vm3, %v8736_v20, 0 }
 0x280   : > { %2893 = vrot.lane.b32.xlu0 %v8556_v5, %s7953_s28  ;;  %7147 = vmatpush3.bf16.msra.mxu1 %v1257_v13 }
 0x281   : > { %2820 = vrot.lane.b32.xlu1 %v8425_v31, %s7953_s28  ;;  %7672 = vmatprep.subr.msk.bf16.mxu1 %vm1048_vm3, %v8736_v20 }
 0x282   : > { %v8744_v14 = vpop.permute.xlu0 %1315  ;;  %v8746_v49 = vpop.permute.xlu1 %1321 }
 0x283   : > { %v1333_v29 = vsel %vm1048_vm3, %v8746_v49, 0 }
 0x284   : > { %2958 = vrot.lane.b32.xlu0 %v10755_v28, %s7954_s11 }
 0x285   : > { %2895 = vrot.lane.b32.xlu1 %v8572_v52, %s7953_s28 }
 0x286   : > { %v1391_v61 = vpop.permute.xlu0 %1390  ;;  %v8752_v1 = vpop.permute.xlu1 %1317 }
 0x287   : > { %7160 = vmatprep.subr.bf16.mxu0 %v1391_v61 }
 0x288   : > { %7161 = vmatpush3.bf16.msra.mxu0 %v1391_v61  ;;  %2954 = vrot.lane.b32.xlu0 %v8373_v6, %s7954_s11 }
 0x289   : > { %2960 = vrot.lane.b32.xlu1 %v10756_v22, %s7954_s11 }
 0x28a   : > { %v1393_v32 = vpop.permute.xlu1 %1392  ;;  %v8760_v54 = vpop.permute.xlu0 %1455 }
 0x28b   : > { %7162 = vmatprep.subr.bf16.mxu0 %v1393_v32 }
 0x28c   : > { %3029 = vrot.lane.b32.xlu0 %v8556_v5, %s7954_s11  ;;  %7163 = vmatpush3.bf16.msra.mxu0 %v1393_v32 }
 0x28d   : > { %2956 = vrot.lane.b32.xlu1 %v8425_v31, %s7954_s11  ;;  %7674 = vmatprep.subr.msk.bf16.mxu0 %vm1048_vm3, %v8760_v54 }
 0x28e   : > { %v8792_v48 = vpop.permute.xlu1 %1457  ;;  %v8796_v12 = vpop.permute.xlu0 %1451 }
 0x290   : > { %3094 = vrot.lane.b32.xlu0 %v10755_v28, %s7955_s13 }
 0x291   : > { %3031 = vrot.lane.b32.xlu1 %v8572_v52, %s7954_s11 }
 0x292   : > { %v1527_v47 = vpop.permute.xlu0 %1526 }
 0x294   : > { %3090 = vrot.lane.b32.xlu0 %v8373_v6, %s7955_s13 }
 0x295   : > { %3096 = vrot.lane.b32.xlu1 %v10756_v22, %s7955_s13 }
 0x296   : > { %v8812_v39 = vpop.permute.xlu0 %1591 }
 0x298   : > { %3165 = vrot.lane.b32.xlu0 %v8556_v5, %s7955_s13 }
 0x299   : > { %3092 = vrot.lane.b32.xlu1 %v8425_v31, %s7955_s13 }
 0x29a   : > { %v8824_v10 = vpop.permute.xlu0 %1587 }
 0x29c   : > { %3230 = vrot.lane.b32.xlu0 %v10755_v28, %s7956_s15 }
 0x29d   : > { %3167 = vrot.lane.b32.xlu1 %v8572_v52, %s7955_s13 }
 0x29e   : > { %v8832_v58 = vpop.permute.xlu0 %1662 }
 0x2a0   : > { %3226 = vrot.lane.b32.xlu0 %v8373_v6, %s7956_s15 }
 0x2a1   : > { %3232 = vrot.lane.b32.xlu1 %v10756_v22, %s7956_s15 }
 0x2a2   : > { %v8848_v19 = vpop.permute.xlu0 %1727 }
 0x2a4   : > { %3301 = vrot.lane.b32.xlu0 %v8556_v5, %s7956_s15  ;;  %v8802_v5 = vpop.permute.xlu1 %1453 }
 0x2a5   : > { %3228 = vrot.lane.b32.xlu1 %v8425_v31, %s7956_s15 }
 0x2a6   : > { %v8864_v50 = vpop.permute.xlu0 %1723 }
 0x2a8   : > { %3638 = vrot.lane.b32.xlu0 %v8354_v40, %s7949_s9 }
 0x2a9   : > { %3303 = vrot.lane.b32.xlu1 %v8572_v52, %s7956_s15  ;;  %v1529_v52 = vpop.permute.xlu1 %1528 }
 0x2aa   : > { %v8876_v43 = vpop.permute.xlu0 %1798 }
 0x2ac   : > { %3632 = vrot.lane.b32.xlu0 %v8394_v9, %s7949_s9 }
 0x2ad   : > { %3640 = vrot.lane.b32.xlu1 %v8375_v45, %s7949_s9  ;;  %v8818_v33 = vpop.permute.xlu1 %1593 }
 0x2ae   : > { %v8888_v13 = vpop.permute.xlu0 %1863 }
 0x2b0   : > { %3711 = vrot.lane.b32.xlu0 %v8592_v25, %s7949_s9 }
 0x2b1   : > { %3634 = vrot.lane.b32.xlu1 %v8432_v35, %s7949_s9  ;;  %v8828_v55 = vpop.permute.xlu1 %1589 }
 0x2b4   : > { %3776 = vrot.lane.b32.xlu0 %v8354_v40, %s7951_s20 }
 0x2b5   : > { %3713 = vrot.lane.b32.xlu1 %v8608_v53, %s7949_s9  ;;  %v8842_v26 = vpop.permute.xlu1 %1664 }
 0x2b8   : > { %3772 = vrot.lane.b32.xlu0 %v8394_v9, %s7951_s20 }
 0x2b9   : > { %3778 = vrot.lane.b32.xlu1 %v8375_v45, %s7951_s20  ;;  %v8856_v42 = vpop.permute.xlu1 %1729 }
 0x2bc   : > { %3847 = vrot.lane.b32.xlu0 %v8592_v25, %s7951_s20 }
 0x2bd   : > { %3774 = vrot.lane.b32.xlu1 %v8432_v35, %s7951_s20  ;;  %v8870_v27 = vpop.permute.xlu1 %1725 }
 0x2c0   : > { %3912 = vrot.lane.b32.xlu0 %v8354_v40, %s7952_s26 }
 0x2c1   : > { %3849 = vrot.lane.b32.xlu1 %v8608_v53, %s7951_s20  ;;  %v8880_v20 = vpop.permute.xlu1 %1800 }
 0x2c2   : > { %v7142_v34 = vpop.f32.mrb[28].mxu0 }
 0x2c3   : > { %v1231_v57 = vpop.f32.mrb[29].mxu0  ;;  %v1248_v21 = vmul.f32 %v7142_v34, %v8674_v38 }
 0x2c4   : > { %v7143_v24 = vpop.f32.mrb[30].mxu0  ;;  %3908 = vrot.lane.b32.xlu0 %v8394_v9, %s7952_s26  ;;  %v1246_v16 = vmul.f32 %v1231_v57, %v8680_v56 }
 0x2c5   : > { %3914 = vrot.lane.b32.xlu1 %v8375_v45, %s7952_s26  ;;  %v1249_v51 = vmul.f32 %v7143_v24, %v8676_v8  ;;  %v1234_v63 = vpop.f32.mrb[31].mxu0 }
 0x2c6   : > { %v1247_v15 = vmul.f32 %v1234_v63, %v8682_v62 }
 0x2c7   : > { %v1251_v41 = vpack.c.bf16 %v1249_v51, %v1248_v21 }
 0x2c8   : > { %v1250_v18 = vpack.c.bf16 %v1247_v15, %v1246_v16  ;;  %3983 = vrot.lane.b32.xlu0 %v8592_v25, %s7952_s26 }
 0x2c9   : > { %3910 = vrot.lane.b32.xlu1 %v8432_v35, %s7952_s26 }
 0x2ca   : > { %7148 = vmatprep.mubr.msk.bf16.mxu1 %vm385_vm0, %v1250_v18 }
 0x2cb   : > { %7149 = vmatmul.mubr.msk.bf16.vlgmr.msra.gmra.mrb[28].mxu1 %vm385_vm0, %v1251_v41 }
 0x2cc   : > { %7153 = vmatpush3.bf16.xpose.msra.mxu1 %v1330_v36  ;;  %7156 = vmatprep.mubr.msk.bf16.mxu1 %vm1048_vm3, %v8744_v14  ;;  %v8894_v14 = vpop.permute.xlu1 %1865 }
 0x2cd   : > { %3985 = vrot.lane.b32.xlu1 %v8608_v53, %s7952_s26  ;;  %7673 = vmatprep.subr.msk.bf16.mxu1 %vm1048_vm3, %v8746_v49  ;;  %v8900_v49 = vpop.permute.xlu0 %1859 }
 0x2ce   : > { %4048 = vrot.lane.b32.xlu0 %v8354_v40, %s7953_s28 }
 0x2d0   : > { %v8904_v61 = vpop.permute.xlu1 %1861 }
 0x2d1   : > { %4050 = vrot.lane.b32.xlu1 %v8375_v45, %s7953_s28 }
 0x2d2   : > { %4044 = vrot.lane.b32.xlu0 %v8394_v9, %s7953_s28 }
 0x2d4   : > { %7155 = vmatpush3.bf16.xpose.msra.mxu1 %v1333_v29  ;;  %v8916_v32 = vpop.permute.xlu1 %1936 }
 0x2d5   : > { %4046 = vrot.lane.b32.xlu1 %v8432_v35, %s7953_s28  ;;  %7176 = vmatprep.subr.bf16.mxu1 %v1527_v47 }
 0x2d6   : > { %4119 = vrot.lane.b32.xlu0 %v8592_v25, %s7953_s28 }
 0x2d9   : > { %4121 = vrot.lane.b32.xlu1 %v8608_v53, %s7953_s28 }
 0x2da   : > { %4184 = vrot.lane.b32.xlu0 %v8354_v40, %s7954_s11 }
 0x2db   : > { %7157 = vmatmul.mubr.msk.bf16.vlgmr.msra.gmra.mrb[32].mxu1 %vm1048_vm3, %v8752_v1  ;;  %v8910_v1 = vpop.permute.xlu0 %1934 }
 0x2dc   : > { %7177 = vmatpush3.bf16.msra.mxu1 %v1527_v47 }
 0x2dd   : > { %4186 = vrot.lane.b32.xlu1 %v8375_v45, %s7954_s11  ;;  %7178 = vmatprep.subr.bf16.mxu1 %v1529_v52 }
 0x2de   : > { %4180 = vrot.lane.b32.xlu0 %v8394_v9, %s7954_s11 }
 0x2df   : > { %v8920_v47 = vpop.permute.xlu0 %1999 }
 0x2e0   : > { %7179 = vmatpush3.bf16.msra.mxu1 %v1529_v52  ;;  %v8924_v52 = vpop.permute.xlu1 %2001 }
 0x2e1   : > { %4182 = vrot.lane.b32.xlu1 %v8432_v35, %s7954_s11  ;;  %7676 = vmatprep.subr.msk.bf16.mxu1 %vm1048_vm3, %v8812_v39 }
 0x2e2   : > { %4255 = vrot.lane.b32.xlu0 %v8592_v25, %s7954_s11 }
 0x2e3   : > { %v8930_v34 = vpop.permute.xlu0 %1995 }
 0x2e4   : > { %v8936_v57 = vpop.permute.xlu1 %1997 }
 0x2e5   : > { %4257 = vrot.lane.b32.xlu1 %v8608_v53, %s7954_s11 }
 0x2e6   : > { %4320 = vrot.lane.b32.xlu0 %v8354_v40, %s7955_s13 }
 0x2e7   : > { %v8940_v24 = vpop.permute.xlu0 %2070 }
 0x2e8   : > { %v8944_v21 = vpop.permute.xlu1 %2072 }
 0x2e9   : > { %4322 = vrot.lane.b32.xlu1 %v8375_v45, %s7955_s13 }
 0x2ea   : > { %4316 = vrot.lane.b32.xlu0 %v8394_v9, %s7955_s13 }
 0x2eb   : > { %v8950_v51 = vpop.permute.xlu0 %2412 }
 0x2ec   : > { %v8956_v63 = vpop.permute.xlu1 %2414 }
 0x2ed   : > { %4318 = vrot.lane.b32.xlu1 %v8432_v35, %s7955_s13 }
 0x2ee   : > { %4391 = vrot.lane.b32.xlu0 %v8592_v25, %s7955_s13 }
 0x2f1   : > { %4393 = vrot.lane.b32.xlu1 %v8608_v53, %s7955_s13 }
 0x2f2   : > { %4456 = vrot.lane.b32.xlu0 %v8354_v40, %s7956_s15 }
 0x2f5   : > { %4458 = vrot.lane.b32.xlu1 %v8375_v45, %s7956_s15 }
 0x2f6   : > { %4452 = vrot.lane.b32.xlu0 %v8394_v9, %s7956_s15 }
 0x2f9   : > { %4454 = vrot.lane.b32.xlu1 %v8432_v35, %s7956_s15 }
 0x2fa   : > { %4527 = vrot.lane.b32.xlu0 %v8592_v25, %s7956_s15  ;;  %v8960_v25 = vpop.permute.xlu0 %2406 }
 0x2fd   : > { %4529 = vrot.lane.b32.xlu1 %v8608_v53, %s7956_s15  ;;  %v8964_v53 = vpop.permute.xlu1 %2408 }
 0x2fe   : > { %4864 = vrot.lane.b32.xlu0 %v8379_v3, %s7949_s9  ;;  %v8970_v16 = vpop.permute.xlu0 %2485 }
 0x301   : > { %4866 = vrot.lane.b32.xlu1 %v8399_v7, %s7949_s9  ;;  %v8976_v15 = vpop.permute.xlu1 %2487 }
 0x302   : > { %4858 = vrot.lane.b32.xlu0 %v8421_v11, %s7949_s9  ;;  %v8980_v41 = vpop.permute.xlu0 %2550 }
 0x305   : > { %4860 = vrot.lane.b32.xlu1 %v8438_v44, %s7949_s9  ;;  %v8984_v18 = vpop.permute.xlu1 %2552 }
 0x306   : > { %4937 = vrot.lane.b32.xlu0 %v8627_v37, %s7949_s9  ;;  %10757 = vst [vmem:[#allocation12_spill] sm:$0xff] %v8984_v18  ;;  %v8990_v36 = vpop.permute.xlu0 %2546 }
 0x307   : > { %10758 = vst [vmem:[#allocation13_spill] sm:$0xff] %v8990_v36 }
 0x309   : > { %4939 = vrot.lane.b32.xlu1 %v8640_v4, %s7949_s9  ;;  %v8996_v29 = vpop.permute.xlu1 %2548 }
 0x30a   : > { %5002 = vrot.lane.b32.xlu0 %v8379_v3, %s7951_s20  ;;  %10759 = vst [vmem:[#allocation25_spill] sm:$0xff] %v8996_v29  ;;  %v9000_v0 = vpop.permute.xlu0 %2621 }
 0x30d   : > { %5004 = vrot.lane.b32.xlu1 %v8399_v7, %s7951_s20  ;;  %v9004_v46 = vpop.permute.xlu1 %2623 }
 0x30e   : > { %4998 = vrot.lane.b32.xlu0 %v8421_v11, %s7951_s20  ;;  %v9010_v30 = vpop.permute.xlu0 %2686 }
 0x311   : > { %5000 = vrot.lane.b32.xlu1 %v8438_v44, %s7951_s20  ;;  %v9016_v2 = vpop.permute.xlu1 %2688 }
 0x312   : > { %5073 = vrot.lane.b32.xlu0 %v8627_v37, %s7951_s20  ;;  %10760 = vst [vmem:[#allocation26_spill] sm:$0xff] %v9016_v2  ;;  %v9020_v35 = vpop.permute.xlu0 %2682 }
 0x313   : > { %10761 = vst [vmem:[#allocation27_spill] sm:$0xff] %v9020_v35 }
 0x315   : > { %5075 = vrot.lane.b32.xlu1 %v8640_v4, %s7951_s20  ;;  %v9028_v23 = vpop.permute.xlu1 %2684 }
 0x316   : > { %5138 = vrot.lane.b32.xlu0 %v8379_v3, %s7952_s26  ;;  %10762 = vst [vmem:[#allocation28_spill] sm:$0xff] %v9028_v23  ;;  %v9038_v2 = vpop.permute.xlu0 %2757 }
 0x317   : > { %10764 = vst [vmem:[#allocation30_spill] sm:$0xff] %v9038_v2 }
 0x319   : > { %5140 = vrot.lane.b32.xlu1 %v8399_v7, %s7952_s26  ;;  %v9044_v35 = vpop.permute.xlu1 %2759 }
 0x31a   : > { %5134 = vrot.lane.b32.xlu0 %v8421_v11, %s7952_s26  ;;  %10765 = vst [vmem:[#allocation31_spill] sm:$0xff] %v9044_v35  ;;  %v9048_v23 = vpop.permute.xlu0 %2822 }
 0x31b   : > { %10766 = vst [vmem:[#allocation32_spill] sm:$0xff] %v9048_v23 }
 0x31d   : > { %5136 = vrot.lane.b32.xlu1 %v8438_v44, %s7952_s26  ;;  %v9052_v29 = vpop.permute.xlu1 %2824 }
 0x31e   : > { %5209 = vrot.lane.b32.xlu0 %v8627_v37, %s7952_s26  ;;  %10767 = vst [vmem:[#allocation33_spill] sm:$0xff] %v9052_v29  ;;  %v9058_v2 = vpop.permute.xlu0 %2818 }
 0x31f   : > { %10768 = vst [vmem:[#allocation34_spill] sm:$0xff] %v9058_v2 }
 0x321   : > { %5211 = vrot.lane.b32.xlu1 %v8640_v4, %s7952_s26  ;;  %v9064_v23 = vpop.permute.xlu1 %2820 }
 0x322   : > { %5274 = vrot.lane.b32.xlu0 %v8379_v3, %s7953_s28  ;;  %10769 = vst [vmem:[#allocation35_spill] sm:$0xff] %v9064_v23  ;;  %v9068_v29 = vpop.permute.xlu0 %2893 }
 0x323   : > { %10770 = vst [vmem:[#allocation36_spill] sm:$0xff] %v9068_v29 }
 0x325   : > { %5276 = vrot.lane.b32.xlu1 %v8399_v7, %s7953_s28  ;;  %v9072_v35 = vpop.permute.xlu1 %2895 }
 0x326   : > { %5270 = vrot.lane.b32.xlu0 %v8421_v11, %s7953_s28  ;;  %10771 = vst [vmem:[#allocation37_spill] sm:$0xff] %v9072_v35  ;;  %v9078_v2 = vpop.permute.xlu0 %2958 }
 0x327   : > { %10772 = vst [vmem:[#allocation38_spill] sm:$0xff] %v9078_v2 }
 0x329   : > { %5272 = vrot.lane.b32.xlu1 %v8438_v44, %s7953_s28  ;;  %v9084_v23 = vpop.permute.xlu1 %2960 }
 0x32a   : > { %5345 = vrot.lane.b32.xlu0 %v8627_v37, %s7953_s28  ;;  %10773 = vst [vmem:[#allocation39_spill] sm:$0xff] %v9084_v23  ;;  %v9088_v35 = vpop.permute.xlu0 %2954 }
 0x32b   : > { %v9024_v45 = vpop.f32.mrb[24].mxu1  ;;  %10774 = vst [vmem:[#allocation40_spill] sm:$0xff] %v9088_v35 }
 0x32c   : > { %v9026_v9 = vpop.f32.mrb[25].mxu1 }
 0x32d   : > { %5347 = vrot.lane.b32.xlu1 %v8640_v4, %s7953_s28  ;;  %v9032_v60 = vpop.f32.mrb[26].mxu1  ;;  %v9092_v29 = vpop.permute.xlu1 %2956 }
 0x32e   : > { %5410 = vrot.lane.b32.xlu0 %v8379_v3, %s7954_s11  ;;  %v9036_v40 = vpop.f32.mrb[27].mxu1  ;;  %10775 = vst [vmem:[#allocation41_spill] sm:$0xff] %v9092_v29 }
 0x32f   : > { %10763 = vst [vmem:[#allocation29_spill] sm:$0xff] %v9036_v40 }
 0x331   : > { %5412 = vrot.lane.b32.xlu1 %v8399_v7, %s7954_s11  ;;  %v9098_v2 = vpop.permute.xlu1 %3031 }
 0x332   : > { %5406 = vrot.lane.b32.xlu0 %v8421_v11, %s7954_s11  ;;  %10777 = vst [vmem:[#allocation43_spill] sm:$0xff] %v9098_v2 }
 0x335   : > { %5408 = vrot.lane.b32.xlu1 %v8438_v44, %s7954_s11 }
 0x336   : > { %5481 = vrot.lane.b32.xlu0 %v8627_v37, %s7954_s11 }
 0x339   : > { %5483 = vrot.lane.b32.xlu1 %v8640_v4, %s7954_s11 }
 0x33a   : > { %5546 = vrot.lane.b32.xlu0 %v8379_v3, %s7955_s13 }
 0x33d   : > { %5548 = vrot.lane.b32.xlu1 %v8399_v7, %s7955_s13 }
 0x33e   : > { %5542 = vrot.lane.b32.xlu0 %v8421_v11, %s7955_s13 }
 0x341   : > { %5544 = vrot.lane.b32.xlu1 %v8438_v44, %s7955_s13 }
 0x342   : > { %5617 = vrot.lane.b32.xlu0 %v8627_v37, %s7955_s13 }
 0x345   : > { %5619 = vrot.lane.b32.xlu1 %v8640_v4, %s7955_s13 }
 0x346   : > { %5682 = vrot.lane.b32.xlu0 %v8379_v3, %s7956_s15  ;;  %v9096_v3 = vpop.permute.xlu0 %3029 }
 0x347   : > { %10776 = vst [vmem:[#allocation42_spill] sm:$0xff] %v9096_v3 }
 0x349   : > { %5684 = vrot.lane.b32.xlu1 %v8399_v7, %s7956_s15 }
 0x34a   : > { %5678 = vrot.lane.b32.xlu0 %v8421_v11, %s7956_s15  ;;  %v9102_v35 = vpop.permute.xlu0 %3094 }
 0x34b   : > { %10778 = vst [vmem:[#allocation44_spill] sm:$0xff] %v9102_v35 }
 0x34d   : > { %5680 = vrot.lane.b32.xlu1 %v8438_v44, %s7956_s15 }
 0x34e   : > { %5753 = vrot.lane.b32.xlu0 %v8627_v37, %s7956_s15  ;;  %v9105_v37 = vpop.permute.xlu1 %3096 }
 0x351   : > { %5755 = vrot.lane.b32.xlu1 %v8640_v4, %s7956_s15 }
 0x39e   : > { %v7150_v7 = vpop.f32.mrb[28].mxu1 }
 0x39f   : > { %v1300_v11 = vpop.f32.mrb[29].mxu1  ;;  %2139 = vrot.lane.b32.xlu0 %v7150_v7, %s7956_s15 }
 0x3a0   : > { %v7151_v23 = vpop.f32.mrb[30].mxu1 }
 0x3a1   : > { %2141 = vrot.lane.b32.xlu1 %v7151_v23, %s7956_s15  ;;  %v1303_v44 = vpop.f32.mrb[31].mxu1 }
 0x3a3   : > { %2135 = vrot.lane.b32.xlu0 %v1300_v11, %s7956_s15  ;;  %v1466_v11 = vsel %vm1048_vm3, %v8760_v54, 0 }
 0x3a5   : > { %2137 = vrot.lane.b32.xlu1 %v1303_v44, %s7956_s15  ;;  %v9132_v44 = vpop.permute.xlu1 %3092 }
 0x3ae   : > { %v7158_v4 = vpop.f32.mrb[32].mxu1 }
 0x3af   : > { %v1369_v29 = vpop.f32.mrb[33].mxu1  ;;  %v1386_v2 = vmul.f32 %v7158_v4, %v8674_v38 }
 0x3b0   : > { %v7159_v3 = vpop.f32.mrb[34].mxu1  ;;  %v1384_v36 = vmul.f32 %v1369_v29, %v8680_v56 }
 0x3b1   : > { %v1387_v18 = vmul.f32 %v7159_v3, %v8676_v8  ;;  %v1372_v7 = vpop.f32.mrb[35].mxu1  ;;  %v1469_v3 = vsel %vm1048_vm3, %v8792_v48, 0 }
 0x3b2   : > { %v1385_v23 = vmul.f32 %v1372_v7, %v8682_v62 }
 0x3b3   : > { %v1389_v40 = vpack.c.bf16 %v1387_v18, %v1386_v2 }
 0x3b4   : > { %v1388_v35 = vpack.c.bf16 %v1385_v23, %v1384_v36 }
 0x3b6   : > { %7164 = vmatprep.mubr.msk.bf16.mxu0 %vm385_vm0, %v1388_v35 }
 0x3b7   : > { %7165 = vmatmul.mubr.msk.bf16.vlgmr.msra.gmra.mrb[32].mxu0 %vm385_vm0, %v1389_v40  ;;  %v9130_v40 = vpop.permute.xlu0 %3090 }
 0x3b8   : > { %7169 = vmatpush3.bf16.xpose.msra.mxu0 %v1466_v11  ;;  %7172 = vmatprep.mubr.msk.bf16.mxu0 %vm1048_vm3, %v8796_v12 }
 0x3b9   : > { %7675 = vmatprep.subr.msk.bf16.mxu0 %vm1048_vm3, %v8792_v48 }
 0x3bb   : > { %v9136_v12 = vpop.permute.xlu0 %3165 }
 0x3c0   : > { %7171 = vmatpush3.bf16.xpose.msra.mxu0 %v1469_v3 }
 0x3c1   : > { %7192 = vmatprep.subr.bf16.mxu0 %v8832_v58 }
 0x3c7   : > { %7173 = vmatmul.mubr.msk.bf16.vlgmr.msra.gmra.mrb[36].mxu0 %vm1048_vm3, %v8802_v5  ;;  %v9139_v5 = vpop.permute.xlu1 %3167 }
 0x3c8   : > { %7193 = vmatpush3.bf16.msra.mxu0 %v8832_v58 }
 0x3c9   : > { %7194 = vmatprep.subr.bf16.mxu0 %v8842_v26 }
 0x3cc   : > { %7195 = vmatpush3.bf16.msra.mxu0 %v8842_v26 }
 0x3cd   : > { %7678 = vmatprep.subr.msk.bf16.mxu0 %vm1048_vm3, %v8848_v19 }
 0x48a   : > { %v7166_v35 = vpop.f32.mrb[32].mxu0 }
 0x48b   : > { %v1436_v2 = vpop.f32.mrb[33].mxu0  ;;  %2155 = vrot.lane.b32.xlu0 %v7166_v35, %s7955_s13  ;;  %v1602_v35 = vsel %vm1048_vm3, %v8812_v39, 0  ;;  %v9164_v39 = vpop.permute.xlu0 %3230 }
 0x48c   : > { %v7167_v54 = vpop.f32.mrb[34].mxu0 }
 0x48d   : > { %2157 = vrot.lane.b32.xlu1 %v7167_v54, %s7955_s13  ;;  %v1439_v48 = vpop.f32.mrb[35].mxu0  ;;  %v9166_v54 = vpop.permute.xlu1 %3232 }
 0x48f   : > { %2151 = vrot.lane.b32.xlu0 %v1436_v2, %s7955_s13  ;;  %v1605_v2 = vsel %vm1048_vm3, %v8818_v33, 0 }
 0x491   : > { %2153 = vrot.lane.b32.xlu1 %v1439_v48, %s7955_s13 }
 0x49a   : > { %v7174_v58 = vpop.f32.mrb[36].mxu0 }
 0x49b   : > { %v1505_v26 = vpop.f32.mrb[37].mxu0  ;;  %v1522_v36 = vmul.f32 %v7174_v58, %v8674_v38 }
 0x49c   : > { %v7175_v18 = vpop.f32.mrb[38].mxu0  ;;  %v1520_v7 = vmul.f32 %v1505_v26, %v8680_v56 }
 0x49d   : > { %v1523_v29 = vmul.f32 %v7175_v18, %v8676_v8  ;;  %v1508_v4 = vpop.f32.mrb[39].mxu0 }
 0x49e   : > { %v1521_v23 = vmul.f32 %v1508_v4, %v8682_v62 }
 0x49f   : > { %v1525_v11 = vpack.c.bf16 %v1523_v29, %v1522_v36 }
 0x4a0   : > { %v1524_v3 = vpack.c.bf16 %v1521_v23, %v1520_v7 }
 0x4a2   : > { %7180 = vmatprep.mubr.msk.bf16.mxu1 %vm385_vm0, %v1524_v3 }
 0x4a3   : > { %7181 = vmatmul.mubr.msk.bf16.vlgmr.msra.gmra.mrb[36].mxu1 %vm385_vm0, %v1525_v11 }
 0x4a4   : > { %7185 = vmatpush3.bf16.xpose.msra.mxu1 %v1602_v35  ;;  %7188 = vmatprep.mubr.msk.bf16.mxu1 %vm1048_vm3, %v8824_v10  ;;  %v1738_v35 = vsel %vm1048_vm3, %v8848_v19, 0 }
 0x4a5   : > { %7677 = vmatprep.subr.msk.bf16.mxu1 %vm1048_vm3, %v8818_v33 }
 0x4ac   : > { %7187 = vmatpush3.bf16.xpose.msra.mxu1 %v1605_v2  ;;  %v1741_v2 = vsel %vm1048_vm3, %v8856_v42, 0 }
 0x4ad   : > { %7208 = vmatprep.subr.bf16.mxu1 %v8876_v43 }
 0x4b3   : > { %7189 = vmatmul.mubr.msk.bf16.vlgmr.msra.gmra.mrb[40].mxu1 %vm1048_vm3, %v8828_v55 }
 0x4b4   : > { %7209 = vmatpush3.bf16.msra.mxu1 %v8876_v43  ;;  %v9170_v43 = vpop.permute.xlu0 %3226 }
 0x4b5   : > { %7210 = vmatprep.subr.bf16.mxu1 %v8880_v20 }
 0x4b8   : > { %7211 = vmatpush3.bf16.msra.mxu1 %v8880_v20  ;;  %v9173_v20 = vpop.permute.xlu1 %3228  ;;  %v9198_v19 = vpop.permute.xlu0 %3301 }
 0x4b9   : > { %7680 = vmatprep.subr.msk.bf16.mxu1 %vm1048_vm3, %v8888_v13 }
 0x576   : > { %v7182_v10 = vpop.f32.mrb[36].mxu1 }
 0x577   : > { %v1572_v33 = vpop.f32.mrb[37].mxu1  ;;  %2171 = vrot.lane.b32.xlu0 %v7182_v10, %s7954_s11  ;;  %v9200_v10 = vpop.permute.xlu1 %3303 }
 0x578   : > { %v7183_v48 = vpop.f32.mrb[38].mxu1 }
 0x579   : > { %2173 = vrot.lane.b32.xlu1 %v7183_v48, %s7954_s11  ;;  %v1575_v55 = vpop.f32.mrb[39].mxu1 }
 0x57b   : > { %2167 = vrot.lane.b32.xlu0 %v1572_v33, %s7954_s11 }
 0x57d   : > { %2169 = vrot.lane.b32.xlu1 %v1575_v55, %s7954_s11 }
 0x586   : > { %v7190_v58 = vpop.f32.mrb[40].mxu1 }
 0x587   : > { %v1641_v26 = vpop.f32.mrb[41].mxu1  ;;  %v1658_v36 = vmul.f32 %v7190_v58, %v8674_v38 }
 0x588   : > { %v7191_v18 = vpop.f32.mrb[42].mxu1  ;;  %v1656_v7 = vmul.f32 %v1641_v26, %v8680_v56 }
 0x589   : > { %v1659_v29 = vmul.f32 %v7191_v18, %v8676_v8  ;;  %v1644_v4 = vpop.f32.mrb[43].mxu1 }
 0x58a   : > { %v1657_v23 = vmul.f32 %v1644_v4, %v8682_v62 }
 0x58b   : > { %v1661_v11 = vpack.c.bf16 %v1659_v29, %v1658_v36 }
 0x58c   : > { %v1660_v3 = vpack.c.bf16 %v1657_v23, %v1656_v7 }
 0x58e   : > { %7196 = vmatprep.mubr.msk.bf16.mxu0 %vm385_vm0, %v1660_v3  ;;  %v1877_v3 = vsel %vm1048_vm3, %v8894_v14, 0 }
 0x58f   : > { %7197 = vmatmul.mubr.msk.bf16.vlgmr.msra.gmra.mrb[40].mxu0 %vm385_vm0, %v1661_v11  ;;  %v1874_v11 = vsel %vm1048_vm3, %v8888_v13, 0 }
 0x590   : > { %7201 = vmatpush3.bf16.xpose.msra.mxu0 %v1738_v35  ;;  %7204 = vmatprep.mubr.msk.bf16.mxu0 %vm1048_vm3, %v8864_v50 }
 0x591   : > { %7679 = vmatprep.subr.msk.bf16.mxu0 %vm1048_vm3, %v8856_v42 }
 0x598   : > { %7203 = vmatpush3.bf16.xpose.msra.mxu0 %v1741_v2 }
 0x599   : > { %7224 = vmatprep.subr.bf16.mxu0 %v8910_v1 }
 0x59f   : > { %7205 = vmatmul.mubr.msk.bf16.vlgmr.msra.gmra.mrb[44].mxu0 %vm1048_vm3, %v8870_v27 }
 0x5a0   : > { %7225 = vmatpush3.bf16.msra.mxu0 %v8910_v1  ;;  %v9204_v1 = vpop.permute.xlu0 %3638 }
 0x5a1   : > { %7226 = vmatprep.subr.bf16.mxu0 %v8916_v32 }
 0x5a4   : > { %7227 = vmatpush3.bf16.msra.mxu0 %v8916_v32  ;;  %v9207_v32 = vpop.permute.xlu1 %3640  ;;  %v9232_v13 = vpop.permute.xlu0 %3632 }
 0x5a5   : > { %7682 = vmatprep.subr.msk.bf16.mxu0 %vm1048_vm3, %v8920_v47 }
 0x5a8   : > { %v9234_v35 = vpop.permute.xlu1 %3634 }
 0x662   : > { %v7198_v50 = vpop.f32.mrb[40].mxu0 }
 0x663   : > { %v1708_v42 = vpop.f32.mrb[41].mxu0  ;;  %2187 = vrot.lane.b32.xlu0 %v7198_v50, %s7953_s28 }
 0x664   : > { %v7199_v33 = vpop.f32.mrb[42].mxu0 }
 0x665   : > { %2189 = vrot.lane.b32.xlu1 %v7199_v33, %s7953_s28  ;;  %v1711_v27 = vpop.f32.mrb[43].mxu0 }
 0x667   : > { %2183 = vrot.lane.b32.xlu0 %v1708_v42, %s7953_s28 }
 0x669   : > { %2185 = vrot.lane.b32.xlu1 %v1711_v27, %s7953_s28 }
 0x672   : > { %v7206_v48 = vpop.f32.mrb[44].mxu0 }
 0x673   : > { %v1777_v55 = vpop.f32.mrb[45].mxu0  ;;  %v1794_v26 = vmul.f32 %v7206_v48, %v8674_v38 }
 0x674   : > { %v7207_v58 = vpop.f32.mrb[46].mxu0  ;;  %v1792_v29 = vmul.f32 %v1777_v55, %v8680_v56 }
 0x675   : > { %v1795_v18 = vmul.f32 %v7207_v58, %v8676_v8  ;;  %v1780_v36 = vpop.f32.mrb[47].mxu0 }
 0x676   : > { %v1793_v4 = vmul.f32 %v1780_v36, %v8682_v62 }
 0x677   : > { %v1797_v7 = vpack.c.bf16 %v1795_v18, %v1794_v26 }
 0x678   : > { %v1796_v23 = vpack.c.bf16 %v1793_v4, %v1792_v29  ;;  %v2010_v29 = vsel %vm1048_vm3, %v8920_v47, 0  ;;  %v2013_v4 = vsel %vm1048_vm3, %v8924_v52, 0 }
 0x67a   : > { %7212 = vmatprep.mubr.msk.bf16.mxu1 %vm385_vm0, %v1796_v23 }
 0x67b   : > { %7213 = vmatmul.mubr.msk.bf16.vlgmr.msra.gmra.mrb[44].mxu1 %vm385_vm0, %v1797_v7  ;;  %v10779_v7 = vmov 1.0|1.0  }
 0x67c   : > { %7217 = vmatpush3.bf16.xpose.msra.mxu1 %v1874_v11  ;;  %7220 = vmatprep.mubr.msk.bf16.mxu1 %vm1048_vm3, %v8900_v49 }
 0x67d   : > { %7681 = vmatprep.subr.msk.bf16.mxu1 %vm1048_vm3, %v8894_v14 }
 0x684   : > { %7219 = vmatpush3.bf16.xpose.msra.mxu1 %v1877_v3 }
 0x685   : > { %7240 = vmatprep.subr.bf16.mxu1 %v8940_v24 }
 0x68b   : > { %7221 = vmatmul.mubr.msk.bf16.vlgmr.msra.gmra.mrb[48].mxu1 %vm1048_vm3, %v8904_v61 }
 0x68c   : > { %7241 = vmatpush3.bf16.msra.mxu1 %v8940_v24  ;;  %v9238_v24 = vpop.permute.xlu0 %3711 }
 0x68d   : > { %7242 = vmatprep.subr.bf16.mxu1 %v8944_v21 }
 0x690   : > { %7243 = vmatpush3.bf16.msra.mxu1 %v8944_v21  ;;  %v9241_v21 = vpop.permute.xlu1 %3713  ;;  %v9274_v47 = vpop.permute.xlu0 %3776 }
 0x691   : > { %7684 = vmatprep.subr.msk.bf16.mxu1 %vm1048_vm3, %v10755_v28 }
 0x74e   : > { %v7214_v49 = vpop.f32.mrb[44].mxu1 }
 0x74f   : > { %v1844_v14 = vpop.f32.mrb[45].mxu1  ;;  %2203 = vrot.lane.b32.xlu0 %v7214_v49, %s7952_s26 }
 0x750   : > { %v7215_v2 = vpop.f32.mrb[46].mxu1 }
 0x751   : > { %2205 = vrot.lane.b32.xlu1 %v7215_v2, %s7952_s26  ;;  %v1847_v61 = vpop.f32.mrb[47].mxu1 }
 0x753   : > { %2199 = vrot.lane.b32.xlu0 %v1844_v14, %s7952_s26 }
 0x755   : > { %2201 = vrot.lane.b32.xlu1 %v1847_v61, %s7952_s26 }
 0x75e   : > { %v7222_v50 = vpop.f32.mrb[48].mxu1 }
 0x75f   : > { %v1913_v42 = vpop.f32.mrb[49].mxu1  ;;  %v1930_v27 = vmul.f32 %v7222_v50, %v8674_v38 }
 0x760   : > { %v7223_v33 = vpop.f32.mrb[50].mxu1  ;;  %v1928_v58 = vmul.f32 %v1913_v42, %v8680_v56 }
 0x761   : > { %v1931_v48 = vmul.f32 %v7223_v33, %v8676_v8  ;;  %v1916_v55 = vpop.f32.mrb[51].mxu1 }
 0x762   : > { %v1929_v26 = vmul.f32 %v1916_v55, %v8682_v62 }
 0x763   : > { %v1933_v18 = vpack.c.bf16 %v1931_v48, %v1930_v27 }
 0x764   : > { %v1932_v36 = vpack.c.bf16 %v1929_v26, %v1928_v58 }
 0x766   : > { %7228 = vmatprep.mubr.msk.bf16.mxu0 %vm385_vm0, %v1932_v36 }
 0x767   : > { %7229 = vmatmul.mubr.msk.bf16.vlgmr.msra.gmra.mrb[48].mxu0 %vm385_vm0, %v1933_v18 }
 0x768   : > { %7233 = vmatpush3.bf16.xpose.msra.mxu0 %v2010_v29  ;;  %7236 = vmatprep.mubr.msk.bf16.mxu0 %vm1048_vm3, %v8930_v34  ;;  %v9278_v34 = vpop.permute.xlu0 %3772 }
 0x769   : > { %7683 = vmatprep.subr.msk.bf16.mxu0 %vm1048_vm3, %v8924_v52  ;;  %v9276_v52 = vpop.permute.xlu1 %3778 }
 0x76c   : > { %v9282_v59 = vpop.permute.xlu0 %3847 }
 0x770   : > { %7235 = vmatpush3.bf16.xpose.msra.mxu0 %v2013_v4  ;;  %v9286_v11 = vpop.permute.xlu0 %3912 }
 0x771   : > { %7256 = vmatprep.subr.msk.bf16.mxu0 %vm8551_vm2, %v10779_v7 }
 0x774   : > { %v9290_v17 = vpop.permute.xlu0 %3908 }
 0x775   : > { %10782 = vst [vmem:[#allocation47_spill] sm:$0xff] %v9290_v17 }
 0x777   : > { %7237 = vmatmul.mubr.msk.bf16.vlgmr.msra.gmra.mrb[52].mxu0 %vm1048_vm3, %v8936_v57  ;;  %v9280_v57 = vpop.permute.xlu1 %3774 }
 0x778   : > { %7257 = vmatpush3.bf16.msk.msra.mxu0 %vm8551_vm2, %v10779_v7  ;;  %10780 = vst [vmem:[#allocation45_spill] sm:$0xff] %v9280_v57  ;;  %v9294_v14 = vpop.permute.xlu0 %3983  ;;  %vm2256_vm2 = vcmask 523264  }
 0x779   : > { %7258 = vmatprep.subr.msk.bf16.mxu0 %vm8567_vm5, %v10779_v7 }
 0x77b   : > { %v9284_v23 = vpop.permute.xlu1 %3849 }
 0x77c   : > { %7259 = vmatpush3.bf16.msk.msra.mxu0 %vm8567_vm5, %v10779_v7  ;;  %v9298_v61 = vpop.permute.xlu0 %4048  ;;  %vm10717_vm5 = vcmask 785408  }
 0x77d   : > { %7686 = vmatprep.subr.msk.bf16.mxu0 %vm1048_vm3, %v8950_v51  ;;  %10785 = vst [vmem:[#allocation50_spill] sm:$0xff] %v9298_v61 }
 0x77f   : > { %v9288_v3 = vpop.permute.xlu1 %3914 }
 0x780   : > { %10781 = vst [vmem:[#allocation46_spill] sm:$0xff] %v9288_v3  ;;  %v9302_v42 = vpop.permute.xlu0 %4044 }
 0x781   : > { %10787 = vst [vmem:[#allocation52_spill] sm:$0xff] %v9302_v42 }
 0x783   : > { %v9292_v49 = vpop.permute.xlu1 %3910 }
 0x784   : > { %10783 = vst [vmem:[#allocation48_spill] sm:$0xff] %v9292_v49  ;;  %v9306_v27 = vpop.permute.xlu0 %4119 }
 0x785   : > { %10789 = vst [vmem:[#allocation54_spill] sm:$0xff] %v9306_v27 }
 0x787   : > { %v9296_v2 = vpop.permute.xlu1 %3985 }
 0x788   : > { %10784 = vst [vmem:[#allocation49_spill] sm:$0xff] %v9296_v2  ;;  %v9310_v55 = vpop.permute.xlu0 %4184 }
 0x789   : > { %10791 = vst [vmem:[#allocation56_spill] sm:$0xff] %v9310_v55 }
 0x78b   : > { %v9300_v50 = vpop.permute.xlu1 %4050 }
 0x78c   : > { %10786 = vst [vmem:[#allocation51_spill] sm:$0xff] %v9300_v50  ;;  %v9314_v26 = vpop.permute.xlu0 %4180 }
 0x78d   : > { %10793 = vst [vmem:[#allocation58_spill] sm:$0xff] %v9314_v26 }
 0x78f   : > { %v9304_v33 = vpop.permute.xlu1 %4046 }
 0x790   : > { %10788 = vst [vmem:[#allocation53_spill] sm:$0xff] %v9304_v33  ;;  %v9318_v36 = vpop.permute.xlu0 %4255 }
 0x791   : > { %10795 = vst [vmem:[#allocation60_spill] sm:$0xff] %v9318_v36 }
 0x793   : > { %v9308_v48 = vpop.permute.xlu1 %4121 }
 0x794   : > { %10790 = vst [vmem:[#allocation55_spill] sm:$0xff] %v9308_v48  ;;  %v9322_v4 = vpop.permute.xlu0 %4320 }
 0x795   : > { %10797 = vst [vmem:[#allocation62_spill] sm:$0xff] %v9322_v4 }
 0x797   : > { %v9312_v58 = vpop.permute.xlu1 %4186 }
 0x798   : > { %10792 = vst [vmem:[#allocation57_spill] sm:$0xff] %v9312_v58  ;;  %v9326_v33 = vpop.permute.xlu0 %4316 }
 0x799   : > { %10799 = vst [vmem:[#allocation64_spill] sm:$0xff] %v9326_v33 }
 0x79b   : > { %v9316_v18 = vpop.permute.xlu1 %4182 }
 0x79c   : > { %10794 = vst [vmem:[#allocation59_spill] sm:$0xff] %v9316_v18  ;;  %v9330_v48 = vpop.permute.xlu0 %4391 }
 0x79d   : > { %10801 = vst [vmem:[#allocation66_spill] sm:$0xff] %v9330_v48 }
 0x79f   : > { %v9320_v29 = vpop.permute.xlu1 %4257 }
 0x7a0   : > { %10796 = vst [vmem:[#allocation61_spill] sm:$0xff] %v9320_v29  ;;  %v9334_v58 = vpop.permute.xlu0 %4456 }
 0x7a1   : > { %10803 = vst [vmem:[#allocation68_spill] sm:$0xff] %v9334_v58 }
 0x7a3   : > { %v9324_v50 = vpop.permute.xlu1 %4322 }
 0x7a4   : > { %10798 = vst [vmem:[#allocation63_spill] sm:$0xff] %v9324_v50  ;;  %v9338_v18 = vpop.permute.xlu0 %4452 }
 0x7a5   : > { %10805 = vst [vmem:[#allocation70_spill] sm:$0xff] %v9338_v18 }
 0x7a7   : > { %v9328_v42 = vpop.permute.xlu1 %4318 }
 0x7a8   : > { %10800 = vst [vmem:[#allocation65_spill] sm:$0xff] %v9328_v42  ;;  %v9342_v29 = vpop.permute.xlu0 %4527 }
 0x7a9   : > { %10807 = vst [vmem:[#allocation72_spill] sm:$0xff] %v9342_v29 }
 0x7ab   : > { %v9332_v55 = vpop.permute.xlu1 %4393 }
 0x7ac   : > { %10802 = vst [vmem:[#allocation67_spill] sm:$0xff] %v9332_v55  ;;  %v9346_v50 = vpop.permute.xlu0 %4864 }
 0x7ad   : > { %10809 = vst [vmem:[#allocation74_spill] sm:$0xff] %v9346_v50 }
 0x7af   : > { %v9336_v26 = vpop.permute.xlu1 %4458 }
 0x7b0   : > { %10804 = vst [vmem:[#allocation69_spill] sm:$0xff] %v9336_v26  ;;  %v9350_v42 = vpop.permute.xlu0 %4858 }
 0x7b1   : > { %10811 = vst [vmem:[#allocation76_spill] sm:$0xff] %v9350_v42 }
 0x7b3   : > { %v9340_v36 = vpop.permute.xlu1 %4454 }
 0x7b4   : > { %10806 = vst [vmem:[#allocation71_spill] sm:$0xff] %v9340_v36  ;;  %v9354_v55 = vpop.permute.xlu0 %4937 }
 0x7b5   : > { %10813 = vst [vmem:[#allocation78_spill] sm:$0xff] %v9354_v55 }
 0x7b7   : > { %v9344_v4 = vpop.permute.xlu1 %4529 }
 0x7b8   : > { %10808 = vst [vmem:[#allocation73_spill] sm:$0xff] %v9344_v4  ;;  %v9358_v26 = vpop.permute.xlu0 %5002 }
 0x7b9   : > { %10815 = vst [vmem:[#allocation80_spill] sm:$0xff] %v9358_v26 }
 0x7bb   : > { %v9348_v33 = vpop.permute.xlu1 %4866 }
 0x7bc   : > { %10810 = vst [vmem:[#allocation75_spill] sm:$0xff] %v9348_v33  ;;  %v9362_v36 = vpop.permute.xlu0 %4998 }
 0x7bd   : > { %10817 = vst [vmem:[#allocation82_spill] sm:$0xff] %v9362_v36 }
 0x7bf   : > { %v9352_v48 = vpop.permute.xlu1 %4860 }
 0x7c0   : > { %10812 = vst [vmem:[#allocation77_spill] sm:$0xff] %v9352_v48  ;;  %v9366_v4 = vpop.permute.xlu0 %5073 }
 0x7c1   : > { %10819 = vst [vmem:[#allocation84_spill] sm:$0xff] %v9366_v4 }
 0x7c3   : > { %v9356_v58 = vpop.permute.xlu1 %4939 }
 0x7c4   : > { %10814 = vst [vmem:[#allocation79_spill] sm:$0xff] %v9356_v58  ;;  %v9370_v33 = vpop.permute.xlu0 %5138 }
 0x7c5   : > { %10821 = vst [vmem:[#allocation86_spill] sm:$0xff] %v9370_v33 }
 0x7c7   : > { %v9360_v18 = vpop.permute.xlu1 %5004 }
 0x7c8   : > { %10816 = vst [vmem:[#allocation81_spill] sm:$0xff] %v9360_v18  ;;  %v9374_v48 = vpop.permute.xlu0 %5134 }
 0x7c9   : > { %10823 = vst [vmem:[#allocation88_spill] sm:$0xff] %v9374_v48 }
 0x7cb   : > { %v9364_v29 = vpop.permute.xlu1 %5000 }
 0x7cc   : > { %10818 = vst [vmem:[#allocation83_spill] sm:$0xff] %v9364_v29  ;;  %v9378_v58 = vpop.permute.xlu0 %5209 }
 0x7cd   : > { %10825 = vst [vmem:[#allocation90_spill] sm:$0xff] %v9378_v58 }
 0x7cf   : > { %v9368_v50 = vpop.permute.xlu1 %5075 }
 0x7d0   : > { %10820 = vst [vmem:[#allocation85_spill] sm:$0xff] %v9368_v50  ;;  %v9382_v18 = vpop.permute.xlu0 %5274 }
 0x7d1   : > { %10827 = vst [vmem:[#allocation92_spill] sm:$0xff] %v9382_v18 }
 0x7d3   : > { %v9372_v42 = vpop.permute.xlu1 %5140 }
 0x7d4   : > { %10822 = vst [vmem:[#allocation87_spill] sm:$0xff] %v9372_v42  ;;  %v9386_v4 = vpop.permute.xlu0 %5270 }
 0x7d5   : > { %10829 = vst [vmem:[#allocation94_spill] sm:$0xff] %v9386_v4 }
 0x7d7   : > { %v9376_v55 = vpop.permute.xlu1 %5136 }
 0x7d8   : > { %10824 = vst [vmem:[#allocation89_spill] sm:$0xff] %v9376_v55  ;;  %v9393_v48 = vpop.permute.xlu0 %5345 }
 0x7d9   : > { %10831 = vst [vmem:[#allocation96_spill] sm:$0xff] %v9393_v48 }
 0x7db   : > { %v9380_v26 = vpop.permute.xlu1 %5211 }
 0x7dc   : > { %10826 = vst [vmem:[#allocation91_spill] sm:$0xff] %v9380_v26 }
 0x7df   : > { %v9384_v36 = vpop.permute.xlu1 %5276 }
 0x7e0   : > { %10828 = vst [vmem:[#allocation93_spill] sm:$0xff] %v9384_v36  ;;  %v9398_v36 = vpop.permute.xlu0 %5410 }
 0x7e1   : > { %10833 = vst [vmem:[#allocation98_spill] sm:$0xff] %v9398_v36 }
 0x7e3   : > { %v9389_v42 = vpop.permute.xlu1 %5272 }
 0x7e4   : > { %10830 = vst [vmem:[#allocation95_spill] sm:$0xff] %v9389_v42  ;;  %v9402_v49 = vpop.permute.xlu0 %5406 }
 0x7e5   : > { %10835 = vst [vmem:[#allocation100_spill] sm:$0xff] %v9402_v49 }
 0x7e7   : > { %v9396_v18 = vpop.permute.xlu1 %5347 }
 0x7e8   : > { %10832 = vst [vmem:[#allocation97_spill] sm:$0xff] %v9396_v18 }
 0x7eb   : > { %v9400_v4 = vpop.permute.xlu1 %5412 }
 0x7ec   : > { %10834 = vst [vmem:[#allocation99_spill] sm:$0xff] %v9400_v4  ;;  %v9411_v4 = vpop.permute.xlu0 %5481 }
 0x7ed   : > { %10837 = vst [vmem:[#allocation102_spill] sm:$0xff] %v9411_v4 }
 0x7ef   : > { %v9408_v27 = vpop.permute.xlu1 %5408 }
 0x7f0   : > { %10836 = vst [vmem:[#allocation101_spill] sm:$0xff] %v9408_v27 }
 0x83a   : > { %v7230_v29 = vpop.f32.mrb[48].mxu0 }
 0x83b   : > { %v1980_v50 = vpop.f32.mrb[49].mxu0  ;;  %2219 = vrot.lane.b32.xlu0 %v7230_v29, %s7951_s20 }
 0x83c   : > { %v7231_v33 = vpop.f32.mrb[50].mxu0 }
 0x83d   : > { %2221 = vrot.lane.b32.xlu1 %v7231_v33, %s7951_s20  ;;  %v1983_v55 = vpop.f32.mrb[51].mxu0 }
 0x83f   : > { %2215 = vrot.lane.b32.xlu0 %v1980_v50, %s7951_s20 }
 0x841   : > { %2217 = vrot.lane.b32.xlu1 %v1983_v55, %s7951_s20 }
 0x84a   : > { %v7238_v26 = vpop.f32.mrb[52].mxu0 }
 0x84b   : > { %v2049_v29 = vpop.f32.mrb[53].mxu0  ;;  %v2066_v33 = vmul.f32 %v7238_v26, %v8674_v38  ;;  %v2287_v38 = vsel %vm1048_vm3, %v10755_v28, 0 }
 0x84c   : > { %v7239_v58 = vpop.f32.mrb[54].mxu0  ;;  %v2064_v48 = vmul.f32 %v2049_v29, %v8680_v56  ;;  %v9422_v56 = vpop.permute.xlu0 %5546 }
 0x84d   : > { %v2067_v42 = vmul.f32 %v7239_v58, %v8676_v8  ;;  %v2052_v50 = vpop.f32.mrb[55].mxu0  ;;  %v9418_v8 = vpop.permute.xlu1 %5483  ;;  %10839 = vst [vmem:[#allocation104_spill] sm:$0xff] %v9422_v56 }
 0x84e   : > { %v2065_v55 = vmul.f32 %v2052_v50, %v8682_v62  ;;  %10838 = vst [vmem:[#allocation103_spill] sm:$0xff] %v9418_v8 }
 0x84f   : > { %v2069_v18 = vpack.c.bf16 %v2067_v42, %v2066_v33  ;;  %v2290_v42 = vsel %vm1048_vm3, %v10756_v22, 0 }
 0x850   : > { %v2068_v36 = vpack.c.bf16 %v2065_v55, %v2064_v48  ;;  %v9429_v28 = vpop.permute.xlu0 %5542 }
 0x851   : > { %v9424_v62 = vpop.permute.xlu1 %5548  ;;  %10841 = vst [vmem:[#allocation106_spill] sm:$0xff] %v9429_v28 }
 0x852   : > { %7244 = vmatprep.mubr.msk.bf16.mxu1 %vm385_vm0, %v2068_v36  ;;  %10840 = vst [vmem:[#allocation105_spill] sm:$0xff] %v9424_v62 }
 0x853   : > { %7245 = vmatmul.mubr.msk.bf16.vlgmr.msra.gmra.mrb[52].mxu1 %vm385_vm0, %v2069_v18 }
 0x854   : > { %7249 = vmatpush3.bf16.xpose.msra.mxu1 %v2287_v38  ;;  %7252 = vmatprep.mubr.msk.bf16.mxu1 %vm1048_vm3, %v8373_v6  ;;  %v9436_v6 = vpop.permute.xlu0 %5617 }
 0x855   : > { %7685 = vmatprep.subr.msk.bf16.mxu1 %vm1048_vm3, %v10756_v22  ;;  %v9431_v48 = vpop.permute.xlu1 %5544  ;;  %10843 = vst [vmem:[#allocation108_spill] sm:$0xff] %v9436_v6 }
 0x856   : > { %10842 = vst [vmem:[#allocation107_spill] sm:$0xff] %v9431_v48 }
 0x858   : > { %v9444_v22 = vpop.permute.xlu0 %5682 }
 0x859   : > { %v9439_v58 = vpop.permute.xlu1 %5619  ;;  %10845 = vst [vmem:[#allocation110_spill] sm:$0xff] %v9444_v22 }
 0x85a   : > { %10844 = vst [vmem:[#allocation109_spill] sm:$0xff] %v9439_v58 }
 0x85c   : > { %7251 = vmatpush3.bf16.xpose.msra.mxu1 %v2290_v42  ;;  %v9448_v18 = vpop.permute.xlu0 %5678 }
 0x85d   : > { %7272 = vmatprep.subr.bf16.mxu1 %v8970_v16  ;;  %v9446_v26 = vpop.permute.xlu1 %5684  ;;  %10847 = vst [vmem:[#allocation112_spill] sm:$0xff] %v9448_v18 }
 0x85e   : > { %10846 = vst [vmem:[#allocation111_spill] sm:$0xff] %v9446_v26 }
 0x863   : > { %7253 = vmatmul.mubr.msk.bf16.vlgmr.msra.gmra.mrb[56].mxu1 %vm1048_vm3, %v8425_v31  ;;  %v9450_v31 = vpop.permute.xlu1 %5680 }
 0x864   : > { %7273 = vmatpush3.bf16.msra.mxu1 %v8970_v16  ;;  %10848 = vst [vmem:[#allocation113_spill] sm:$0xff] %v9450_v31  ;;  %v9452_v16 = vpop.permute.xlu0 %5753 }
 0x865   : > { %7274 = vmatprep.subr.bf16.mxu1 %v8976_v15  ;;  %10849 = vst [vmem:[#allocation114_spill] sm:$0xff] %v9452_v16 }
 0x867   : > { %v9454_v36 = vpop.permute.xlu1 %5755 }
 0x868   : > { %7275 = vmatpush3.bf16.msra.mxu1 %v8976_v15  ;;  %10850 = vst [vmem:[#allocation115_spill] sm:$0xff] %v9454_v36  ;;  %v2140_v29 = vpop.permute.xlu0 %2139 }
 0x869   : > { %7688 = vmatprep.subr.msk.bf16.mxu1 %vm1048_vm3, %v8980_v41  ;;  %v2245_v6 = vsel %vm1048_vm3, %v9024_v45, %v2140_v29 }
 0x86b   : > { %v2142_v33 = vpop.permute.xlu1 %2141 }
 0x86c   : > { %v9456_v50 = vpop.permute.xlu0 %2135  ;;  %v2246_v8 = vsel %vm1048_vm3, %v9032_v60, %v2142_v33 }
 0x86f   : > { %v9458_v15 = vpop.permute.xlu1 %2137 }
 0x870   : > { %v2156_v55 = vpop.permute.xlu0 %2155 }
 0x871   : > { %v2249_v56 = vsel %vm385_vm0, %v2245_v6, %v2156_v55 }
 0x873   : > { %v2158_v38 = vpop.permute.xlu1 %2157 }
 0x874   : > { %v9460_v42 = vpop.permute.xlu0 %2151  ;;  %v2250_v17 = vsel %vm385_vm0, %v2246_v8, %v2158_v38  ;;  %v9500_v38 = vld [vmem:[#allocation5] sm:$0xff] }
 0x877   : > { %v9462_v48 = vpop.permute.xlu1 %2153 }
 0x878   : > { %v2172_v26 = vpop.permute.xlu0 %2171 }
 0x879   : > { %v2254_v4 = vsel %vm2251_vm1, %v2249_v56, %v2172_v26 }
 0x87b   : > { %v2174_v18 = vpop.permute.xlu1 %2173 }
 0x87c   : > { %v9464_v62 = vpop.permute.xlu0 %2167  ;;  %v2255_v45 = vsel %vm2251_vm1, %v2250_v17, %v2174_v18  ;;  %v9497_v18 = vld [vmem:[#allocation5 + $0x18] sm:$0xff] }
 0x87f   : > { %v9466_v31 = vpop.permute.xlu1 %2169 }
 0x880   : > { %v2188_v16 = vpop.permute.xlu0 %2187 }
 0x881   : > { %v2259_v61 = vsel %vm2256_vm2, %v2254_v4, %v2188_v16 }
 0x883   : > { %v2190_v36 = vpop.permute.xlu1 %2189 }
 0x884   : > { %v9468_v28 = vpop.permute.xlu0 %2183  ;;  %v2260_v6 = vsel %vm2256_vm2, %v2255_v45, %v2190_v36 }
 0x887   : > { %v9470_v22 = vpop.permute.xlu1 %2185 }
 0x888   : > { %v2204_v58 = vpop.permute.xlu0 %2203 }
 0x889   : > { %v2264_v29 = vsel %vm2261_vm4, %v2259_v61, %v2204_v58  ;;  %v9494_v58 = vld [vmem:[#allocation5 + $0x10] sm:$0xff] }
 0x88b   : > { %v2206_v27 = vpop.permute.xlu1 %2205 }
 0x88c   : > { %v9474_v49 = vpop.permute.xlu0 %2199  ;;  %v2265_v60 = vsel %vm2261_vm4, %v2260_v6, %v2206_v27 }
 0x88f   : > { %v9480_v3 = vpop.permute.xlu1 %2201 }
 0x8ad   : > { %v2220_v2 = vpop.permute.xlu0 %2219 }
 0x8ae   : > { %v2269_v55 = vsel %vm10717_vm5, %v2264_v29, %v2220_v2  ;;  %v9503_v29 = vld [vmem:[#allocation5 + $0x8] sm:$0xff] }
 0x8af   : > { %v2222_v33 = vpop.permute.xlu1 %2221 }
 0x8b0   : > { %v2270_v56 = vsel %vm10717_vm5, %v2265_v60, %v2222_v33  ;;  %v2423_v33 = vsel %vm1048_vm3, %v8950_v51, 0 }
 0x8b1   : > { %v2216_v51 = vpop.permute.xlu0 %2215 }
 0x926   : > { %v7246_v26 = vpop.f32.mrb[52].mxu1 }
 0x927   : > { %v2116_v57 = vpop.f32.mrb[53].mxu1  ;;  %2235 = vrot.lane.b32.xlu0 %v7246_v26, %s7949_s9  ;;  %v2426_v26 = vsel %vm1048_vm3, %v8956_v63, 0 }
 0x928   : > { %v7247_v8 = vpop.f32.mrb[54].mxu1 }
 0x929   : > { %2237 = vrot.lane.b32.xlu1 %v7247_v8, %s7949_s9  ;;  %v2119_v17 = vpop.f32.mrb[55].mxu1 }
 0x92b   : > { %2231 = vrot.lane.b32.xlu0 %v2116_v57, %s7949_s9 }
 0x92d   : > { %2233 = vrot.lane.b32.xlu1 %v2119_v17, %s7949_s9 }
 0x936   : > { %v7254_v61 = vpop.f32.mrb[56].mxu1 }
 0x937   : > { %v2326_v4 = vpop.f32.mrb[57].mxu1  ;;  %v2343_v27 = vmul.f32 %v9494_v58, %v7254_v61 }
 0x938   : > { %v7255_v2 = vpop.f32.mrb[58].mxu1  ;;  %v2341_v45 = vmul.f32 %v9500_v38, %v2326_v4 }
 0x939   : > { %v2344_v16 = vmul.f32 %v9497_v18, %v7255_v2  ;;  %v2329_v36 = vpop.f32.mrb[59].mxu1 }
 0x93a   : > { %v2342_v57 = vmul.f32 %v9503_v29, %v2329_v36 }
 0x93b   : > { %v2346_v6 = vpack.c.bf16 %v2344_v16, %v2343_v27 }
 0x93c   : > { %v2345_v60 = vpack.c.bf16 %v2342_v57, %v2341_v45  ;;  %v10392_v57 = vld [vmem:[#allocation2 + $0x10] sm:$0xff] }
 0x93e   : > { %7260 = vmatprep.mubr.msk.bf16.mxu0 %vm385_vm0, %v2345_v60 }
 0x93f   : > { %7261 = vmatmul.mubr.msk.bf16.vlgmr.msra.gmra.mrb[56].mxu0 %vm385_vm0, %v2346_v6 }
 0x940   : > { %7265 = vmatpush3.bf16.xpose.msra.mxu0 %v2423_v33  ;;  %7268 = vmatprep.mubr.msk.bf16.mxu0 %vm1048_vm3, %v8960_v25  ;;  %v2218_v25 = vpop.permute.xlu1 %2217 }
 0x941   : > { %7687 = vmatprep.subr.msk.bf16.mxu0 %vm1048_vm3, %v8956_v63  ;;  %v2243_v63 = vsel %vm1048_vm3, %v9026_v9, %v9456_v50 }
 0x942   : > { %v2247_v8 = vsel %vm385_vm0, %v2243_v63, %v9460_v42 }
 0x948   : > { %7267 = vmatpush3.bf16.xpose.msra.mxu0 %v2426_v26 }
 0x949   : > { %7288 = vmatprep.subr.bf16.mxu0 %v9000_v0 }
 0x94f   : > { %7269 = vmatmul.mubr.msk.bf16.vlgmr.msra.gmra.mrb[60].mxu0 %vm1048_vm3, %v8964_v53 }
 0x950   : > { %7289 = vmatpush3.bf16.msra.mxu0 %v9000_v0  ;;  %v10851_v0 = vld [vmem:[#allocation29_spill] sm:$0xff] }
 0x951   : > { %7290 = vmatprep.subr.bf16.mxu0 %v9004_v46  ;;  %v2244_v17 = vsel %vm1048_vm3, %v10851_v0, %v9458_v15 }
 0x952   : > { %v2248_v4 = vsel %vm385_vm0, %v2244_v17, %v9462_v48 }
 0x953   : > { %v2253_v42 = vsel %vm2251_vm1, %v2248_v4, %v9466_v31 }
 0x954   : > { %7291 = vmatpush3.bf16.msra.mxu0 %v9004_v46  ;;  %v2252_v46 = vsel %vm2251_vm1, %v2247_v8, %v9464_v62  ;;  %v2258_v62 = vsel %vm2256_vm2, %v2253_v42, %v9470_v22  ;;  %v10857_v42 = vld [vmem:[#allocation12_spill] sm:$0xff]  ;;  %v10397_v22 = vld [vmem:[#allocation2 + $0x18] sm:$0xff] }
 0x955   : > { %7690 = vmatprep.subr.msk.bf16.mxu0 %vm1048_vm3, %v9010_v30  ;;  %v2257_v2 = vsel %vm2256_vm2, %v2252_v46, %v9468_v28  ;;  %v2263_v28 = vsel %vm2261_vm4, %v2258_v62, %v9480_v3  ;;  %v10859_v62 = vld [vmem:[#allocation25_spill] sm:$0xff] }
 0x956   : > { %v2262_v15 = vsel %vm2261_vm4, %v2257_v2, %v9474_v49  ;;  %v2268_v31 = vsel %vm10717_vm5, %v2263_v28, %v2218_v25  ;;  %v2561_v2 = vsel %vm1048_vm3, %v8980_v41, 0  ;;  %v10861_v41 = vld [vmem:[#allocation32_spill] sm:$0xff] }
 0x999   : > { %v2236_v53 = vpop.permute.xlu0 %2235 }
 0x99a   : > { %v2274_v61 = vsel %vm2271_vm6, %v2269_v55, %v2236_v53  ;;  %v2267_v55 = vsel %vm10717_vm5, %v2262_v15, %v2216_v51  ;;  %v2564_v15 = vsel %vm1048_vm3, %v10857_v42, 0 }
 0x99b   : > { %v9539_v9 = vmul.f32 0.5, %v2274_v61  ;;  %v2238_v50 = vpop.permute.xlu1 %2237 }
 0x99c   : > { %v2275_v27 = vsel %vm2271_vm6, %v2270_v56, %v2238_v50  ;;  %v10856_v50 = vld [vmem:[#allocation13_spill] sm:$0xff] }
 0x99d   : > { %v9549_v48 = vmul.f32 0.5, %v2275_v27  ;;  %v2232_v16 = vpop.permute.xlu0 %2231  ;;  %vm5964_vm8 = vcmp.ge.f32.partialorder %v9539_v9, 0.5  ;;  %v10858_v27 = vld [vmem:[#allocation30_spill] sm:$0xff] }
 0x99e   : > { %v2272_v36 = vsel %vm2271_vm6, %v2267_v55, %v2232_v16  ;;  %v10860_v55 = vld [vmem:[#allocation31_spill] sm:$0xff] }
 0x99f   : > { %vm5965_vm10 = vcmp.ge.f32.partialorder %v9549_v48, 0.5  ;;  %v9557_v49 = vmul.f32 0.5, %v2272_v36  ;;  %v2234_v56 = vpop.permute.xlu1 %2233 }
 0x9a0   : > { %vm9563_vm11 = vmpackc.low %vm5965_vm10, %vm5964_vm8  ;;  %v2273_v3 = vsel %vm2271_vm6, %v2268_v31, %v2234_v56 }
 0x9a1   : > { %v9568_v45 = vmul.f32 0.5, %v2273_v3  ;;  %vm5962_vm13 = vcmp.ge.f32.partialorder %v9557_v49, 0.5 }
 0x9a3   : > { %vm5963_vm14 = vcmp.ge.f32.partialorder %v9568_v45, 0.5 }
 0x9a4   : > { %vm9576_vm5 = vmpackc.low %vm5963_vm14, %vm5962_vm13 }
 0xa12   : > { %v7262_v6 = vpop.f32.mrb[56].mxu0 }
 0xa13   : > { %v9580_v60 = vpop.f32.mrb[57].mxu0 }
 0xa14   : > { %v7263_v33 = vpop.f32.mrb[58].mxu0 }
 0xa15   : > { %v9582_v26 = vpop.f32.mrb[59].mxu0 }
 0xa22   : > { %v7270_v51 = vpop.f32.mrb[60].mxu0 }
 0xa23   : > { %v2462_v25 = vpop.f32.mrb[61].mxu0  ;;  %v2479_v8 = vmul.f32 %v9494_v58, %v7270_v51 }
 0xa24   : > { %v7271_v63 = vpop.f32.mrb[62].mxu0  ;;  %v2477_v17 = vmul.f32 %v9500_v38, %v2462_v25 }
 0xa25   : > { %v2480_v53 = vmul.f32 %v9497_v18, %v7271_v63  ;;  %v2465_v0 = vpop.f32.mrb[63].mxu0 }
 0xa26   : > { %v2478_v46 = vmul.f32 %v9503_v29, %v2465_v0 }
 0xa27   : > { %v2482_v61 = vpack.c.bf16 %v2480_v53, %v2479_v8 }
 0xa28   : > { %v2481_v4 = vpack.c.bf16 %v2478_v46, %v2477_v17 }
 0xa2a   : > { %7276 = vmatprep.mubr.msk.bf16.mxu1 %vm385_vm0, %v2481_v4  ;;  %v10862_v4 = vld [vmem:[#allocation27_spill] sm:$0xff] }
 0xa2b   : > { %7277 = vmatmul.mubr.msk.bf16.vlgmr.msra.gmra.mrb[60].mxu1 %vm385_vm0, %v2482_v61  ;;  %v2697_v61 = vsel %vm1048_vm3, %v9010_v30, 0  ;;  %v10867_v30 = vld [vmem:[#allocation38_spill] sm:$0xff] }
 0xa2c   : > { %7281 = vmatpush3.bf16.xpose.msra.mxu1 %v2561_v2  ;;  %7284 = vmatprep.mubr.msk.bf16.mxu1 %vm1048_vm3, %v10856_v50  ;;  %v10863_v2 = vld [vmem:[#allocation26_spill] sm:$0xff] }
 0xa2d   : > { %7689 = vmatprep.subr.msk.bf16.mxu1 %vm1048_vm3, %v10857_v42  ;;  %v2700_v50 = vsel %vm1048_vm3, %v10863_v2, 0  ;;  %v10864_v42 = vld [vmem:[#allocation36_spill] sm:$0xff] }
 0xa34   : > { %7283 = vmatpush3.bf16.xpose.msra.mxu1 %v2564_v15  ;;  %v10865_v15 = vld [vmem:[#allocation28_spill] sm:$0xff] }
 0xa35   : > { %7304 = vmatprep.subr.bf16.mxu1 %v10858_v27 }
 0xa3b   : > { %7285 = vmatmul.mubr.msk.bf16.vlgmr.msra.gmra.mrb[64].mxu1 %vm1048_vm3, %v10859_v62 }
 0xa3c   : > { %7305 = vmatpush3.bf16.msra.mxu1 %v10858_v27  ;;  %v10866_v27 = vld [vmem:[#allocation37_spill] sm:$0xff] }
 0xa3d   : > { %7306 = vmatprep.subr.bf16.mxu1 %v10860_v55 }
 0xa40   : > { %7307 = vmatpush3.bf16.msra.mxu1 %v10860_v55 }
 0xa41   : > { %7692 = vmatprep.subr.msk.bf16.mxu1 %vm1048_vm3, %v10861_v41 }
 0xafe   : > { %v7278_v16 = vpop.f32.mrb[60].mxu1 }
 0xaff   : > { %v2531_v28 = vpop.f32.mrb[61].mxu1  ;;  %3370 = vrot.lane.b32.xlu0 %v7278_v16, %s7956_s15 }
 0xb00   : > { %v7279_v36 = vpop.f32.mrb[62].mxu1 }
 0xb01   : > { %3372 = vrot.lane.b32.xlu1 %v7279_v36, %s7956_s15  ;;  %v2534_v31 = vpop.f32.mrb[63].mxu1 }
 0xb03   : > { %3366 = vrot.lane.b32.xlu0 %v2531_v28, %s7956_s15 }
 0xb05   : > { %3368 = vrot.lane.b32.xlu1 %v2534_v31, %s7956_s15 }
 0xb0e   : > { %v7286_v56 = vpop.f32.mrb[64].mxu1 }
 0xb0f   : > { %v2600_v3 = vpop.f32.mrb[65].mxu1  ;;  %v2617_v25 = vmul.f32 %v9494_v58, %v7286_v56 }
 0xb10   : > { %v7287_v51 = vpop.f32.mrb[66].mxu1  ;;  %v2615_v53 = vmul.f32 %v9500_v38, %v2600_v3 }
 0xb11   : > { %v2618_v63 = vmul.f32 %v9497_v18, %v7287_v51  ;;  %v2603_v8 = vpop.f32.mrb[67].mxu1 }
 0xb12   : > { %v2616_v0 = vmul.f32 %v9503_v29, %v2603_v8 }
 0xb13   : > { %v2620_v17 = vpack.c.bf16 %v2618_v63, %v2617_v25 }
 0xb14   : > { %v2619_v46 = vpack.c.bf16 %v2616_v0, %v2615_v53 }
 0xb16   : > { %7292 = vmatprep.mubr.msk.bf16.mxu0 %vm385_vm0, %v2619_v46 }
 0xb17   : > { %7293 = vmatmul.mubr.msk.bf16.vlgmr.msra.gmra.mrb[64].mxu0 %vm385_vm0, %v2620_v17 }
 0xb18   : > { %7297 = vmatpush3.bf16.xpose.msra.mxu0 %v2697_v61  ;;  %7300 = vmatprep.mubr.msk.bf16.mxu0 %vm1048_vm3, %v10862_v4  ;;  %v2833_v61 = vsel %vm1048_vm3, %v10861_v41, 0  ;;  %v10868_v4 = vld [vmem:[#allocation34_spill] sm:$0xff]  ;;  %v10873_v41 = vld [vmem:[#allocation44_spill] sm:$0xff] }
 0xb19   : > { %7691 = vmatprep.subr.msk.bf16.mxu0 %vm1048_vm3, %v10863_v2  ;;  %v10869_v2 = vld [vmem:[#allocation33_spill] sm:$0xff] }
 0xb20   : > { %7299 = vmatpush3.bf16.xpose.msra.mxu0 %v2700_v50  ;;  %v2836_v50 = vsel %vm1048_vm3, %v10869_v2, 0 }
 0xb21   : > { %7320 = vmatprep.subr.bf16.mxu0 %v10864_v42 }
 0xb27   : > { %7301 = vmatmul.mubr.msk.bf16.vlgmr.msra.gmra.mrb[68].mxu0 %vm1048_vm3, %v10865_v15  ;;  %v10871_v15 = vld [vmem:[#allocation35_spill] sm:$0xff] }
 0xb28   : > { %7321 = vmatpush3.bf16.msra.mxu0 %v10864_v42  ;;  %v10870_v42 = vld [vmem:[#allocation42_spill] sm:$0xff] }
 0xb29   : > { %7322 = vmatprep.subr.bf16.mxu0 %v10866_v27 }
 0xb2c   : > { %7323 = vmatpush3.bf16.msra.mxu0 %v10866_v27  ;;  %v10872_v27 = vld [vmem:[#allocation43_spill] sm:$0xff] }
 0xb2d   : > { %7694 = vmatprep.subr.msk.bf16.mxu0 %vm1048_vm3, %v10867_v30 }
 0xb71   : > { %v3371_v62 = vpop.permute.xlu0 %3370 }
 0xb72   : > { %v3476_v55 = vsel %vm1048_vm3, %v7262_v6, %v3371_v62 }
 0xb73   : > { %v3373_v16 = vpop.permute.xlu1 %3372 }
 0xb74   : > { %v3477_v28 = vsel %vm1048_vm3, %v7263_v33, %v3373_v16 }
 0xb75   : > { %v9660_v62 = vpop.permute.xlu0 %3366 }
 0xb77   : > { %v9662_v16 = vpop.permute.xlu1 %3368 }
 0xbea   : > { %v7294_v36 = vpop.f32.mrb[64].mxu0 }
 0xbeb   : > { %v2667_v31 = vpop.f32.mrb[65].mxu0  ;;  %3386 = vrot.lane.b32.xlu0 %v7294_v36, %s7955_s13 }
 0xbec   : > { %v7295_v56 = vpop.f32.mrb[66].mxu0 }
 0xbed   : > { %3388 = vrot.lane.b32.xlu1 %v7295_v56, %s7955_s13  ;;  %v2670_v3 = vpop.f32.mrb[67].mxu0 }
 0xbef   : > { %3382 = vrot.lane.b32.xlu0 %v2667_v31, %s7955_s13 }
 0xbf1   : > { %3384 = vrot.lane.b32.xlu1 %v2670_v3, %s7955_s13 }
 0xbfa   : > { %v7302_v51 = vpop.f32.mrb[68].mxu0 }
 0xbfb   : > { %v2736_v25 = vpop.f32.mrb[69].mxu0  ;;  %v2753_v6 = vmul.f32 %v9494_v58, %v7302_v51 }
 0xbfc   : > { %v7303_v63 = vpop.f32.mrb[70].mxu0  ;;  %v2751_v53 = vmul.f32 %v9500_v38, %v2736_v25 }
 0xbfd   : > { %v2754_v8 = vmul.f32 %v9497_v18, %v7303_v63  ;;  %v2739_v33 = vpop.f32.mrb[71].mxu0 }
 0xbfe   : > { %v2752_v0 = vmul.f32 %v9503_v29, %v2739_v33 }
 0xbff   : > { %v2756_v17 = vpack.c.bf16 %v2754_v8, %v2753_v6 }
 0xc00   : > { %v2755_v46 = vpack.c.bf16 %v2752_v0, %v2751_v53 }
 0xc02   : > { %7308 = vmatprep.mubr.msk.bf16.mxu1 %vm385_vm0, %v2755_v46 }
 0xc03   : > { %7309 = vmatmul.mubr.msk.bf16.vlgmr.msra.gmra.mrb[68].mxu1 %vm385_vm0, %v2756_v17 }
 0xc04   : > { %7313 = vmatpush3.bf16.xpose.msra.mxu1 %v2833_v61  ;;  %7316 = vmatprep.mubr.msk.bf16.mxu1 %vm1048_vm3, %v10868_v4 }
 0xc05   : > { %7693 = vmatprep.subr.msk.bf16.mxu1 %vm1048_vm3, %v10869_v2  ;;  %v2969_v2 = vsel %vm1048_vm3, %v10867_v30, 0 }
 0xc0c   : > { %7315 = vmatpush3.bf16.xpose.msra.mxu1 %v2836_v50  ;;  %v10874_v50 = vld [vmem:[#allocation40_spill] sm:$0xff] }
 0xc0d   : > { %7336 = vmatprep.subr.bf16.mxu1 %v10870_v42 }
 0xc13   : > { %7317 = vmatmul.mubr.msk.bf16.vlgmr.msra.gmra.mrb[72].mxu1 %vm1048_vm3, %v10871_v15 }
 0xc14   : > { %7337 = vmatpush3.bf16.msra.mxu1 %v10870_v42  ;;  %v10875_v42 = vld [vmem:[#allocation39_spill] sm:$0xff] }
 0xc15   : > { %7338 = vmatprep.subr.bf16.mxu1 %v10872_v27  ;;  %v2972_v15 = vsel %vm1048_vm3, %v10875_v42, 0 }
 0xc18   : > { %7339 = vmatpush3.bf16.msra.mxu1 %v10872_v27  ;;  %v10876_v27 = vld [vmem:[#allocation41_spill] sm:$0xff] }
 0xc19   : > { %7696 = vmatprep.subr.msk.bf16.mxu1 %vm1048_vm3, %v10873_v41 }
 0xc5d   : > { %v3387_v36 = vpop.permute.xlu0 %3386 }
 0xc5e   : > { %v3480_v31 = vsel %vm385_vm0, %v3476_v55, %v3387_v36 }
 0xc5f   : > { %v3389_v56 = vpop.permute.xlu1 %3388 }
 0xc60   : > { %v3481_v3 = vsel %vm385_vm0, %v3477_v28, %v3389_v56 }
 0xc61   : > { %v9692_v30 = vpop.permute.xlu0 %3382 }
 0xc63   : > { %v9694_v36 = vpop.permute.xlu1 %3384 }
 0xcd6   : > { %v7310_v51 = vpop.f32.mrb[68].mxu1 }
 0xcd7   : > { %v2803_v25 = vpop.f32.mrb[69].mxu1  ;;  %3402 = vrot.lane.b32.xlu0 %v7310_v51, %s7954_s11 }
 0xcd8   : > { %v7311_v63 = vpop.f32.mrb[70].mxu1 }
 0xcd9   : > { %3404 = vrot.lane.b32.xlu1 %v7311_v63, %s7954_s11  ;;  %v2806_v6 = vpop.f32.mrb[71].mxu1 }
 0xcdb   : > { %3398 = vrot.lane.b32.xlu0 %v2803_v25, %s7954_s11 }
 0xcdd   : > { %3400 = vrot.lane.b32.xlu1 %v2806_v6, %s7954_s11 }
 0xce6   : > { %v7318_v8 = vpop.f32.mrb[72].mxu1 }
 0xce7   : > { %v2872_v33 = vpop.f32.mrb[73].mxu1  ;;  %v2889_v55 = vmul.f32 %v9494_v58, %v7318_v8 }
 0xce8   : > { %v7319_v53 = vpop.f32.mrb[74].mxu1  ;;  %v2887_v17 = vmul.f32 %v9500_v38, %v2872_v33 }
 0xce9   : > { %v2890_v0 = vmul.f32 %v9497_v18, %v7319_v53  ;;  %v2875_v28 = vpop.f32.mrb[75].mxu1 }
 0xcea   : > { %v2888_v46 = vmul.f32 %v9503_v29, %v2875_v28 }
 0xceb   : > { %v2892_v61 = vpack.c.bf16 %v2890_v0, %v2889_v55 }
 0xcec   : > { %v2891_v4 = vpack.c.bf16 %v2888_v46, %v2887_v17 }
 0xcee   : > { %7324 = vmatprep.mubr.msk.bf16.mxu0 %vm385_vm0, %v2891_v4  ;;  %v3105_v4 = vsel %vm1048_vm3, %v10873_v41, 0  ;;  %v10877_v41 = vld [vmem:[#allocation14_spill] sm:$0xff] }
 0xcef   : > { %7325 = vmatmul.mubr.msk.bf16.vlgmr.msra.gmra.mrb[72].mxu0 %vm385_vm0, %v2892_v61 }
 0xcf0   : > { %7329 = vmatpush3.bf16.xpose.msra.mxu0 %v2969_v2  ;;  %7332 = vmatprep.mubr.msk.bf16.mxu0 %vm1048_vm3, %v10874_v50  ;;  %v3108_v2 = vsel %vm1048_vm3, %v9105_v37, 0 }
 0xcf1   : > { %7695 = vmatprep.subr.msk.bf16.mxu0 %vm1048_vm3, %v10875_v42 }
 0xcf8   : > { %7331 = vmatpush3.bf16.xpose.msra.mxu0 %v2972_v15 }
 0xcf9   : > { %7352 = vmatprep.subr.bf16.mxu0 %v9136_v12 }
 0xcff   : > { %7333 = vmatmul.mubr.msk.bf16.vlgmr.msra.gmra.mrb[76].mxu0 %vm1048_vm3, %v10876_v27 }
 0xd00   : > { %7353 = vmatpush3.bf16.msra.mxu0 %v9136_v12 }
 0xd01   : > { %7354 = vmatprep.subr.bf16.mxu0 %v9139_v5 }
 0xd04   : > { %7355 = vmatpush3.bf16.msra.mxu0 %v9139_v5 }
 0xd05   : > { %7698 = vmatprep.subr.msk.bf16.mxu0 %vm1048_vm3, %v9164_v39 }
 0xd49   : > { %v3403_v56 = vpop.permute.xlu0 %3402 }
 0xd4a   : > { %v3484_v51 = vsel %vm2251_vm1, %v3480_v31, %v3403_v56 }
 0xd4b   : > { %v3405_v25 = vpop.permute.xlu1 %3404 }
 0xd4c   : > { %v3485_v63 = vsel %vm2251_vm1, %v3481_v3, %v3405_v25 }
 0xd4f   : > { %v9726_v50 = vpop.permute.xlu1 %3400 }
 0xdc2   : > { %v7326_v6 = vpop.f32.mrb[72].mxu0 }
 0xdc3   : > { %v2939_v8 = vpop.f32.mrb[73].mxu0  ;;  %3418 = vrot.lane.b32.xlu0 %v7326_v6, %s7953_s28 }
 0xdc4   : > { %v7327_v12 = vpop.f32.mrb[74].mxu0 }
 0xdc5   : > { %3420 = vrot.lane.b32.xlu1 %v7327_v12, %s7953_s28  ;;  %v2942_v5 = vpop.f32.mrb[75].mxu0 }
 0xdc7   : > { %3414 = vrot.lane.b32.xlu0 %v2939_v8, %s7953_s28 }
 0xdc9   : > { %3416 = vrot.lane.b32.xlu1 %v2942_v5, %s7953_s28 }
 0xdd2   : > { %v7334_v33 = vpop.f32.mrb[76].mxu0 }
 0xdd3   : > { %v3008_v53 = vpop.f32.mrb[77].mxu0  ;;  %v3025_v31 = vmul.f32 %v9494_v58, %v7334_v33 }
 0xdd4   : > { %v7335_v55 = vpop.f32.mrb[78].mxu0  ;;  %v3023_v28 = vmul.f32 %v9500_v38, %v3008_v53 }
 0xdd5   : > { %v3026_v0 = vmul.f32 %v9497_v18, %v7335_v55  ;;  %v3011_v3 = vpop.f32.mrb[79].mxu0 }
 0xdd6   : > { %v3024_v17 = vmul.f32 %v9503_v29, %v3011_v3 }
 0xdd7   : > { %v3028_v46 = vpack.c.bf16 %v3026_v0, %v3025_v31  ;;  %v3241_v31 = vsel %vm1048_vm3, %v9164_v39, 0  ;;  %v3244_v0 = vsel %vm1048_vm3, %v9166_v54, 0 }
 0xdd8   : > { %v3027_v61 = vpack.c.bf16 %v3024_v17, %v3023_v28 }
 0xdda   : > { %7340 = vmatprep.mubr.msk.bf16.mxu1 %vm385_vm0, %v3027_v61 }
 0xddb   : > { %7341 = vmatmul.mubr.msk.bf16.vlgmr.msra.gmra.mrb[76].mxu1 %vm385_vm0, %v3028_v46 }
 0xddc   : > { %7345 = vmatpush3.bf16.xpose.msra.mxu1 %v3105_v4  ;;  %7348 = vmatprep.mubr.msk.bf16.mxu1 %vm1048_vm3, %v9130_v40  ;;  %v9724_v40 = vpop.permute.xlu0 %3398 }
 0xddd   : > { %7697 = vmatprep.subr.msk.bf16.mxu1 %vm1048_vm3, %v9105_v37 }
 0xde4   : > { %7347 = vmatpush3.bf16.xpose.msra.mxu1 %v3108_v2 }
 0xde5   : > { %7368 = vmatprep.subr.bf16.mxu1 %v9198_v19 }
 0xdeb   : > { %7349 = vmatmul.mubr.msk.bf16.vlgmr.msra.gmra.mrb[80].mxu1 %vm1048_vm3, %v9132_v44 }
 0xdec   : > { %7369 = vmatpush3.bf16.msra.mxu1 %v9198_v19 }
 0xded   : > { %7370 = vmatprep.subr.bf16.mxu1 %v9200_v10 }
 0xdf0   : > { %7371 = vmatpush3.bf16.msra.mxu1 %v9200_v10 }
 0xdf1   : > { %7700 = vmatprep.subr.msk.bf16.mxu1 %vm1048_vm3, %v10877_v41 }
 0xe35   : > { %v3419_v37 = vpop.permute.xlu0 %3418 }
 0xe36   : > { %v3488_v42 = vsel %vm2256_vm2, %v3484_v51, %v3419_v37 }
 0xe37   : > { %v3421_v15 = vpop.permute.xlu1 %3420 }
 0xe38   : > { %v3489_v27 = vsel %vm2256_vm2, %v3485_v63, %v3421_v15 }
 0xeae   : > { %v7342_v44 = vpop.f32.mrb[76].mxu1 }
 0xeaf   : > { %v3075_v56 = vpop.f32.mrb[77].mxu1  ;;  %3434 = vrot.lane.b32.xlu0 %v7342_v44, %s7952_s26 }
 0xeb0   : > { %v7343_v19 = vpop.f32.mrb[78].mxu1 }
 0xeb1   : > { %3436 = vrot.lane.b32.xlu1 %v7343_v19, %s7952_s26  ;;  %v3078_v10 = vpop.f32.mrb[79].mxu1 }
 0xeb3   : > { %3430 = vrot.lane.b32.xlu0 %v3075_v56, %s7952_s26 }
 0xeb5   : > { %3432 = vrot.lane.b32.xlu1 %v3078_v10, %s7952_s26 }
 0xebe   : > { %v7350_v25 = vpop.f32.mrb[80].mxu1 }
 0xebf   : > { %v3144_v6 = vpop.f32.mrb[81].mxu1  ;;  %v3161_v51 = vmul.f32 %v9494_v58, %v7350_v25 }
 0xec0   : > { %v7351_v8 = vpop.f32.mrb[82].mxu1  ;;  %v3159_v5 = vmul.f32 %v9500_v38, %v3144_v6 }
 0xec1   : > { %v3162_v12 = vmul.f32 %v9497_v18, %v7351_v8  ;;  %v3147_v63 = vpop.f32.mrb[83].mxu1 }
 0xec2   : > { %v3160_v33 = vmul.f32 %v9503_v29, %v3147_v63  ;;  %v10881_v63 = vld [vmem:[#allocation15_spill] sm:$0xff] }
 0xec3   : > { %v3164_v53 = vpack.c.bf16 %v3162_v12, %v3161_v51  ;;  %v3513_v51 = vsel %vm1048_vm3, %v10877_v41, 0  ;;  %v10880_v12 = vld [vmem:[#allocation17_spill] sm:$0xff] }
 0xec4   : > { %v3163_v55 = vpack.c.bf16 %v3160_v33, %v3159_v5  ;;  %v3516_v5 = vsel %vm1048_vm3, %v10881_v63, 0  ;;  %v10882_v33 = vld [vmem:[#allocation20_spill] sm:$0xff] }
 0xec6   : > { %7356 = vmatprep.mubr.msk.bf16.mxu0 %vm385_vm0, %v3163_v55 }
 0xec7   : > { %7357 = vmatmul.mubr.msk.bf16.vlgmr.msra.gmra.mrb[80].mxu0 %vm385_vm0, %v3164_v53 }
 0xec8   : > { %7361 = vmatpush3.bf16.xpose.msra.mxu0 %v3241_v31  ;;  %7364 = vmatprep.mubr.msk.bf16.mxu0 %vm1048_vm3, %v9170_v43  ;;  %v9766_v43 = vpop.permute.xlu1 %3416 }
 0xec9   : > { %7699 = vmatprep.subr.msk.bf16.mxu0 %vm1048_vm3, %v9166_v54  ;;  %v9764_v54 = vpop.permute.xlu0 %3414 }
 0xed0   : > { %7363 = vmatpush3.bf16.xpose.msra.mxu0 %v3244_v0 }
 0xed1   : > { %7384 = vmatprep.subr.msk.bf16.mxu0 %vm8587_vm7, %v10779_v7 }
 0xed7   : > { %7365 = vmatmul.mubr.msk.bf16.vlgmr.msra.gmra.mrb[84].mxu0 %vm1048_vm3, %v9173_v20 }
 0xed8   : > { %7385 = vmatpush3.bf16.msk.msra.mxu0 %vm8587_vm7, %v10779_v7  ;;  %vm10883_vm7 = vcmask 785408  }
 0xed9   : > { %7386 = vmatprep.subr.msk.bf16.mxu0 %vm8603_vm9, %v10779_v7 }
 0xedc   : > { %7387 = vmatpush3.bf16.msk.msra.mxu0 %vm8603_vm9, %v10779_v7  ;;  %vm10884_vm9 = vmmov %vm10883_vm7 }
 0xedd   : > { %7702 = vmatprep.subr.msk.bf16.mxu0 %vm1048_vm3, %v9204_v1 }
 0xf21   : > { %v3435_v20 = vpop.permute.xlu0 %3434 }
 0xf22   : > { %v3492_v28 = vsel %vm2261_vm4, %v3488_v42, %v3435_v20 }
 0xf23   : > { %v3437_v17 = vpop.permute.xlu1 %3436 }
 0xf24   : > { %v3493_v46 = vsel %vm2261_vm4, %v3489_v27, %v3437_v17 }
 0xf25   : > { %v9796_v41 = vpop.permute.xlu0 %3430 }
 0xf27   : > { %v9798_v53 = vpop.permute.xlu1 %3432 }
 0xf9a   : > { %v7358_v61 = vpop.f32.mrb[80].mxu0 }
 0xf9b   : > { %v3211_v4 = vpop.f32.mrb[81].mxu0  ;;  %3450 = vrot.lane.b32.xlu0 %v7358_v61, %s7951_s20 }
 0xf9c   : > { %v7359_v2 = vpop.f32.mrb[82].mxu0 }
 0xf9d   : > { %3452 = vrot.lane.b32.xlu1 %v7359_v2, %s7951_s20  ;;  %v3214_v37 = vpop.f32.mrb[83].mxu0 }
 0xf9f   : > { %3446 = vrot.lane.b32.xlu0 %v3211_v4, %s7951_s20 }
 0xfa1   : > { %3448 = vrot.lane.b32.xlu1 %v3214_v37, %s7951_s20 }
 0xfaa   : > { %v7366_v15 = vpop.f32.mrb[84].mxu0 }
 0xfab   : > { %v3280_v44 = vpop.f32.mrb[85].mxu0  ;;  %v3297_v42 = vmul.f32 %v9494_v58, %v7366_v15 }
 0xfac   : > { %v7367_v56 = vpop.f32.mrb[86].mxu0  ;;  %v3295_v10 = vmul.f32 %v9500_v38, %v3280_v44 }
 0xfad   : > { %v3298_v19 = vmul.f32 %v9497_v18, %v7367_v56  ;;  %v3283_v27 = vpop.f32.mrb[87].mxu0 }
 0xfae   : > { %v3296_v25 = vmul.f32 %v9503_v29, %v3283_v27 }
 0xfaf   : > { %v3300_v6 = vpack.c.bf16 %v3298_v19, %v3297_v42  ;;  %v3649_v42 = vsel %vm1048_vm3, %v9204_v1, 0  ;;  %v3652_v19 = vsel %vm1048_vm3, %v9207_v32, 0  ;;  %v10885_v1 = vmov 0.0  }
 0xfb0   : > { %v3299_v8 = vpack.c.bf16 %v3296_v25, %v3295_v10 }
 0xfb2   : > { %7372 = vmatprep.mubr.msk.bf16.mxu1 %vm385_vm0, %v3299_v8  ;;  %v3474_v8 = vsel %vm1048_vm3, %v9580_v60, %v9660_v62 }
 0xfb3   : > { %7373 = vmatmul.mubr.msk.bf16.vlgmr.msra.gmra.mrb[84].mxu1 %vm385_vm0, %v3300_v6 }
 0xfb4   : > { %7377 = vmatpush3.bf16.xpose.msra.mxu1 %v3513_v51  ;;  %7380 = vmatprep.mubr.msk.bf16.mxu1 %vm1048_vm3, %v10880_v12  ;;  %v3478_v12 = vsel %vm385_vm0, %v3474_v8, %v9692_v30 }
 0xfb5   : > { %7701 = vmatprep.subr.msk.bf16.mxu1 %vm1048_vm3, %v10881_v63 }
 0xfbc   : > { %7379 = vmatpush3.bf16.xpose.msra.mxu1 %v3516_v5 }
 0xfbd   : > { %7400 = vmatprep.subr.bf16.mxu1 %v9238_v24 }
 0xfc3   : > { %7381 = vmatmul.mubr.msk.bf16.vlgmr.msra.gmra.mrb[88].mxu1 %vm1048_vm3, %v10882_v33  ;;  %v3475_v33 = vsel %vm1048_vm3, %v9582_v26, %v9662_v16 }
 0xfc4   : > { %7401 = vmatpush3.bf16.msra.mxu1 %v9238_v24  ;;  %v3479_v60 = vsel %vm385_vm0, %v3475_v33, %v9694_v36 }
 0xfc5   : > { %7402 = vmatprep.subr.bf16.mxu1 %v9241_v21  ;;  %v3483_v26 = vsel %vm2251_vm1, %v3479_v60, %v9726_v50 }
 0xfc8   : > { %7403 = vmatpush3.bf16.msra.mxu1 %v9241_v21 }
 0xfc9   : > { %7704 = vmatprep.subr.msk.bf16.mxu1 %vm1048_vm3, %v9274_v47 }
0x100d   : > { %v3451_v55 = vpop.permute.xlu0 %3450 }
0x100e   : > { %v3496_v31 = vsel %vm10883_vm7, %v3492_v28, %v3451_v55  ;;  %v3482_v55 = vsel %vm2251_vm1, %v3478_v12, %v9724_v40 }
0x100f   : > { %v3453_v0 = vpop.permute.xlu1 %3452 }
0x1010   : > { %v3497_v3 = vsel %vm10884_vm9, %v3493_v46, %v3453_v0 }
0x1013   : > { %v3449_v25 = vpop.permute.xlu1 %3448 }
0x1086   : > { %v7374_v39 = vpop.f32.mrb[84].mxu1 }
0x1087   : > { %v3347_v20 = vpop.f32.mrb[85].mxu1  ;;  %3466 = vrot.lane.b32.xlu0 %v7374_v39, %s7949_s9 }
0x1088   : > { %v7375_v24 = vpop.f32.mrb[86].mxu1 }
0x1089   : > { %3468 = vrot.lane.b32.xlu1 %v7375_v24, %s7949_s9  ;;  %v3350_v21 = vpop.f32.mrb[87].mxu1 }
0x108b   : > { %3462 = vrot.lane.b32.xlu0 %v3347_v20, %s7949_s9 }
0x108d   : > { %3464 = vrot.lane.b32.xlu1 %v3350_v21, %s7949_s9 }
0x1096   : > { %v7382_v17 = vpop.f32.mrb[88].mxu1 }
0x1097   : > { %v3552_v61 = vpop.f32.mrb[89].mxu1  ;;  %v3569_v28 = vmul.f32 %v9494_v58, %v7382_v17 }
0x1098   : > { %v7383_v4 = vpop.f32.mrb[90].mxu1  ;;  %v3567_v37 = vmul.f32 %v9500_v38, %v3552_v61 }
0x1099   : > { %v3570_v2 = vmul.f32 %v9497_v18, %v7383_v4  ;;  %v3555_v46 = vpop.f32.mrb[91].mxu1 }
0x109a   : > { %v3568_v15 = vmul.f32 %v9503_v29, %v3555_v46 }
0x109b   : > { %v3572_v44 = vpack.c.bf16 %v3570_v2, %v3569_v28 }
0x109c   : > { %v3571_v56 = vpack.c.bf16 %v3568_v15, %v3567_v37 }
0x109e   : > { %7388 = vmatprep.mubr.msk.bf16.mxu0 %vm385_vm0, %v3571_v56 }
0x109f   : > { %7389 = vmatmul.mubr.msk.bf16.vlgmr.msra.gmra.mrb[88].mxu0 %vm385_vm0, %v3572_v44 }
0x10a0   : > { %7393 = vmatpush3.bf16.xpose.msra.mxu0 %v3649_v42  ;;  %7396 = vmatprep.mubr.msk.bf16.mxu0 %vm1048_vm3, %v9232_v13  ;;  %v6787_v13 = vsel %vm5964_vm8, 1.0, %v10885_v1  ;;  %vm10886_vm8 = vmmov %vm10883_vm7 }
0x10a1   : > { %7703 = vmatprep.subr.msk.bf16.mxu0 %vm1048_vm3, %v9207_v32  ;;  %v6788_v32 = vsel %vm5965_vm10, 1.0, %v10885_v1  ;;  %v5976_v27 = vsub.f32 1.0, %v6787_v13  ;;  %vm10887_vm10 = vmmov %vm10883_vm7 }
0x10a2   : > { %v5977_v10 = vsub.f32 1.0, %v6788_v32 }
0x10a3   : > { %v5980_v51 = vmul.f32 %v5976_v27, %v9539_v9  ;;  %v3486_v9 = vsel %vm2256_vm2, %v3482_v55, %v9764_v54 }
0x10a4   : > { %v5981_v39 = vmul.f32 %v5977_v10, %v9549_v48  ;;  %v3490_v16 = vsel %vm2261_vm4, %v3486_v9, %v9796_v41  ;;  %v3487_v48 = vsel %vm2256_vm2, %v3483_v26, %v9766_v43  ;;  %v3787_v26 = vsel %vm1048_vm3, %v9274_v47, 0  ;;  %v10894_v47 = vld [vmem:[#allocation50_spill] sm:$0xff] }
0x10a8   : > { %7395 = vmatpush3.bf16.xpose.msra.mxu0 %v3652_v19 }
0x10a9   : > { %7416 = vmatprep.subr.bf16.mxu0 %v9282_v59 }
0x10af   : > { %7397 = vmatmul.mubr.msk.bf16.vlgmr.msra.gmra.mrb[92].mxu0 %vm1048_vm3, %v9234_v35  ;;  %v6785_v35 = vsel %vm5962_vm13, 1.0, %v10885_v1 }
0x10b0   : > { %7417 = vmatpush3.bf16.msra.mxu0 %v9282_v59  ;;  %v3447_v59 = vpop.permute.xlu0 %3446  ;;  %v5974_v6 = vsub.f32 1.0, %v6785_v35 }
0x10b1   : > { %7418 = vmatprep.subr.bf16.mxu0 %v9284_v23  ;;  %v3494_v36 = vsel %vm10886_vm8, %v3490_v16, %v3447_v59  ;;  %v3790_v16 = vsel %vm1048_vm3, %v9276_v52, 0 }
0x10b2   : > { %v5978_v20 = vmul.f32 %v5974_v6, %v9557_v49  ;;  %v3491_v49 = vsel %vm2261_vm4, %v3487_v48, %v9798_v53  ;;  %v10893_v48 = vld [vmem:[#allocation49_spill] sm:$0xff] }
0x10b3   : > { %v3495_v17 = vsel %vm10887_vm10, %v3491_v49, %v3449_v25 }
0x10b4   : > { %7419 = vmatpush3.bf16.msra.mxu0 %v9284_v23  ;;  %v6786_v23 = vsel %vm5963_vm14, 1.0, %v10885_v1 }
0x10b5   : > { %7706 = vmatprep.subr.msk.bf16.mxu0 %vm1048_vm3, %v9286_v11  ;;  %v5975_v5 = vsub.f32 1.0, %v6786_v23 }
0x10b7   : > { %v5979_v21 = vmul.f32 %v5975_v5, %v9568_v45 }
0x10f9   : > { %v3467_v63 = vpop.permute.xlu0 %3466 }
0x10fa   : > { %v3500_v0 = vsel %vm2271_vm6, %v3496_v31, %v3467_v63 }
0x10fb   : > { %v5984_v62 = vsub.f32 %v3500_v0, %v5980_v51  ;;  %v3469_v30 = vpop.permute.xlu1 %3468 }
0x10fc   : > { %v3501_v40 = vsel %vm2271_vm6, %v3497_v3, %v3469_v30 }
0x10fd   : > { %v5988_v31 = vmul.f32 0.5, %v5984_v62  ;;  %v5985_v24 = vsub.f32 %v3501_v40, %v5981_v39  ;;  %v3463_v54 = vpop.permute.xlu0 %3462  ;;  %v10892_v40 = vld [vmem:[#allocation45_spill] sm:$0xff] }
0x10fe   : > { %v3498_v50 = vsel %vm2271_vm6, %v3494_v36, %v3463_v54 }
0x10ff   : > { %v5992_v41 = vadd.f32 %v5988_v31, %v5980_v51  ;;  %v5989_v61 = vmul.f32 0.5, %v5985_v24  ;;  %v5982_v3 = vsub.f32 %v3498_v50, %v5978_v20  ;;  %v3465_v4 = vpop.permute.xlu1 %3464 }
0x1100   : > { %v3499_v43 = vsel %vm2271_vm6, %v3495_v17, %v3465_v4  ;;  %v3923_v4 = vsel %vm1048_vm3, %v9286_v11, 0  ;;  %v10900_v11 = vld [vmem:[#allocation56_spill] sm:$0xff] }
0x1101   : > { %vm5996_vm13 = vcmp.ge.f32.partialorder %v5992_v41, 0.5  ;;  %v5993_v28 = vadd.f32 %v5989_v61, %v5981_v39  ;;  %v5986_v2 = vmul.f32 0.5, %v5982_v3  ;;  %v5983_v46 = vsub.f32 %v3499_v43, %v5979_v21  ;;  %v10895_v43 = vld [vmem:[#allocation47_spill] sm:$0xff] }
0x1102   : > { %v6791_v37 = vsel %vm5996_vm13, 1.0, %v10885_v1 }
0x1103   : > { %vm5997_vm14 = vcmp.ge.f32.partialorder %v5993_v28, 0.5  ;;  %v5990_v45 = vadd.f32 %v5986_v2, %v5978_v20  ;;  %v5987_v15 = vmul.f32 0.5, %v5983_v46  ;;  %v6008_v53 = vsub.f32 1.0, %v6791_v37  ;;  %v10897_v46 = vld [vmem:[#allocation54_spill] sm:$0xff]  ;;  %v10898_v37 = vld [vmem:[#allocation48_spill] sm:$0xff] }
0x1104   : > { %v6792_v44 = vsel %vm5997_vm14, 1.0, %v10885_v1  ;;  %vm9874_vm7 = vmpackc.low %vm5997_vm14, %vm5996_vm13 }
0x1105   : > { %vm5994_vm9 = vcmp.ge.f32.partialorder %v5990_v45, 0.5  ;;  %v5991_v42 = vadd.f32 %v5987_v15, %v5979_v21  ;;  %v9878_v19 = vmul.f32 %v6008_v53, %v5992_v41  ;;  %v6009_v13 = vsub.f32 1.0, %v6792_v44 }
0x1106   : > { %v6789_v32 = vsel %vm5994_vm9, 1.0, %v10885_v1 }
0x1107   : > { %vm5995_vm8 = vcmp.ge.f32.partialorder %v5991_v42, 0.5  ;;  %v9881_v27 = vmul.f32 %v6009_v13, %v5993_v28  ;;  %v6006_v35 = vsub.f32 1.0, %v6789_v32  ;;  %v10896_v28 = vld [vmem:[#allocation46_spill] sm:$0xff] }
0x1108   : > { %v6790_v59 = vsel %vm5995_vm8, 1.0, %v10885_v1  ;;  %vm9884_vm10 = vmpackc.low %vm5995_vm8, %vm5994_vm9  ;;  %v3926_v2 = vsel %vm1048_vm3, %v10896_v28, 0 }
0x1109   : > { %v9888_v23 = vmul.f32 %v6006_v35, %v5990_v45  ;;  %v6007_v25 = vsub.f32 1.0, %v6790_v59  ;;  %v10899_v45 = vld [vmem:[#allocation55_spill] sm:$0xff] }
0x110b   : > { %v9890_v6 = vmul.f32 %v6007_v25, %v5991_v42 }
0x1172   : > { %v7390_v8 = vpop.f32.mrb[88].mxu0 }
0x1173   : > { %v9892_v51 = vpop.f32.mrb[89].mxu0 }
0x1174   : > { %v7391_v12 = vpop.f32.mrb[90].mxu0 }
0x1175   : > { %v9894_v63 = vpop.f32.mrb[91].mxu0 }
0x1182   : > { %v7398_v5 = vpop.f32.mrb[92].mxu0 }
0x1183   : > { %v3688_v33 = vpop.f32.mrb[93].mxu0  ;;  %v3705_v0 = vmul.f32 %v9494_v58, %v7398_v5 }
0x1184   : > { %v7399_v55 = vpop.f32.mrb[94].mxu0  ;;  %v3703_v9 = vmul.f32 %v9500_v38, %v3688_v33 }
0x1185   : > { %v3706_v39 = vmul.f32 %v9497_v18, %v7399_v55  ;;  %v3691_v60 = vpop.f32.mrb[95].mxu0 }
0x1186   : > { %v3704_v62 = vmul.f32 %v9503_v29, %v3691_v60 }
0x1187   : > { %v3708_v30 = vpack.c.bf16 %v3706_v39, %v3705_v0 }
0x1188   : > { %v3707_v20 = vpack.c.bf16 %v3704_v62, %v3703_v9  ;;  %v4059_v62 = vsel %vm1048_vm3, %v10894_v47, 0 }
0x118a   : > { %7404 = vmatprep.mubr.msk.bf16.mxu1 %vm385_vm0, %v3707_v20  ;;  %v10905_v20 = vld [vmem:[#allocation61_spill] sm:$0xff] }
0x118b   : > { %7405 = vmatmul.mubr.msk.bf16.vlgmr.msra.gmra.mrb[92].mxu1 %vm385_vm0, %v3708_v30  ;;  %v10901_v30 = vld [vmem:[#allocation52_spill] sm:$0xff] }
0x118c   : > { %7409 = vmatpush3.bf16.xpose.msra.mxu1 %v3787_v26  ;;  %7412 = vmatprep.mubr.msk.bf16.mxu1 %vm1048_vm3, %v9278_v34  ;;  %v10906_v26 = vld [vmem:[#allocation62_spill] sm:$0xff] }
0x118d   : > { %7705 = vmatprep.subr.msk.bf16.mxu1 %vm1048_vm3, %v9276_v52 }
0x1194   : > { %7411 = vmatpush3.bf16.xpose.msra.mxu1 %v3790_v16 }
0x1195   : > { %7432 = vmatprep.subr.bf16.mxu1 %v9294_v14 }
0x119b   : > { %7413 = vmatmul.mubr.msk.bf16.vlgmr.msra.gmra.mrb[96].mxu1 %vm1048_vm3, %v10892_v40 }
0x119c   : > { %7433 = vmatpush3.bf16.msra.mxu1 %v9294_v14 }
0x119d   : > { %7434 = vmatprep.subr.bf16.mxu1 %v10893_v48 }
0x11a0   : > { %7435 = vmatpush3.bf16.msra.mxu1 %v10893_v48 }
0x11a1   : > { %7708 = vmatprep.subr.msk.bf16.mxu1 %vm1048_vm3, %v10894_v47 }
0x125e   : > { %v7406_v34 = vpop.f32.mrb[92].mxu1 }
0x125f   : > { %v3757_v36 = vpop.f32.mrb[93].mxu1  ;;  %4596 = vrot.lane.b32.xlu0 %v7406_v34, %s7956_s15 }
0x1260   : > { %v7407_v52 = vpop.f32.mrb[94].mxu1 }
0x1261   : > { %4598 = vrot.lane.b32.xlu1 %v7407_v52, %s7956_s15  ;;  %v3760_v31 = vpop.f32.mrb[95].mxu1 }
0x1263   : > { %4592 = vrot.lane.b32.xlu0 %v3757_v36, %s7956_s15 }
0x1265   : > { %4594 = vrot.lane.b32.xlu1 %v3760_v31, %s7956_s15 }
0x126e   : > { %v7414_v14 = vpop.f32.mrb[96].mxu1 }
0x126f   : > { %v3826_v24 = vpop.f32.mrb[97].mxu1  ;;  %v3843_v21 = vmul.f32 %v9494_v58, %v7414_v14 }
0x1270   : > { %v7415_v54 = vpop.f32.mrb[98].mxu1  ;;  %v3841_v17 = vmul.f32 %v9500_v38, %v3826_v24 }
0x1271   : > { %v3844_v49 = vmul.f32 %v9497_v18, %v7415_v54  ;;  %v3829_v50 = vpop.f32.mrb[99].mxu1 }
0x1272   : > { %v3842_v41 = vmul.f32 %v9503_v29, %v3829_v50  ;;  %v9982_v50 = vld [vmem:[#allocation5 + $0x10] sm:$0xff] }
0x1273   : > { %v3846_v61 = vpack.c.bf16 %v3844_v49, %v3843_v21 }
0x1274   : > { %v3845_v3 = vpack.c.bf16 %v3842_v41, %v3841_v17  ;;  %v9985_v41 = vld [vmem:[#allocation5 + $0x18] sm:$0xff] }
0x1276   : > { %7420 = vmatprep.mubr.msk.bf16.mxu0 %vm385_vm0, %v3845_v3 }
0x1277   : > { %7421 = vmatmul.mubr.msk.bf16.vlgmr.msra.gmra.mrb[96].mxu0 %vm385_vm0, %v3846_v61 }
0x1278   : > { %7425 = vmatpush3.bf16.xpose.msra.mxu0 %v3923_v4  ;;  %7428 = vmatprep.mubr.msk.bf16.mxu0 %vm1048_vm3, %v10895_v43  ;;  %v9988_v4 = vld [vmem:[#allocation5] sm:$0xff] }
0x1279   : > { %7707 = vmatprep.subr.msk.bf16.mxu0 %vm1048_vm3, %v10896_v28  ;;  %v9991_v28 = vld [vmem:[#allocation5 + $0x8] sm:$0xff] }
0x1280   : > { %7427 = vmatpush3.bf16.xpose.msra.mxu0 %v3926_v2 }
0x1281   : > { %7448 = vmatprep.subr.bf16.mxu0 %v10897_v46 }
0x1287   : > { %7429 = vmatmul.mubr.msk.bf16.vlgmr.msra.gmra.mrb[100].mxu0 %vm1048_vm3, %v10898_v37 }
0x1288   : > { %7449 = vmatpush3.bf16.msra.mxu0 %v10897_v46 }
0x1289   : > { %7450 = vmatprep.subr.bf16.mxu0 %v10899_v45 }
0x128c   : > { %7451 = vmatpush3.bf16.msra.mxu0 %v10899_v45  ;;  %v4195_v45 = vsel %vm1048_vm3, %v10900_v11, 0 }
0x128d   : > { %7710 = vmatprep.subr.msk.bf16.mxu0 %vm1048_vm3, %v10900_v11  ;;  %v10912_v11 = vld [vmem:[#allocation68_spill] sm:$0xff] }
0x12d1   : > { %v4597_v15 = vpop.permute.xlu0 %4596 }
0x12d2   : > { %v4702_v53 = vsel %vm1048_vm3, %v7390_v8, %v4597_v15  ;;  %v10907_v15 = vld [vmem:[#allocation58_spill] sm:$0xff] }
0x12d3   : > { %v4599_v44 = vpop.permute.xlu1 %4598 }
0x12d4   : > { %v4703_v42 = vsel %vm1048_vm3, %v7391_v12, %v4599_v44 }
0x12d5   : > { %v9972_v16 = vpop.permute.xlu0 %4592 }
0x12d7   : > { %v9974_v40 = vpop.permute.xlu1 %4594 }
0x134a   : > { %v7422_v13 = vpop.f32.mrb[96].mxu0 }
0x134b   : > { %v3893_v32 = vpop.f32.mrb[97].mxu0  ;;  %4612 = vrot.lane.b32.xlu0 %v7422_v13, %s7955_s13  ;;  %v10910_v13 = vld [vmem:[#allocation59_spill] sm:$0xff] }
0x134c   : > { %v7423_v35 = vpop.f32.mrb[98].mxu0 }
0x134d   : > { %4614 = vrot.lane.b32.xlu1 %v7423_v35, %s7955_s13  ;;  %v3896_v59 = vpop.f32.mrb[99].mxu0 }
0x134f   : > { %4608 = vrot.lane.b32.xlu0 %v3893_v32, %s7955_s13  ;;  %v10911_v32 = vld [vmem:[#allocation67_spill] sm:$0xff] }
0x1351   : > { %4610 = vrot.lane.b32.xlu1 %v3896_v59, %s7955_s13 }
0x135a   : > { %v7430_v25 = vpop.f32.mrb[100].mxu0 }
0x135b   : > { %v3962_v5 = vpop.f32.mrb[101].mxu0  ;;  %v3979_v8 = vmul.f32 %v9494_v58, %v7430_v25  ;;  %v10902_v58 = vld [vmem:[#allocation51_spill] sm:$0xff] }
0x135c   : > { %v7431_v33 = vpop.f32.mrb[102].mxu0  ;;  %v3977_v0 = vmul.f32 %v9500_v38, %v3962_v5  ;;  %v10903_v38 = vld [vmem:[#allocation60_spill] sm:$0xff] }
0x135d   : > { %v3980_v55 = vmul.f32 %v9497_v18, %v7431_v33  ;;  %v3965_v12 = vpop.f32.mrb[103].mxu0  ;;  %v4062_v18 = vsel %vm1048_vm3, %v10902_v58, 0 }
0x135e   : > { %v3978_v39 = vmul.f32 %v9503_v29, %v3965_v12  ;;  %v10904_v29 = vld [vmem:[#allocation53_spill] sm:$0xff] }
0x135f   : > { %v3982_v60 = vpack.c.bf16 %v3980_v55, %v3979_v8 }
0x1360   : > { %v3981_v9 = vpack.c.bf16 %v3978_v39, %v3977_v0 }
0x1362   : > { %7436 = vmatprep.mubr.msk.bf16.mxu1 %vm385_vm0, %v3981_v9 }
0x1363   : > { %7437 = vmatmul.mubr.msk.bf16.vlgmr.msra.gmra.mrb[100].mxu1 %vm385_vm0, %v3982_v60 }
0x1364   : > { %7441 = vmatpush3.bf16.xpose.msra.mxu1 %v4059_v62  ;;  %7444 = vmatprep.mubr.msk.bf16.mxu1 %vm1048_vm3, %v10901_v30 }
0x1365   : > { %7709 = vmatprep.subr.msk.bf16.mxu1 %vm1048_vm3, %v10902_v58 }
0x136c   : > { %7443 = vmatpush3.bf16.xpose.msra.mxu1 %v4062_v18 }
0x136d   : > { %7464 = vmatprep.subr.bf16.mxu1 %v10903_v38 }
0x1373   : > { %7445 = vmatmul.mubr.msk.bf16.vlgmr.msra.gmra.mrb[104].mxu1 %vm1048_vm3, %v10904_v29 }
0x1374   : > { %7465 = vmatpush3.bf16.msra.mxu1 %v10903_v38 }
0x1375   : > { %7466 = vmatprep.subr.bf16.mxu1 %v10905_v20 }
0x1378   : > { %7467 = vmatpush3.bf16.msra.mxu1 %v10905_v20 }
0x1379   : > { %7712 = vmatprep.subr.msk.bf16.mxu1 %vm1048_vm3, %v10906_v26 }
0x13bd   : > { %v4613_v48 = vpop.permute.xlu0 %4612 }
0x13be   : > { %v4706_v47 = vsel %vm385_vm0, %v4702_v53, %v4613_v48  ;;  %v10908_v53 = vld [vmem:[#allocation57_spill] sm:$0xff] }
0x13bf   : > { %v4615_v34 = vpop.permute.xlu1 %4614  ;;  %v4198_v44 = vsel %vm1048_vm3, %v10908_v53, 0 }
0x13c0   : > { %v4707_v36 = vsel %vm385_vm0, %v4703_v42, %v4615_v34  ;;  %v10909_v42 = vld [vmem:[#allocation66_spill] sm:$0xff]  ;;  %v10913_v34 = vld [vmem:[#allocation64_spill] sm:$0xff] }
0x13c1   : > { %v10012_v35 = vpop.permute.xlu0 %4608 }
0x13c3   : > { %v10014_v59 = vpop.permute.xlu1 %4610 }
0x1436   : > { %v7438_v52 = vpop.f32.mrb[100].mxu1 }
0x1437   : > { %v4029_v31 = vpop.f32.mrb[101].mxu1  ;;  %4628 = vrot.lane.b32.xlu0 %v7438_v52, %s7954_s11 }
0x1438   : > { %v7439_v14 = vpop.f32.mrb[102].mxu1 }
0x1439   : > { %4630 = vrot.lane.b32.xlu1 %v7439_v14, %s7954_s11  ;;  %v4032_v24 = vpop.f32.mrb[103].mxu1  ;;  %v10916_v14 = vld [vmem:[#allocation65_spill] sm:$0xff] }
0x143b   : > { %4624 = vrot.lane.b32.xlu0 %v4029_v31, %s7954_s11  ;;  %v10915_v31 = vld [vmem:[#allocation72_spill] sm:$0xff] }
0x143d   : > { %4626 = vrot.lane.b32.xlu1 %v4032_v24, %s7954_s11  ;;  %v10917_v24 = vld [vmem:[#allocation73_spill] sm:$0xff] }
0x1446   : > { %v7446_v54 = vpop.f32.mrb[104].mxu1 }
0x1447   : > { %v4098_v21 = vpop.f32.mrb[105].mxu1  ;;  %v4115_v17 = vmul.f32 %v9982_v50, %v7446_v54 }
0x1448   : > { %v7447_v49 = vpop.f32.mrb[106].mxu1  ;;  %v4113_v43 = vmul.f32 %v9988_v4, %v4098_v21 }
0x1449   : > { %v4116_v61 = vmul.f32 %v9985_v41, %v7447_v49  ;;  %v4101_v3 = vpop.f32.mrb[107].mxu1 }
0x144a   : > { %v4114_v2 = vmul.f32 %v9991_v28, %v4101_v3 }
0x144b   : > { %v4118_v46 = vpack.c.bf16 %v4116_v61, %v4115_v17 }
0x144c   : > { %v4117_v37 = vpack.c.bf16 %v4114_v2, %v4113_v43 }
0x144e   : > { %7452 = vmatprep.mubr.msk.bf16.mxu0 %vm385_vm0, %v4117_v37 }
0x144f   : > { %7453 = vmatmul.mubr.msk.bf16.vlgmr.msra.gmra.mrb[104].mxu0 %vm385_vm0, %v4118_v46 }
0x1450   : > { %7457 = vmatpush3.bf16.xpose.msra.mxu0 %v4195_v45  ;;  %7460 = vmatprep.mubr.msk.bf16.mxu0 %vm1048_vm3, %v10907_v15 }
0x1451   : > { %7711 = vmatprep.subr.msk.bf16.mxu0 %vm1048_vm3, %v10908_v53 }
0x1458   : > { %7459 = vmatpush3.bf16.xpose.msra.mxu0 %v4198_v44 }
0x1459   : > { %7480 = vmatprep.subr.bf16.mxu0 %v10909_v42 }
0x145f   : > { %7461 = vmatmul.mubr.msk.bf16.vlgmr.msra.gmra.mrb[108].mxu0 %vm1048_vm3, %v10910_v13 }
0x1460   : > { %7481 = vmatpush3.bf16.msra.mxu0 %v10909_v42 }
0x1461   : > { %7482 = vmatprep.subr.bf16.mxu0 %v10911_v32 }
0x1464   : > { %7483 = vmatpush3.bf16.msra.mxu0 %v10911_v32 }
0x1465   : > { %7714 = vmatprep.subr.msk.bf16.mxu0 %vm1048_vm3, %v10912_v11 }
0x14a9   : > { %v4629_v25 = vpop.permute.xlu0 %4628 }
0x14aa   : > { %v4710_v5 = vsel %vm2251_vm1, %v4706_v47, %v4629_v25  ;;  %v4331_v47 = vsel %vm1048_vm3, %v10906_v26, 0  ;;  %v10918_v26 = vld [vmem:[#allocation16_spill] sm:$0xff] }
0x14ab   : > { %v4631_v33 = vpop.permute.xlu1 %4630 }
0x14ac   : > { %v4711_v8 = vsel %vm2251_vm1, %v4707_v36, %v4631_v33  ;;  %v10914_v36 = vld [vmem:[#allocation63_spill] sm:$0xff] }
0x14ad   : > { %v4334_v52 = vsel %vm1048_vm3, %v10914_v36, 0  ;;  %v10044_v54 = vpop.permute.xlu0 %4624 }
0x14af   : > { %v10046_v21 = vpop.permute.xlu1 %4626 }
0x1522   : > { %v7454_v55 = vpop.f32.mrb[104].mxu0 }
0x1523   : > { %v4165_v12 = vpop.f32.mrb[105].mxu0  ;;  %4644 = vrot.lane.b32.xlu0 %v7454_v55, %s7953_s28  ;;  %v10919_v55 = vld [vmem:[#allocation70_spill] sm:$0xff] }
0x1524   : > { %v7455_v0 = vpop.f32.mrb[106].mxu0 }
0x1525   : > { %4646 = vrot.lane.b32.xlu1 %v7455_v0, %s7953_s28  ;;  %v4168_v39 = vpop.f32.mrb[107].mxu0 }
0x1527   : > { %4640 = vrot.lane.b32.xlu0 %v4165_v12, %s7953_s28  ;;  %v10920_v12 = vld [vmem:[#allocation69_spill] sm:$0xff] }
0x1528   : > { %v4470_v0 = vsel %vm1048_vm3, %v10920_v12, 0 }
0x1529   : > { %4642 = vrot.lane.b32.xlu1 %v4168_v39, %s7953_s28 }
0x1532   : > { %v7462_v60 = vpop.f32.mrb[108].mxu0 }
0x1533   : > { %v4234_v9 = vpop.f32.mrb[109].mxu0  ;;  %v4251_v30 = vmul.f32 %v9982_v50, %v7462_v60  ;;  %v10922_v60 = vld [vmem:[#allocation71_spill] sm:$0xff] }
0x1534   : > { %v7463_v62 = vpop.f32.mrb[110].mxu0  ;;  %v4249_v38 = vmul.f32 %v9988_v4, %v4234_v9  ;;  %v10924_v9 = vld [vmem:[#allocation74_spill] sm:$0xff] }
0x1535   : > { %v4252_v58 = vmul.f32 %v9985_v41, %v7463_v62  ;;  %v4237_v18 = vpop.f32.mrb[111].mxu0  ;;  %v4875_v39 = vsel %vm1048_vm3, %v10924_v9, 0 }
0x1536   : > { %v4250_v29 = vmul.f32 %v9991_v28, %v4237_v18 }
0x1537   : > { %v4254_v20 = vpack.c.bf16 %v4252_v58, %v4251_v30 }
0x1538   : > { %v4253_v48 = vpack.c.bf16 %v4250_v29, %v4249_v38 }
0x153a   : > { %7468 = vmatprep.mubr.msk.bf16.mxu1 %vm385_vm0, %v4253_v48 }
0x153b   : > { %7469 = vmatmul.mubr.msk.bf16.vlgmr.msra.gmra.mrb[108].mxu1 %vm385_vm0, %v4254_v20 }
0x153c   : > { %7473 = vmatpush3.bf16.xpose.msra.mxu1 %v4331_v47  ;;  %7476 = vmatprep.mubr.msk.bf16.mxu1 %vm1048_vm3, %v10913_v34 }
0x153d   : > { %7713 = vmatprep.subr.msk.bf16.mxu1 %vm1048_vm3, %v10914_v36 }
0x1544   : > { %7475 = vmatpush3.bf16.xpose.msra.mxu1 %v4334_v52 }
0x1545   : > { %7496 = vmatprep.subr.bf16.mxu1 %v10915_v31 }
0x154b   : > { %7477 = vmatmul.mubr.msk.bf16.vlgmr.msra.gmra.mrb[112].mxu1 %vm1048_vm3, %v10916_v14 }
0x154c   : > { %7497 = vmatpush3.bf16.msra.mxu1 %v10915_v31 }
0x154d   : > { %7498 = vmatprep.subr.bf16.mxu1 %v10917_v24 }
0x1550   : > { %7499 = vmatpush3.bf16.msra.mxu1 %v10917_v24  ;;  %v4739_v24 = vsel %vm1048_vm3, %v10918_v26, 0 }
0x1551   : > { %7716 = vmatprep.subr.msk.bf16.mxu1 %vm1048_vm3, %v10918_v26  ;;  %v10930_v26 = vld [vmem:[#allocation80_spill] sm:$0xff] }
0x1595   : > { %v4645_v49 = vpop.permute.xlu0 %4644 }
0x1596   : > { %v10049_v17 = vsel %vm2256_vm2, %v4710_v5, %v4645_v49  ;;  %v10925_v49 = vld [vmem:[#allocation19_spill] sm:$0xff] }
0x1597   : > { %v4647_v61 = vpop.permute.xlu1 %4646 }
0x1598   : > { %v10052_v3 = vsel %vm2256_vm2, %v4711_v8, %v4647_v61  ;;  %v4467_v8 = vsel %vm1048_vm3, %v10912_v11, 0  ;;  %v10926_v61 = vld [vmem:[#allocation18_spill] sm:$0xff]  ;;  %v10932_v11 = vld [vmem:[#allocation75_spill] sm:$0xff] }
0x160e   : > { %v7470_v43 = vpop.f32.mrb[108].mxu1 }
0x160f   : > { %v4301_v2 = vpop.f32.mrb[109].mxu1  ;;  %4660 = vrot.lane.b32.xlu0 %v7470_v43, %s7952_s26  ;;  %v4742_v43 = vsel %vm1048_vm3, %v10926_v61, 0 }
0x1610   : > { %v7471_v46 = vpop.f32.mrb[110].mxu1 }
0x1611   : > { %4662 = vrot.lane.b32.xlu1 %v7471_v46, %s7952_s26  ;;  %v4304_v37 = vpop.f32.mrb[111].mxu1  ;;  %v10928_v46 = vld [vmem:[#allocation21_spill] sm:$0xff] }
0x1613   : > { %4656 = vrot.lane.b32.xlu0 %v4301_v2, %s7952_s26  ;;  %v10927_v2 = vld [vmem:[#allocation78_spill] sm:$0xff] }
0x1615   : > { %4658 = vrot.lane.b32.xlu1 %v4304_v37, %s7952_s26  ;;  %v10929_v37 = vld [vmem:[#allocation79_spill] sm:$0xff] }
0x161e   : > { %v7478_v45 = vpop.f32.mrb[112].mxu1 }
0x161f   : > { %v4370_v15 = vpop.f32.mrb[113].mxu1  ;;  %v4387_v44 = vmul.f32 %v9982_v50, %v7478_v45 }
0x1620   : > { %v7479_v53 = vpop.f32.mrb[114].mxu1  ;;  %v4385_v32 = vmul.f32 %v9988_v4, %v4370_v15 }
0x1621   : > { %v4388_v42 = vmul.f32 %v9985_v41, %v7479_v53  ;;  %v4373_v13 = vpop.f32.mrb[115].mxu1 }
0x1622   : > { %v4386_v25 = vmul.f32 %v9991_v28, %v4373_v13 }
0x1623   : > { %v4390_v5 = vpack.c.bf16 %v4388_v42, %v4387_v44 }
0x1624   : > { %v4389_v33 = vpack.c.bf16 %v4386_v25, %v4385_v32 }
0x1626   : > { %7484 = vmatprep.mubr.msk.bf16.mxu0 %vm385_vm0, %v4389_v33 }
0x1627   : > { %7485 = vmatmul.mubr.msk.bf16.vlgmr.msra.gmra.mrb[112].mxu0 %vm385_vm0, %v4390_v5 }
0x1628   : > { %7489 = vmatpush3.bf16.xpose.msra.mxu0 %v4467_v8  ;;  %7492 = vmatprep.mubr.msk.bf16.mxu0 %vm1048_vm3, %v10919_v55 }
0x1629   : > { %7715 = vmatprep.subr.msk.bf16.mxu0 %vm1048_vm3, %v10920_v12 }
0x1630   : > { %7491 = vmatpush3.bf16.xpose.msra.mxu0 %v4470_v0 }
0x1631   : > { %7512 = vmatprep.subr.msk.bf16.mxu0 %vm8623_vm12, %v10779_v7 }
0x1637   : > { %7493 = vmatmul.mubr.msk.bf16.vlgmr.msra.gmra.mrb[116].mxu0 %vm1048_vm3, %v10922_v60  ;;  %v10931_v60 = vld [vmem:[#allocation76_spill] sm:$0xff] }
0x1638   : > { %7513 = vmatpush3.bf16.msk.msra.mxu0 %vm8623_vm12, %v10779_v7  ;;  %vm10937_vm12 = vcmask 785408  }
0x1639   : > { %7514 = vmatprep.subr.msk.bf16.mxu0 %vm8636_vm15, %v10779_v7  ;;  %vm10939_vm13 = vmmov %vm10937_vm12 }
0x163a   : > { %vm10940_vm14 = vmmov %vm10937_vm12 }
0x163c   : > { %7515 = vmatpush3.bf16.msk.msra.mxu0 %vm8636_vm15, %v10779_v7  ;;  %vm10938_vm15 = vmmov %vm10937_vm12 }
0x163d   : > { %7718 = vmatprep.subr.msk.bf16.mxu0 %vm1048_vm3, %v10924_v9  ;;  %v10936_v9 = vld [vmem:[#allocation86_spill] sm:$0xff] }
0x16fa   : > { %v7486_v62 = vpop.f32.mrb[112].mxu0 }
0x16fb   : > { %v4437_v30 = vpop.f32.mrb[113].mxu0  ;;  %4676 = vrot.lane.b32.xlu0 %v7486_v62, %s7951_s20  ;;  %v4878_v62 = vsel %vm1048_vm3, %v10932_v11, 0 }
0x16fc   : > { %v7487_v58 = vpop.f32.mrb[114].mxu0 }
0x16fd   : > { %4678 = vrot.lane.b32.xlu1 %v7487_v58, %s7951_s20  ;;  %v4440_v18 = vpop.f32.mrb[115].mxu0  ;;  %v10934_v58 = vld [vmem:[#allocation77_spill] sm:$0xff] }
0x16ff   : > { %4672 = vrot.lane.b32.xlu0 %v4437_v30, %s7951_s20  ;;  %v10933_v30 = vld [vmem:[#allocation84_spill] sm:$0xff] }
0x1701   : > { %4674 = vrot.lane.b32.xlu1 %v4440_v18, %s7951_s20  ;;  %v10935_v18 = vld [vmem:[#allocation85_spill] sm:$0xff] }
0x170a   : > { %v7494_v38 = vpop.f32.mrb[116].mxu0 }
0x170b   : > { %v4506_v29 = vpop.f32.mrb[117].mxu0  ;;  %v4523_v48 = vmul.f32 %v9982_v50, %v7494_v38  ;;  %v4641_v38 = vpop.permute.xlu0 %4640 }
0x170c   : > { %v7495_v20 = vpop.f32.mrb[118].mxu0  ;;  %v4521_v36 = vmul.f32 %v9988_v4, %v4506_v29  ;;  %v4643_v29 = vpop.permute.xlu1 %4642 }
0x170d   : > { %v4524_v47 = vmul.f32 %v9985_v41, %v7495_v20  ;;  %v4509_v34 = vpop.f32.mrb[119].mxu0 }
0x170e   : > { %v4522_v52 = vmul.f32 %v9991_v28, %v4509_v34 }
0x170f   : > { %v4526_v31 = vpack.c.bf16 %v4524_v47, %v4523_v48  ;;  %v4661_v20 = vpop.permute.xlu0 %4660 }
0x1710   : > { %v4525_v14 = vpack.c.bf16 %v4522_v52, %v4521_v36  ;;  %v4663_v48 = vpop.permute.xlu1 %4662 }
0x1712   : > { %7500 = vmatprep.mubr.msk.bf16.mxu1 %vm385_vm0, %v4525_v14 }
0x1713   : > { %7501 = vmatmul.mubr.msk.bf16.vlgmr.msra.gmra.mrb[116].mxu1 %vm385_vm0, %v4526_v31  ;;  %v4657_v47 = vpop.permute.xlu0 %4656 }
0x1714   : > { %7505 = vmatpush3.bf16.xpose.msra.mxu1 %v4739_v24  ;;  %7508 = vmatprep.mubr.msk.bf16.mxu1 %vm1048_vm3, %v10925_v49  ;;  %v4659_v34 = vpop.permute.xlu1 %4658  ;;  %v4700_v24 = vsel %vm1048_vm3, %v9892_v51, %v9972_v16  ;;  %v4718_v49 = vsel %vm2261_vm4, %v10049_v17, %v4661_v20 }
0x1715   : > { %7717 = vmatprep.subr.msk.bf16.mxu1 %vm1048_vm3, %v10926_v61  ;;  %v4704_v61 = vsel %vm385_vm0, %v4700_v24, %v10012_v35  ;;  %v5013_v24 = vsel %vm1048_vm3, %v10930_v26, 0 }
0x171c   : > { %7507 = vmatpush3.bf16.xpose.msra.mxu1 %v4742_v43 }
0x171d   : > { %7528 = vmatprep.subr.bf16.mxu1 %v10927_v2 }
0x1723   : > { %7509 = vmatmul.mubr.msk.bf16.vlgmr.msra.gmra.mrb[120].mxu1 %vm1048_vm3, %v10928_v46  ;;  %v4701_v46 = vsel %vm1048_vm3, %v9894_v63, %v9974_v40 }
0x1724   : > { %7529 = vmatpush3.bf16.msra.mxu1 %v10927_v2  ;;  %v4705_v16 = vsel %vm385_vm0, %v4701_v46, %v10014_v59  ;;  %v10948_v46 = vld [vmem:[#allocation83_spill] sm:$0xff] }
0x1725   : > { %7530 = vmatprep.subr.bf16.mxu1 %v10929_v37  ;;  %v4709_v63 = vsel %vm2251_vm1, %v4705_v16, %v10046_v21 }
0x1728   : > { %7531 = vmatpush3.bf16.msra.mxu1 %v10929_v37  ;;  %v4708_v37 = vsel %vm2251_vm1, %v4704_v61, %v10044_v54  ;;  %v10946_v61 = vld [vmem:[#allocation81_spill] sm:$0xff] }
0x1729   : > { %7720 = vmatprep.subr.msk.bf16.mxu1 %vm1048_vm3, %v10930_v26  ;;  %v4712_v35 = vsel %vm2256_vm2, %v4708_v37, %v4641_v38  ;;  %v10949_v37 = vld [vmem:[#allocation91_spill] sm:$0xff]  ;;  %v10950_v26 = vld [vmem:[#allocation92_spill] sm:$0xff] }
0x172a   : > { %v4716_v40 = vsel %vm2261_vm4, %v4712_v35, %v4657_v47 }
0x176d   : > { %v4677_v36 = vpop.permute.xlu0 %4676 }
0x176e   : > { %v4722_v43 = vsel %vm10937_vm12, %v4718_v49, %v4677_v36  ;;  %v10945_v49 = vld [vmem:[#allocation82_spill] sm:$0xff] }
0x176f   : > { %v4679_v52 = vpop.permute.xlu1 %4678 }
0x1771   : > { %v4673_v31 = vpop.permute.xlu0 %4672 }
0x1773   : > { %v4675_v14 = vpop.permute.xlu1 %4674 }
0x17e6   : > { %v7502_v45 = vpop.f32.mrb[116].mxu1 }
0x17e7   : > { %v4573_v15 = vpop.f32.mrb[117].mxu1  ;;  %4692 = vrot.lane.b32.xlu0 %v7502_v45, %s7949_s9  ;;  %v4719_v45 = vsel %vm2261_vm4, %v10052_v3, %v4663_v48  ;;  %v4713_v3 = vsel %vm2256_vm2, %v4709_v63, %v4643_v29 }
0x17e8   : > { %v7503_v53 = vpop.f32.mrb[118].mxu1  ;;  %v4723_v17 = vsel %vm10938_vm15, %v4719_v45, %v4679_v52 }
0x17e9   : > { %4694 = vrot.lane.b32.xlu1 %v7503_v53, %s7949_s9  ;;  %v4576_v44 = vpop.f32.mrb[119].mxu1 }
0x17eb   : > { %4688 = vrot.lane.b32.xlu0 %v4573_v15, %s7949_s9 }
0x17ed   : > { %4690 = vrot.lane.b32.xlu1 %v4576_v44, %s7949_s9  ;;  %v4720_v44 = vsel %vm10939_vm13, %v4716_v40, %v4673_v31 }
0x17f6   : > { %v7510_v42 = vpop.f32.mrb[120].mxu1 }
0x17f7   : > { %v4778_v13 = vpop.f32.mrb[121].mxu1  ;;  %v4795_v25 = vmul.f32 %v9982_v50, %v7510_v42 }
0x17f8   : > { %v7511_v32 = vpop.f32.mrb[122].mxu1  ;;  %v4793_v8 = vmul.f32 %v9988_v4, %v4778_v13 }
0x17f9   : > { %v4796_v5 = vmul.f32 %v9985_v41, %v7511_v32  ;;  %v4781_v33 = vpop.f32.mrb[123].mxu1  ;;  %v4717_v32 = vsel %vm2261_vm4, %v4713_v3, %v4659_v34 }
0x17fa   : > { %v4794_v55 = vmul.f32 %v9991_v28, %v4781_v33 }
0x17fb   : > { %v4798_v12 = vpack.c.bf16 %v4796_v5, %v4795_v25  ;;  %v4721_v5 = vsel %vm10940_vm14, %v4717_v32, %v4675_v14  ;;  %v10951_v32 = vld [vmem:[#allocation88_spill] sm:$0xff] }
0x17fc   : > { %v4797_v0 = vpack.c.bf16 %v4794_v55, %v4793_v8 }
0x17fe   : > { %7516 = vmatprep.mubr.msk.bf16.mxu0 %vm385_vm0, %v4797_v0 }
0x17ff   : > { %7517 = vmatmul.mubr.msk.bf16.vlgmr.msra.gmra.mrb[120].mxu0 %vm385_vm0, %v4798_v12 }
0x1800   : > { %7521 = vmatpush3.bf16.xpose.msra.mxu0 %v4875_v39  ;;  %7524 = vmatprep.mubr.msk.bf16.mxu0 %vm1048_vm3, %v10931_v60 }
0x1801   : > { %7719 = vmatprep.subr.msk.bf16.mxu0 %vm1048_vm3, %v10932_v11 }
0x1808   : > { %7523 = vmatpush3.bf16.xpose.msra.mxu0 %v4878_v62 }
0x1809   : > { %7544 = vmatprep.subr.bf16.mxu0 %v10933_v30 }
0x180f   : > { %7525 = vmatmul.mubr.msk.bf16.vlgmr.msra.gmra.mrb[124].mxu0 %vm1048_vm3, %v10934_v58 }
0x1810   : > { %7545 = vmatpush3.bf16.msra.mxu0 %v10933_v30 }
0x1811   : > { %7546 = vmatprep.subr.bf16.mxu0 %v10935_v18 }
0x1814   : > { %7547 = vmatpush3.bf16.msra.mxu0 %v10935_v18 }
0x1815   : > { %7722 = vmatprep.subr.msk.bf16.mxu0 %vm1048_vm3, %v10936_v9 }
0x1859   : > { %v4693_v2 = vpop.permute.xlu0 %4692 }
0x185a   : > { %v4726_v51 = vsel %vm2271_vm6, %v4722_v43, %v4693_v2  ;;  %v5016_v43 = vsel %vm1048_vm3, %v10946_v61, 0  ;;  %v10947_v2 = vld [vmem:[#allocation90_spill] sm:$0xff] }
0x185b   : > { %v6016_v15 = vsub.f32 %v4726_v51, %v9878_v19  ;;  %v4695_v53 = vpop.permute.xlu1 %4694 }
0x185c   : > { %v4727_v54 = vsel %vm2271_vm6, %v4723_v17, %v4695_v53 }
0x185d   : > { %v6020_v42 = vmul.f32 0.5, %v6016_v15  ;;  %v6017_v59 = vsub.f32 %v4727_v54, %v9881_v27  ;;  %v4689_v13 = vpop.permute.xlu0 %4688 }
0x185e   : > { %v4724_v25 = vsel %vm2271_vm6, %v4720_v44, %v4689_v13  ;;  %v5149_v13 = vsel %vm1048_vm3, %v10936_v9, 0  ;;  %v10956_v9 = vld [vmem:[#allocation98_spill] sm:$0xff] }
0x185f   : > { %v10172_v21 = vadd.f32 %v6020_v42, %v9878_v19  ;;  %v6021_v33 = vmul.f32 0.5, %v6017_v59  ;;  %v6014_v8 = vsub.f32 %v4724_v25, %v9888_v23  ;;  %v4691_v55 = vpop.permute.xlu1 %4690  ;;  %v10952_v25 = vld [vmem:[#allocation87_spill] sm:$0xff] }
0x1860   : > { %v4725_v12 = vsel %vm2271_vm6, %v4721_v5, %v4691_v55  ;;  %v5152_v5 = vsel %vm1048_vm3, %v10952_v25, 0  ;;  %v10955_v55 = vld [vmem:[#allocation97_spill] sm:$0xff] }
0x1861   : > { %v10177_v0 = vadd.f32 %v6021_v33, %v9881_v27  ;;  %v6018_v39 = vmul.f32 0.5, %v6014_v8  ;;  %v6015_v60 = vsub.f32 %v4725_v12, %v9890_v6  ;;  %vm6028_vm9 = vcmp.ge.f32.partialorder %v10172_v21, 0.5  ;;  %v10953_v33 = vld [vmem:[#allocation96_spill] sm:$0xff]  ;;  %v10954_v8 = vld [vmem:[#allocation89_spill] sm:$0xff] }
0x1863   : > { %vm6029_vm8 = vcmp.ge.f32.partialorder %v10177_v0, 0.5  ;;  %v10183_v11 = vadd.f32 %v6018_v39, %v9888_v23  ;;  %v6019_v19 = vmul.f32 0.5, %v6015_v60 }
0x1864   : > { %vm10189_vm12 = vmpackc.low %vm6029_vm8, %vm6028_vm9 }
0x1865   : > { %v10194_v27 = vadd.f32 %v6019_v19, %v9890_v6  ;;  %vm6026_vm15 = vcmp.ge.f32.partialorder %v10183_v11, 0.5 }
0x1867   : > { %vm6027_vm13 = vcmp.ge.f32.partialorder %v10194_v27, 0.5 }
0x1868   : > { %vm10202_vm14 = vmpackc.low %vm6027_vm13, %vm6026_vm15 }
0x18d2   : > { %v10206_v30 = vpop.f32.mrb[120].mxu0 }
0x18d3   : > { %v10208_v58 = vpop.f32.mrb[121].mxu0 }
0x18d4   : > { %v10210_v18 = vpop.f32.mrb[122].mxu0 }
0x18d5   : > { %v10212_v6 = vpop.f32.mrb[123].mxu0 }
0x18e2   : > { %v7526_v38 = vpop.f32.mrb[124].mxu0 }
0x18e3   : > { %v4914_v29 = vpop.f32.mrb[125].mxu0  ;;  %v4931_v48 = vmul.f32 %v9982_v50, %v7526_v38 }
0x18e4   : > { %v7527_v20 = vpop.f32.mrb[126].mxu0  ;;  %v4929_v36 = vmul.f32 %v9988_v4, %v4914_v29 }
0x18e5   : > { %v4932_v47 = vmul.f32 %v9985_v41, %v7527_v20  ;;  %v4917_v34 = vpop.f32.mrb[127].mxu0 }
0x18e6   : > { %v4930_v52 = vmul.f32 %v9991_v28, %v4917_v34 }
0x18e7   : > { %v4934_v31 = vpack.c.bf16 %v4932_v47, %v4931_v48 }
0x18e8   : > { %v4933_v14 = vpack.c.bf16 %v4930_v52, %v4929_v36 }
0x18ea   : > { %7532 = vmatprep.mubr.msk.bf16.mxu1 %vm385_vm0, %v4933_v14 }
0x18eb   : > { %7533 = vmatmul.mubr.msk.bf16.vlgmr.msra.gmra.mrb[124].mxu1 %vm385_vm0, %v4934_v31 }
0x18ec   : > { %7537 = vmatpush3.bf16.xpose.msra.mxu1 %v5013_v24  ;;  %7540 = vmatprep.mubr.msk.bf16.mxu1 %vm1048_vm3, %v10945_v49  ;;  %v5285_v24 = vsel %vm1048_vm3, %v10950_v26, 0  ;;  %v10957_v49 = vld [vmem:[#allocation94_spill] sm:$0xff] }
0x18ed   : > { %7721 = vmatprep.subr.msk.bf16.mxu1 %vm1048_vm3, %v10946_v61  ;;  %v10958_v61 = vld [vmem:[#allocation93_spill] sm:$0xff] }
0x18f4   : > { %7539 = vmatpush3.bf16.xpose.msra.mxu1 %v5016_v43  ;;  %v5288_v43 = vsel %vm1048_vm3, %v10958_v61, 0 }
0x18f5   : > { %7560 = vmatprep.subr.bf16.mxu1 %v10947_v2 }
0x18fb   : > { %7541 = vmatmul.mubr.msk.bf16.vlgmr.msra.gmra.mrb[128].mxu1 %vm1048_vm3, %v10948_v46  ;;  %v10960_v46 = vld [vmem:[#allocation95_spill] sm:$0xff] }
0x18fc   : > { %7561 = vmatpush3.bf16.msra.mxu1 %v10947_v2  ;;  %v10959_v2 = vld [vmem:[#allocation102_spill] sm:$0xff] }
0x18fd   : > { %7562 = vmatprep.subr.bf16.mxu1 %v10949_v37 }
0x1900   : > { %7563 = vmatpush3.bf16.msra.mxu1 %v10949_v37  ;;  %v10961_v37 = vld [vmem:[#allocation103_spill] sm:$0xff] }
0x1901   : > { %7724 = vmatprep.subr.msk.bf16.mxu1 %vm1048_vm3, %v10950_v26  ;;  %v10962_v26 = vld [vmem:[#allocation104_spill] sm:$0xff] }
0x19be   : > { %v7534_v45 = vpop.f32.mrb[124].mxu1 }
0x19bf   : > { %5822 = vrot.lane.b32.xlu0 %v7534_v45, %s7956_s15  ;;  %v4983_v51 = vpop.f32.mrb[125].mxu1 }
0x19c0   : > { %v7535_v16 = vpop.f32.mrb[126].mxu1 }
0x19c1   : > { %5824 = vrot.lane.b32.xlu1 %v7535_v16, %s7956_s15  ;;  %v4986_v35 = vpop.f32.mrb[127].mxu1 }
0x19c3   : > { %5818 = vrot.lane.b32.xlu0 %v4983_v51, %s7956_s15 }
0x19c5   : > { %5820 = vrot.lane.b32.xlu1 %v4986_v35, %s7956_s15 }
0x19ce   : > { %v7542_v17 = vpop.f32.mrb[128].mxu1 }
0x19cf   : > { %v5052_v15 = vpop.f32.mrb[129].mxu1  ;;  %v5069_v63 = vmul.f32 %v9982_v50, %v7542_v17 }
0x19d0   : > { %v7543_v53 = vpop.f32.mrb[130].mxu1  ;;  %v5067_v3 = vmul.f32 %v9988_v4, %v5052_v15 }
0x19d1   : > { %v5070_v40 = vmul.f32 %v9985_v41, %v7543_v53  ;;  %v5055_v54 = vpop.f32.mrb[131].mxu1 }
0x19d2   : > { %v5068_v44 = vmul.f32 %v9991_v28, %v5055_v54 }
0x19d3   : > { %v5072_v42 = vpack.c.bf16 %v5070_v40, %v5069_v63 }
0x19d4   : > { %v5071_v59 = vpack.c.bf16 %v5068_v44, %v5067_v3 }
0x19d6   : > { %7548 = vmatprep.mubr.msk.bf16.mxu0 %vm385_vm0, %v5071_v59 }
0x19d7   : > { %7549 = vmatmul.mubr.msk.bf16.vlgmr.msra.gmra.mrb[128].mxu0 %vm385_vm0, %v5072_v42 }
0x19d8   : > { %7553 = vmatpush3.bf16.xpose.msra.mxu0 %v5149_v13  ;;  %7556 = vmatprep.mubr.msk.bf16.mxu0 %vm1048_vm3, %v10951_v32  ;;  %v5421_v13 = vsel %vm1048_vm3, %v10956_v9, 0  ;;  %v10963_v32 = vld [vmem:[#allocation100_spill] sm:$0xff] }
0x19d9   : > { %7723 = vmatprep.subr.msk.bf16.mxu0 %vm1048_vm3, %v10952_v25  ;;  %v10964_v25 = vld [vmem:[#allocation99_spill] sm:$0xff] }
0x19e0   : > { %7555 = vmatpush3.bf16.xpose.msra.mxu0 %v5152_v5  ;;  %v5424_v5 = vsel %vm1048_vm3, %v10964_v25, 0 }
0x19e1   : > { %7576 = vmatprep.subr.bf16.mxu0 %v10953_v33 }
0x19e7   : > { %7557 = vmatmul.mubr.msk.bf16.vlgmr.msra.gmra.mrb[132].mxu0 %vm1048_vm3, %v10954_v8  ;;  %v10966_v8 = vld [vmem:[#allocation101_spill] sm:$0xff] }
0x19e8   : > { %7577 = vmatpush3.bf16.msra.mxu0 %v10953_v33  ;;  %v10965_v33 = vld [vmem:[#allocation108_spill] sm:$0xff] }
0x19e9   : > { %7578 = vmatprep.subr.bf16.mxu0 %v10955_v55 }
0x19ec   : > { %7579 = vmatpush3.bf16.msra.mxu0 %v10955_v55  ;;  %v10967_v55 = vld [vmem:[#allocation109_spill] sm:$0xff] }
0x19ed   : > { %7726 = vmatprep.subr.msk.bf16.mxu0 %vm1048_vm3, %v10956_v9  ;;  %v10968_v9 = vld [vmem:[#allocation110_spill] sm:$0xff] }
0x1aaa   : > { %v7550_v12 = vpop.f32.mrb[128].mxu0 }
0x1aab   : > { %5838 = vrot.lane.b32.xlu0 %v7550_v12, %s7955_s13  ;;  %v5119_v39 = vpop.f32.mrb[129].mxu0 }
0x1aac   : > { %v7551_v60 = vpop.f32.mrb[130].mxu0 }
0x1aad   : > { %5840 = vrot.lane.b32.xlu1 %v7551_v60, %s7955_s13  ;;  %v5122_v19 = vpop.f32.mrb[131].mxu0 }
0x1aaf   : > { %5834 = vrot.lane.b32.xlu0 %v5119_v39, %s7955_s13 }
0x1ab1   : > { %5836 = vrot.lane.b32.xlu1 %v5122_v19, %s7955_s13 }
0x1aba   : > { %v7558_v38 = vpop.f32.mrb[132].mxu0 }
0x1abb   : > { %v5188_v29 = vpop.f32.mrb[133].mxu0  ;;  %v5205_v48 = vmul.f32 %v9982_v50, %v7558_v38 }
0x1abc   : > { %v7559_v20 = vpop.f32.mrb[134].mxu0  ;;  %v5203_v36 = vmul.f32 %v9988_v4, %v5188_v29 }
0x1abd   : > { %v5206_v47 = vmul.f32 %v9985_v41, %v7559_v20  ;;  %v5191_v34 = vpop.f32.mrb[135].mxu0 }
0x1abe   : > { %v5204_v52 = vmul.f32 %v9991_v28, %v5191_v34 }
0x1abf   : > { %v5208_v31 = vpack.c.bf16 %v5206_v47, %v5205_v48 }
0x1ac0   : > { %v5207_v14 = vpack.c.bf16 %v5204_v52, %v5203_v36 }
0x1ac2   : > { %7564 = vmatprep.mubr.msk.bf16.mxu1 %vm385_vm0, %v5207_v14 }
0x1ac3   : > { %7565 = vmatmul.mubr.msk.bf16.vlgmr.msra.gmra.mrb[132].mxu1 %vm385_vm0, %v5208_v31 }
0x1ac4   : > { %7569 = vmatpush3.bf16.xpose.msra.mxu1 %v5285_v24  ;;  %7572 = vmatprep.mubr.msk.bf16.mxu1 %vm1048_vm3, %v10957_v49  ;;  %v5557_v24 = vsel %vm1048_vm3, %v10962_v26, 0  ;;  %v10969_v49 = vld [vmem:[#allocation106_spill] sm:$0xff] }
0x1ac5   : > { %7725 = vmatprep.subr.msk.bf16.mxu1 %vm1048_vm3, %v10958_v61  ;;  %v10970_v61 = vld [vmem:[#allocation105_spill] sm:$0xff] }
0x1acc   : > { %7571 = vmatpush3.bf16.xpose.msra.mxu1 %v5288_v43  ;;  %v5560_v43 = vsel %vm1048_vm3, %v10970_v61, 0 }
0x1acd   : > { %7592 = vmatprep.subr.bf16.mxu1 %v10959_v2 }
0x1ad3   : > { %7573 = vmatmul.mubr.msk.bf16.vlgmr.msra.gmra.mrb[136].mxu1 %vm1048_vm3, %v10960_v46  ;;  %v10972_v46 = vld [vmem:[#allocation107_spill] sm:$0xff] }
0x1ad4   : > { %7593 = vmatpush3.bf16.msra.mxu1 %v10959_v2  ;;  %v10971_v2 = vld [vmem:[#allocation114_spill] sm:$0xff] }
0x1ad5   : > { %7594 = vmatprep.subr.bf16.mxu1 %v10961_v37 }
0x1ad8   : > { %7595 = vmatpush3.bf16.msra.mxu1 %v10961_v37  ;;  %v10973_v37 = vld [vmem:[#allocation115_spill] sm:$0xff] }
0x1ad9   : > { %7728 = vmatprep.subr.msk.bf16.mxu1 %vm1048_vm3, %v10962_v26 }
0x1b96   : > { %v7566_v45 = vpop.f32.mrb[132].mxu1 }
0x1b97   : > { %5854 = vrot.lane.b32.xlu0 %v7566_v45, %s7954_s11  ;;  %v5255_v51 = vpop.f32.mrb[133].mxu1 }
0x1b98   : > { %v7567_v16 = vpop.f32.mrb[134].mxu1 }
0x1b99   : > { %5856 = vrot.lane.b32.xlu1 %v7567_v16, %s7954_s11  ;;  %v5258_v35 = vpop.f32.mrb[135].mxu1 }
0x1b9b   : > { %5850 = vrot.lane.b32.xlu0 %v5255_v51, %s7954_s11 }
0x1b9d   : > { %5852 = vrot.lane.b32.xlu1 %v5258_v35, %s7954_s11 }
0x1ba6   : > { %v7574_v17 = vpop.f32.mrb[136].mxu1 }
0x1ba7   : > { %v5324_v15 = vpop.f32.mrb[137].mxu1  ;;  %v5341_v63 = vmul.f32 %v9982_v50, %v7574_v17 }
0x1ba8   : > { %v7575_v53 = vpop.f32.mrb[138].mxu1  ;;  %v5339_v3 = vmul.f32 %v9988_v4, %v5324_v15 }
0x1ba9   : > { %v5342_v40 = vmul.f32 %v9985_v41, %v7575_v53  ;;  %v5327_v54 = vpop.f32.mrb[139].mxu1 }
0x1baa   : > { %v5340_v44 = vmul.f32 %v9991_v28, %v5327_v54 }
0x1bab   : > { %v5344_v42 = vpack.c.bf16 %v5342_v40, %v5341_v63 }
0x1bac   : > { %v5343_v59 = vpack.c.bf16 %v5340_v44, %v5339_v3 }
0x1bae   : > { %7580 = vmatprep.mubr.msk.bf16.mxu0 %vm385_vm0, %v5343_v59  ;;  %v10974_v59 = vld [vmem:[#allocation112_spill] sm:$0xff] }
0x1baf   : > { %7581 = vmatmul.mubr.msk.bf16.vlgmr.msra.gmra.mrb[136].mxu0 %vm385_vm0, %v5344_v42  ;;  %v5693_v42 = vsel %vm1048_vm3, %v10968_v9, 0 }
0x1bb0   : > { %7585 = vmatpush3.bf16.xpose.msra.mxu0 %v5421_v13  ;;  %7588 = vmatprep.mubr.msk.bf16.mxu0 %vm1048_vm3, %v10963_v32  ;;  %v10975_v13 = vld [vmem:[#allocation111_spill] sm:$0xff] }
0x1bb1   : > { %7727 = vmatprep.subr.msk.bf16.mxu0 %vm1048_vm3, %v10964_v25  ;;  %v5696_v32 = vsel %vm1048_vm3, %v10975_v13, 0  ;;  %v10976_v25 = vld [vmem:[#allocation113_spill] sm:$0xff] }
0x1bb8   : > { %7587 = vmatpush3.bf16.xpose.msra.mxu0 %v5424_v5 }
0x1bb9   : > { %7608 = vmatprep.subr.bf16.mxu0 %v10965_v33 }
0x1bbf   : > { %7589 = vmatmul.mubr.msk.bf16.vlgmr.msra.gmra.mrb[140].mxu0 %vm1048_vm3, %v10966_v8 }
0x1bc0   : > { %7609 = vmatpush3.bf16.msra.mxu0 %v10965_v33 }
0x1bc1   : > { %7610 = vmatprep.subr.bf16.mxu0 %v10967_v55 }
0x1bc4   : > { %7611 = vmatpush3.bf16.msra.mxu0 %v10967_v55 }
0x1bc5   : > { %7730 = vmatprep.subr.msk.bf16.mxu0 %vm1048_vm3, %v10968_v9 }
0x1c82   : > { %v7582_v12 = vpop.f32.mrb[136].mxu0 }
0x1c83   : > { %5870 = vrot.lane.b32.xlu0 %v7582_v12, %s7953_s28  ;;  %v5391_v39 = vpop.f32.mrb[137].mxu0 }
0x1c84   : > { %v7583_v60 = vpop.f32.mrb[138].mxu0 }
0x1c85   : > { %5872 = vrot.lane.b32.xlu1 %v7583_v60, %s7953_s28  ;;  %v5394_v19 = vpop.f32.mrb[139].mxu0 }
0x1c87   : > { %5866 = vrot.lane.b32.xlu0 %v5391_v39, %s7953_s28 }
0x1c89   : > { %5868 = vrot.lane.b32.xlu1 %v5394_v19, %s7953_s28  ;;  %s6863_s28 = sshll.u32 %s8015_s25, 10 }
0x1c8a   : > { %s10573_s14 = scalar_lea.hbm %s10628_s6, %s6863_s28 }
0x1c92   : > { %v7590_v38 = vpop.f32.mrb[140].mxu0 }
0x1c93   : > { %v5460_v29 = vpop.f32.mrb[141].mxu0  ;;  %v5477_v48 = vmul.f32 %v9982_v50, %v7590_v38 }
0x1c94   : > { %v7591_v20 = vpop.f32.mrb[142].mxu0  ;;  %v5475_v36 = vmul.f32 %v9988_v4, %v5460_v29 }
0x1c95   : > { %v5478_v47 = vmul.f32 %v9985_v41, %v7591_v20  ;;  %v5463_v34 = vpop.f32.mrb[143].mxu0 }
0x1c96   : > { %v5476_v52 = vmul.f32 %v9991_v28, %v5463_v34 }
0x1c97   : > { %v5480_v31 = vpack.c.bf16 %v5478_v47, %v5477_v48 }
0x1c98   : > { %v5479_v14 = vpack.c.bf16 %v5476_v52, %v5475_v36  ;;  %v6074_v36 = vld [vmem:[%s10626_s4] sm:$0xff] }
0x1c9a   : > { %7596 = vmatprep.mubr.msk.bf16.mxu1 %vm385_vm0, %v5479_v14 }
0x1c9b   : > { %7597 = vmatmul.mubr.msk.bf16.vlgmr.msra.gmra.mrb[140].mxu1 %vm385_vm0, %v5480_v31  ;;  %v6075_v31 = vld [vmem:[%s10626_s4 + $0x8] sm:$0xff] }
0x1c9c   : > { %7601 = vmatpush3.bf16.xpose.msra.mxu1 %v5557_v24  ;;  %7604 = vmatprep.mubr.msk.bf16.mxu1 %vm1048_vm3, %v10969_v49  ;;  %v6076_v24 = vld [vmem:[%s10626_s4 + $0x10] sm:$0xff] }
0x1c9d   : > { %7729 = vmatprep.subr.msk.bf16.mxu1 %vm1048_vm3, %v10970_v61  ;;  %v6077_v61 = vld [vmem:[%s10626_s4 + $0x18] sm:$0xff] }
0x1ca4   : > { %7603 = vmatpush3.bf16.xpose.msra.mxu1 %v5560_v43 }
0x1ca5   : > { %7624 = vmatprep.subr.bf16.mxu1 %v10971_v2 }
0x1cab   : > { %7605 = vmatmul.mubr.msk.bf16.vlgmr.msra.gmra.mrb[144].mxu1 %vm1048_vm3, %v10972_v46 }
0x1cac   : > { %7625 = vmatpush3.bf16.msra.mxu1 %v10971_v2 }
0x1cad   : > { %7626 = vmatprep.subr.bf16.mxu1 %v10973_v37 }
0x1cb0   : > { %7627 = vmatpush3.bf16.msra.mxu1 %v10973_v37 }
0x1cb1   : > { %7649 = vmatprep.subr.msk.bf16.mxu1 %vm9884_vm10, %v10779_v7 }
0x1d6e   : > { %v7598_v26 = vpop.f32.mrb[140].mxu1 }
0x1d6f   : > { %5886 = vrot.lane.b32.xlu0 %v7598_v26, %s7952_s26  ;;  %v5527_v45 = vpop.f32.mrb[141].mxu1 }
0x1d70   : > { %v7599_v51 = vpop.f32.mrb[142].mxu1 }
0x1d71   : > { %5888 = vrot.lane.b32.xlu1 %v7599_v51, %s7952_s26  ;;  %v5530_v16 = vpop.f32.mrb[143].mxu1  ;;  %v5825_v51 = vpop.permute.xlu1 %5824 }
0x1d73   : > { %5882 = vrot.lane.b32.xlu0 %v5527_v45, %s7952_s26  ;;  %v5823_v45 = vpop.permute.xlu0 %5822 }
0x1d75   : > { %5884 = vrot.lane.b32.xlu1 %v5530_v16, %s7952_s26 }
0x1d77   : > { %v5819_v16 = vpop.permute.xlu0 %5818 }
0x1d7e   : > { %v7606_v35 = vpop.f32.mrb[144].mxu1 }
0x1d7f   : > { %v5596_v17 = vpop.f32.mrb[145].mxu1  ;;  %v5613_v53 = vmul.f32 %v9982_v50, %v7606_v35  ;;  %v5821_v35 = vpop.permute.xlu1 %5820 }
0x1d80   : > { %v7607_v15 = vpop.f32.mrb[146].mxu1  ;;  %v5611_v40 = vmul.f32 %v9988_v4, %v5596_v17  ;;  %v5839_v17 = vpop.permute.xlu0 %5838 }
0x1d81   : > { %v5614_v10 = vmul.f32 %v9985_v41, %v7607_v15  ;;  %v5599_v63 = vpop.f32.mrb[147].mxu1 }
0x1d82   : > { %v5612_v54 = vmul.f32 %v9991_v28, %v5599_v63 }
0x1d83   : > { %v5616_v3 = vpack.c.bf16 %v5614_v10, %v5613_v53  ;;  %v5841_v15 = vpop.permute.xlu1 %5840 }
0x1d84   : > { %v5615_v44 = vpack.c.bf16 %v5612_v54, %v5611_v40  ;;  %v5835_v53 = vpop.permute.xlu0 %5834 }
0x1d86   : > { %7612 = vmatprep.mubr.msk.bf16.mxu0 %vm385_vm0, %v5615_v44 }
0x1d87   : > { %7613 = vmatmul.mubr.msk.bf16.vlgmr.msra.gmra.mrb[144].mxu0 %vm385_vm0, %v5616_v3  ;;  %v5837_v10 = vpop.permute.xlu1 %5836 }
0x1d88   : > { %7617 = vmatpush3.bf16.xpose.msra.mxu0 %v5693_v42  ;;  %7620 = vmatprep.mubr.msk.bf16.mxu0 %vm1048_vm3, %v10974_v59  ;;  %v5855_v63 = vpop.permute.xlu0 %5854 }
0x1d89   : > { %7731 = vmatprep.subr.msk.bf16.mxu0 %vm1048_vm3, %v10975_v13 }
0x1d8b   : > { %v5857_v40 = vpop.permute.xlu1 %5856 }
0x1d8c   : > { %v5851_v54 = vpop.permute.xlu0 %5850 }
0x1d8f   : > { %v5853_v3 = vpop.permute.xlu1 %5852 }
0x1d90   : > { %7619 = vmatpush3.bf16.xpose.msra.mxu0 %v5696_v32  ;;  %v5871_v44 = vpop.permute.xlu0 %5870 }
0x1d93   : > { %v5873_v42 = vpop.permute.xlu1 %5872 }
0x1d94   : > { %v5867_v59 = vpop.permute.xlu0 %5866 }
0x1d97   : > { %7621 = vmatmul.mubr.msk.bf16.vlgmr.msra.gmra.mrb[148].mxu0 %vm1048_vm3, %v10976_v25  ;;  %v5869_v13 = vpop.permute.xlu1 %5868 }
0x1d98   : > { %6263 = vmatprep.mubr.f32.mxu0 %v10885_v1 }
0x1de1   : > { %v5887_v32 = vpop.permute.xlu0 %5886 }
0x1de3   : > { %v5889_v25 = vpop.permute.xlu1 %5888 }
0x1e5a   : > { %v7614_v5 = vpop.f32.mrb[144].mxu0 }
0x1e5b   : > { %5902 = vrot.lane.b32.xlu0 %v7614_v5, %s7951_s20  ;;  %v5663_v33 = vpop.f32.mrb[145].mxu0  ;;  %v5883_v5 = vpop.permute.xlu0 %5882 }
0x1e5c   : > { %v7615_v8 = vpop.f32.mrb[146].mxu0 }
0x1e5d   : > { %5904 = vrot.lane.b32.xlu1 %v7615_v8, %s7951_s20  ;;  %v5666_v55 = vpop.f32.mrb[147].mxu0 }
0x1e5f   : > { %5898 = vrot.lane.b32.xlu0 %v5663_v33, %s7951_s20  ;;  %v5885_v33 = vpop.permute.xlu1 %5884 }
0x1e61   : > { %5900 = vrot.lane.b32.xlu1 %v5666_v55, %s7951_s20 }
0x1e6a   : > { %v7622_v9 = vpop.f32.mrb[148].mxu0 }
0x1e6b   : > { %v5732_v12 = vpop.f32.mrb[149].mxu0  ;;  %v5749_v60 = vmul.f32 %v9982_v50, %v7622_v9  ;;  %v10382_v50 = vld [vmem:[#allocation2] sm:$0xff]  ;;  %v6793_v9 = vsel %vm6026_vm15, 1.0, %v10885_v1 }
0x1e6c   : > { %v7623_v39 = vpop.f32.mrb[150].mxu0  ;;  %v5747_v29 = vmul.f32 %v9988_v4, %v5732_v12  ;;  %v6794_v12 = vsel %vm6027_vm13, 1.0, %v10885_v1 }
0x1e6d   : > { %v5750_v19 = vmul.f32 %v9985_v41, %v7623_v39  ;;  %v5735_v38 = vpop.f32.mrb[151].mxu0  ;;  %v10387_v41 = vld [vmem:[#allocation2 + $0x8] sm:$0xff]  ;;  %v5926_v39 = vsel %vm1048_vm3, %v10208_v58, %v5819_v16 }
0x1e6e   : > { %v5748_v20 = vmul.f32 %v9991_v28, %v5735_v38  ;;  %v6796_v38 = vsel %vm6029_vm8, 1.0, %v10885_v1 }
0x1e6f   : > { %v5752_v48 = vpack.c.bf16 %v5750_v19, %v5749_v60  ;;  %v6038_v60 = vsub.f32 1.0, %v6793_v9  ;;  %v6795_v19 = vsel %vm6028_vm9, 1.0, %v10885_v1 }
0x1e70   : > { %v5751_v47 = vpack.c.bf16 %v5748_v20, %v5747_v29  ;;  %v5930_v29 = vsel %vm385_vm0, %v5926_v39, %v5835_v53 }
0x1e71   : > { %v6042_v16 = vmul.f32 %v6038_v60, %v10183_v11 }
0x1e72   : > { %7628 = vmatprep.mubr.msk.bf16.mxu1 %vm385_vm0, %v5751_v47  ;;  %v5927_v47 = vsel %vm1048_vm3, %v10212_v6, %v5821_v35 }
0x1e73   : > { %7629 = vmatmul.mubr.msk.bf16.vlgmr.msra.gmra.mrb[148].mxu1 %vm385_vm0, %v5752_v48  ;;  %v6039_v48 = vsub.f32 1.0, %v6794_v12  ;;  %v5931_v58 = vsel %vm385_vm0, %v5927_v47, %v5837_v10 }
0x1e74   : > { %7651 = vmatpush1.bf16.msk.msra.mxu1 %vm9576_vm5, %v10779_v7  ;;  %6174 = vmatprep.mubr.f32.mxu1 %v10885_v1  ;;  %vm10977_vm5 = vcmask 785408  }
0x1e75   : > { %7653 = vmatprep.subr.msk.bf16.mxu1 %vm9874_vm7, %v10779_v7 }
0x1e78   : > { %7655 = vmatpush1.bf16.msk.msra.mxu1 %vm9563_vm11, %v10779_v7  ;;  %vm10978_vm11 = vmmov %vm10977_vm5 }
0x1e7b   : > { %6809 = vmatmul.mubr.msk.f32.vlgmr.msra.gmra.mrb[152].mxu1 %vm385_vm0, %v10382_v50 }
0x1e7c   : > { %6180 = vmatprep.mubr.f32.mxu1 %v10885_v1 }
0x1e7f   : > { %6810 = vmatmul.mubr.msk.f32.gmra.mrb[154].mxu1 %vm385_vm0, %v10387_v41 }
0x1e80   : > { %6186 = vmatprep.mubr.f32.mxu1 %v10885_v1 }
0x1e83   : > { %6811 = vmatmul.mubr.msk.f32.gmra.mrb[156].mxu1 %vm385_vm0, %v10392_v57 }
0x1e84   : > { %6192 = vmatprep.mubr.f32.mxu1 %v10885_v1 }
0x1e87   : > { %6812 = vmatmul.mubr.msk.f32.gmra.mrb[158].mxu1 %vm385_vm0, %v10397_v22 }
0x1e88   : > { %6281 = vmatprep.mubr.f32.mxu1 %v10885_v1 }
0x1ecd   : > { %v5903_v8 = vpop.permute.xlu0 %5902 }
0x1ecf   : > { %v5905_v55 = vpop.permute.xlu1 %5904 }
0x1ed1   : > { %v5899_v20 = vpop.permute.xlu0 %5898 }
0x1f46   : > { %v7630_v56 = vpop.f32.mrb[148].mxu1 }
0x1f47   : > { %v5799_v4 = vpop.f32.mrb[149].mxu1 }
0x1f48   : > { %5914 = vrot.lane.b32.xlu0 %v5799_v4, %s7949_s9  ;;  %v7631_v28 = vpop.f32.mrb[150].mxu1 }
0x1f49   : > { %v5802_v34 = vpop.f32.mrb[151].mxu1 }
0x1f4a   : > { %5916 = vrot.lane.b32.xlu1 %v5802_v34, %s7949_s9  ;;  %v6040_v34 = vsub.f32 1.0, %v6795_v19 }
0x1f4c   : > { %5918 = vrot.lane.b32.xlu0 %v7630_v56, %s7949_s9  ;;  %v5934_v56 = vsel %vm2251_vm1, %v5930_v29, %v5851_v54  ;;  %v6043_v54 = vmul.f32 %v6039_v48, %v10194_v27 }
0x1f4d   : > { %v5938_v4 = vsel %vm2256_vm2, %v5934_v56, %v5867_v59  ;;  %v5929_v59 = vsel %vm1048_vm3, %v10210_v18, %v5825_v51  ;;  %v6044_v51 = vmul.f32 %v6040_v34, %v10172_v21 }
0x1f4e   : > { %5920 = vrot.lane.b32.xlu1 %v7631_v28, %s7949_s9  ;;  %v10409_v52 = vpop.f32.mrb[152].mxu1  ;;  %v5901_v28 = vpop.permute.xlu1 %5900  ;;  %v5933_v11 = vsel %vm385_vm0, %v5929_v59, %v5841_v15  ;;  %s272_s9 = sand.u32 1, %s7933_s22  }
0x1f4f   : > { %v10414_v14 = vpop.f32.mrb[153].mxu1  ;;  %v5937_v12 = vsel %vm2251_vm1, %v5933_v11, %v5857_v40  ;;  %s6566_s20 = sshll.u32 %s272_s9, 6  ;;  %s10580_s29 = scalar_lea.sflag [#allocation4], %s272_s9 }
0x1f50   : > { %6080 = vperm.xlu0 %7805, %v6074_v36   ;;  %v6041_v36 = vsub.f32 1.0, %v6796_v38  ;;  %s10541_s26 = scalar_lea.vmem [#allocation7], %s6566_s20 }
0x1f51   : > { %s6474_s11 = sshll.u32 %s10541_s26, 4  ;;  %s10575_s11 = int_to_ptr.vmem [resolvable:$true] %s6474_s11 }
0x1f52   : > { %6085 = vperm.xlu1 %7806, %v6075_v31   ;;  %v10419_v49 = vpop.f32.mrb[154].mxu1  ;;  %v5928_v31 = vsel %vm1048_vm3, %v10206_v30, %v5823_v45  ;;  %vm10979_vm3 = vmmov %vm10977_vm5  ;;  %v6045_v38 = vmul.f32 %v6041_v36, %v10177_v0  ;;  %s7871_s25 = scalar_lea.vmem %s10575_s11, 1024  ;;  %p7878_p4 = scmp.lt.s32.totalorder %s10575_s11, %s7876_s16 }
0x1f53   : > { %v10424_v43 = vpop.f32.mrb[155].mxu1  ;;  %v5932_v6 = vsel %vm385_vm0, %v5928_v31, %v5839_v17  ;;  %p7872_p12 = scmp.ne.s32.totalorder %s10575_s11, %s7871_s25  ;;  %p7879_p7 = scmp.lt.s32.totalorder %s7877_s17, %s7871_s25 }
0x1f54   : > { %6090 = vperm.xlu0 %7805, %v6076_v24   ;;  %v5935_v24 = vsel %vm2251_vm1, %v5931_v58, %v5853_v3  ;;  %v5936_v30 = vsel %vm2251_vm1, %v5932_v6, %v5855_v63  ;;  %v5941_v63 = vsel %vm2256_vm2, %v5937_v12, %v5873_v42  ;;  %vm10980_vm1 = vmmov %vm10979_vm3 }
0x1f55   : > { %v5939_v35 = vsel %vm2256_vm2, %v5935_v24, %v5869_v13  ;;  %v5940_v17 = vsel %vm2256_vm2, %v5936_v30, %v5871_v44  ;;  %v5945_v44 = vsel %vm2261_vm4, %v5941_v63, %v5889_v25  ;;  %p7873_p2 = pnand %p7872_p12, %p10981_p1  ;;  %p7880_p8 = por %p7879_p7, %p7878_p4 }
0x1f56   : > { %6095 = vperm.xlu1 %7806, %v6077_v61   ;;  %v10426_v2 = vpop.f32.mrb[156].mxu1  ;;  %v5942_v61 = vsel %vm2261_vm4, %v5938_v4, %v5883_v5  ;;  %v5943_v45 = vsel %vm2261_vm4, %v5939_v35, %v5885_v33  ;;  %v5944_v27 = vsel %vm2261_vm4, %v5940_v17, %v5887_v32  ;;  %v5949_v40 = vsel %vm10980_vm1, %v5945_v44, %v5905_v55 }
0x1f57   : > { %v10428_v46 = vpop.f32.mrb[157].mxu1  ;;  %v5946_v53 = vsel %vm10977_vm5, %v5942_v61, %v5899_v20  ;;  %v5947_v13 = vsel %vm10978_vm11, %v5943_v45, %v5901_v28  ;;  %v5948_v33 = vsel %vm10979_vm3, %v5944_v27, %v5903_v8  ;;  %p7874_p3 = pneg %p7873_p2 }
0x1f59   : > { %p7881_p11 = pnand %p7880_p8, %p7874_p3 }
0x1f5a   : > { %v10430_v37 = vpop.f32.mrb[158].mxu1 }
0x1f5b   : > { %v10432_v26 = vpop.f32.mrb[159].mxu1 }
0x1fba   : > { %v5915_v10 = vpop.permute.xlu0 %5914 }
0x1fbb   : > { %v5950_v3 = vsel %vm2271_vm6, %v5946_v53, %v5915_v10 }
0x1fbc   : > { %v6046_v5 = vsub.f32 %v5950_v3, %v6042_v16  ;;  %v5917_v9 = vpop.permute.xlu1 %5916 }
0x1fbd   : > { %v5951_v18 = vsel %vm2271_vm6, %v5947_v13, %v5917_v9 }
0x1fbe   : > { %v6050_v39 = vmul.f32 0.5, %v6046_v5  ;;  %v6047_v15 = vsub.f32 %v5951_v18, %v6043_v54  ;;  %v5919_v60 = vpop.permute.xlu0 %5918 }
0x1fbf   : > { %v5952_v19 = vsel %vm2271_vm6, %v5948_v33, %v5919_v60 }
0x1fc0   : > { %v6051_v32 = vmul.f32 0.5, %v6047_v15  ;;  %v6048_v29 = vsub.f32 %v5952_v19, %v6044_v51  ;;  %v5921_v20 = vpop.permute.xlu1 %5920  ;;  %v6054_v48 = vadd.f32 %v6050_v39, %v6042_v16 }
0x1fc1   : > { %v5953_v21 = vsel %vm2271_vm6, %v5949_v40, %v5921_v20 }
0x1fc2   : > { %v6052_v42 = vmul.f32 0.5, %v6048_v29  ;;  %v6049_v47 = vsub.f32 %v5953_v21, %v6045_v38  ;;  %v6055_v8 = vadd.f32 %v6051_v32, %v6043_v54  ;;  %vm6058_vm2 = vcmp.ge.f32.partialorder %v6054_v48, 0.5 }
0x1fc4   : > { %v6053_v56 = vmul.f32 0.5, %v6049_v47  ;;  %vm6059_vm7 = vcmp.ge.f32.partialorder %v6055_v8, 0.5  ;;  %v6056_v58 = vadd.f32 %v6052_v42, %v6044_v51 }
0x1fc5   : > { %vm7656_vm4 = vmpackc.low %vm6059_vm7, %vm6058_vm2 }
0x1fc6   : > { %7657 = vmatprep.subr.msk.bf16.mxu0 %vm7656_vm4, %v10779_v7  ;;  %7664 = vmatprep.subr.msk.bf16.mxu1 %vm7656_vm4, %v10779_v7  ;;  %v6057_v0 = vadd.f32 %v6053_v56, %v6045_v38  ;;  %vm6060_vm6 = vcmp.ge.f32.partialorder %v6056_v58, 0.5 }
0x1fc7   : > { %7659 = vmatpush1.bf16.msk.msra.mxu0 %vm10202_vm14, %v10779_v7  ;;  %7666 = vmatpush1.bf16.msk.msra.mxu1 %vm10202_vm14, %v10779_v7 }
0x1fc8   : > { %vm6061_vm10 = vcmp.ge.f32.partialorder %v6057_v0, 0.5 }
0x1fc9   : > { %vm7660_vm9 = vmpackc.low %vm6061_vm10, %vm6060_vm6 }
0x1fca   : > { %7661 = vmatprep.subr.msk.bf16.mxu0 %vm7660_vm9, %v10779_v7  ;;  %7665 = vmatprep.subr.msk.bf16.mxu1 %vm7660_vm9, %v10779_v7 }
0x1fcb   : > { %7663 = vmatpush1.bf16.msk.msra.mxu0 %vm10189_vm12, %v10779_v7  ;;  %7667 = vmatpush1.bf16.msk.msra.mxu1 %vm10189_vm12, %v10779_v7 }
0x1fce   : > { %6821 = vmatmul.mubr.msk.f32.vlgmr.msra.gmra.mrb[152].mxu0 %vm385_vm0, %v10382_v50  ;;  %6824 = vmatmul.mubr.msk.f32.vlgmr.msra.gmra.mrb[160].mxu1 %vm385_vm0, %v10397_v22 }
0x1fcf   : > { %v10502_v23 = vpop.permute.xlu0 %6080  ;;  %6269 = vmatprep.mubr.f32.mxu0 %v10885_v1 }
0x1fd0   : > { %v6177_v25 = vadd.f32 %v10409_v52, %v10502_v23 }
0x1fd1   : > { %v10507_v55 = vpop.permute.xlu1 %6085 }
0x1fd2   : > { %v6288_v4 = vmul.f32 0.5, %v6177_v25  ;;  %v6183_v62 = vadd.f32 %v10419_v49, %v10507_v55  ;;  %6822 = vmatmul.mubr.msk.f32.gmra.mrb[154].mxu0 %vm385_vm0, %v10387_v41  ;;  %v6179_v41 = vadd.f32 %v10414_v14, %v10502_v23  ;;  %v6185_v16 = vadd.f32 %v10424_v43, %v10507_v55 }
0x1fd3   : > { %v10513_v7 = vpop.permute.xlu0 %6090  ;;  %6275 = vmatprep.mubr.f32.mxu0 %v10885_v1 }
0x1fd4   : > { %vm6296_vm8 = vcmp.ge.f32.partialorder %v6288_v4, 1.0  ;;  %v6289_v50 = vmul.f32 0.5, %v6183_v62  ;;  %v6189_v22 = vadd.f32 %v10426_v2, %v10513_v7 }
0x1fd5   : > { %v6825_v52 = vsel %vm6296_vm8, 1.0, %v10885_v1  ;;  %v10519_v28 = vpop.permute.xlu1 %6095 }
0x1fd6   : > { %v6308_v34 = vsub.f32 1.0, %v6825_v52  ;;  %vm6297_vm12 = vcmp.ge.f32.partialorder %v6289_v50, 1.0  ;;  %v6290_v36 = vmul.f32 0.5, %v6189_v22  ;;  %v6195_v49 = vadd.f32 %v10430_v37, %v10519_v28  ;;  %6823 = vmatmul.mubr.msk.f32.gmra.mrb[156].mxu0 %vm385_vm0, %v10392_v57 }
0x1fd7   : > { %v6826_v31 = vsel %vm6297_vm12, 1.0, %v10885_v1  ;;  %v6191_v57 = vadd.f32 %v10428_v46, %v10513_v7  ;;  %v6197_v43 = vadd.f32 %v10432_v26, %v10519_v28 }
0x1fd8   : > { %v6312_v24 = vmul.f32 %v6308_v34, %v6288_v4  ;;  %v6309_v2 = vsub.f32 1.0, %v6826_v31  ;;  %vm6298_vm15 = vcmp.ge.f32.partialorder %v6290_v36, 1.0  ;;  %v6291_v61 = vmul.f32 0.5, %v6195_v49 }
0x1fd9   : > { %v6827_v6 = vsel %vm6298_vm15, 1.0, %v10885_v1 }
0x1fda   : > { %v6316_v35 = vsub.f32 %v6179_v41, %v6312_v24  ;;  %v6313_v37 = vmul.f32 %v6309_v2, %v6289_v50  ;;  %v6310_v53 = vsub.f32 1.0, %v6827_v6  ;;  %vm6299_vm0 = vcmp.ge.f32.partialorder %v6291_v61, 1.0 }
0x1fdb   : > { %v6828_v14 = vsel %vm6299_vm0, 1.0, %v10885_v1 }
0x1fdc   : > { %v6320_v10 = vmul.f32 0.5, %v6316_v35  ;;  %v6317_v54 = vsub.f32 %v6185_v16, %v6313_v37  ;;  %v6314_v59 = vmul.f32 %v6310_v53, %v6290_v36  ;;  %v6311_v30 = vsub.f32 1.0, %v6828_v14 }
0x1fde   : > { %v6324_v45 = vadd.f32 %v6320_v10, %v6312_v24  ;;  %v6321_v3 = vmul.f32 0.5, %v6317_v54  ;;  %v6318_v11 = vsub.f32 %v6191_v57, %v6314_v59  ;;  %v6315_v17 = vmul.f32 %v6311_v30, %v6291_v61 }
0x1fe0   : > { %vm6328_vm13 = vcmp.ge.f32.partialorder %v6324_v45, 1.0  ;;  %v6325_v13 = vadd.f32 %v6321_v3, %v6313_v37  ;;  %v6322_v5 = vmul.f32 0.5, %v6318_v11  ;;  %v6319_v46 = vsub.f32 %v6197_v43, %v6315_v17 }
0x1fe1   : > { %v6829_v9 = vsel %vm6328_vm13, 1.0, %v10885_v1 }
0x1fe2   : > { %vm6329_vm14 = vcmp.ge.f32.partialorder %v6325_v13, 1.0  ;;  %v6326_v12 = vadd.f32 %v6322_v5, %v6314_v59  ;;  %v6323_v27 = vmul.f32 0.5, %v6319_v46  ;;  %v6340_v18 = vsub.f32 1.0, %v6829_v9 }
0x1fe3   : > { %v6855_v51 = vpack.c.bf16 %v6829_v9, %v6825_v52  ;;  %v6830_v63 = vsel %vm6329_vm14, 1.0, %v10885_v1 }
0x1fe4   : > { %vm6330_vm5 = vcmp.ge.f32.partialorder %v6326_v12, 1.0  ;;  %v6327_v26 = vadd.f32 %v6323_v27, %v6315_v17  ;;  %v6344_v33 = vmul.f32 %v6340_v18, %v6324_v45  ;;  %v6341_v39 = vsub.f32 1.0, %v6830_v63 }
0x1fe5   : > { %6452 = vst [vmem:[%s10541_s26] sm:$0xff] %v6855_v51  ;;  %v6857_v15 = vpack.c.bf16 %v6830_v63, %v6826_v31  ;;  %v6831_v60 = vsel %vm6330_vm5, 1.0, %v10885_v1 }
0x1fe6   : > { %vm6331_vm11 = vcmp.ge.f32.partialorder %v6327_v26, 1.0  ;;  %v6345_v44 = vmul.f32 %v6341_v39, %v6325_v13  ;;  %v6342_v19 = vsub.f32 1.0, %v6831_v60  ;;  %v6859_v38 = vpack.c.bf16 %v6831_v60, %v6827_v6 }
0x1fe7   : > { %v6832_v40 = vsel %vm6331_vm11, 1.0, %v10885_v1  ;;  %6454 = vst [vmem:[%s10541_s26 + $0x10] sm:$0xff] %v6857_v15 }
0x1fe8   : > { %v6343_v32 = vsub.f32 1.0, %v6832_v40  ;;  %v6861_v29 = vpack.c.bf16 %v6832_v40, %v6828_v14  ;;  %v6346_v20 = vmul.f32 %v6342_v19, %v6326_v12  ;;  %6456 = vst [vmem:[%s10541_s26 + $0x20] sm:$0xff] %v6859_v38 }
0x1fea   : > { %v6347_v48 = vmul.f32 %v6343_v32, %v6327_v26  ;;  %6458 = vst [vmem:[%s10541_s26 + $0x30] sm:$0xff] %v6861_v29 }
0x20a1   : > { %v6265_v21 = vpop.f32.mrb[152].mxu0  ;;  %v6283_v42 = vpop.f32.mrb[160].mxu1 }
0x20a2   : > { %v6266_v47 = vadd.f32 %v6265_v21, %v10502_v23  ;;  %v6284_v8 = vadd.f32 %v6283_v42, %v10519_v28  ;;  %v6267_v56 = vpop.f32.mrb[153].mxu0  ;;  %v6285_v58 = vpop.f32.mrb[161].mxu1 }
0x20a3   : > { %v6268_v57 = vadd.f32 %v6267_v56, %v10502_v23  ;;  %v6286_v14 = vadd.f32 %v6285_v58, %v10519_v28 }
0x20a4   : > { %v6348_v0 = vsub.f32 %v6266_v47, %v6344_v33  ;;  %v6351_v25 = vsub.f32 %v6284_v8, %v6347_v48 }
0x20a5   : > { %v6271_v4 = vpop.f32.mrb[154].mxu0 }
0x20a6   : > { %v6352_v62 = vmul.f32 0.5, %v6348_v0  ;;  %v6355_v50 = vmul.f32 0.5, %v6351_v25  ;;  %v6272_v22 = vadd.f32 %v6271_v4, %v10507_v55  ;;  %v6273_v52 = vpop.f32.mrb[155].mxu0 }
0x20a7   : > { %v6274_v17 = vadd.f32 %v6273_v52, %v10507_v55 }
0x20a8   : > { %v6356_v34 = vadd.f32 %v6352_v62, %v6344_v33  ;;  %v6359_v36 = vadd.f32 %v6355_v50, %v6347_v48  ;;  %v6349_v49 = vsub.f32 %v6272_v22, %v6345_v44 }
0x20a9   : > { %v6277_v41 = vpop.f32.mrb[156].mxu0 }
0x20aa   : > { %vm6360_vm3 = vcmp.ge.f32.partialorder %v6356_v34, 1.0  ;;  %vm6363_vm1 = vcmp.ge.f32.partialorder %v6359_v36, 1.0  ;;  %v6353_v31 = vmul.f32 0.5, %v6349_v49  ;;  %v6278_v24 = vadd.f32 %v6277_v41, %v10513_v7  ;;  %v6279_v2 = vpop.f32.mrb[157].mxu0 }
0x20ab   : > { %v6833_v61 = vsel %vm6360_vm3, 1.0, %v10885_v1  ;;  %v6836_v16 = vsel %vm6363_vm1, 1.0, %v10885_v1  ;;  %v6280_v18 = vadd.f32 %v6279_v2, %v10513_v7 }
0x20ac   : > { %v6372_v6 = vsub.f32 1.0, %v6833_v61  ;;  %v6375_v35 = vsub.f32 1.0, %v6836_v16  ;;  %v6357_v37 = vadd.f32 %v6353_v31, %v6345_v44  ;;  %v6350_v53 = vsub.f32 %v6278_v24, %v6346_v20 }
0x20ae   : > { %v6376_v10 = vmul.f32 %v6372_v6, %v6356_v34  ;;  %v6379_v54 = vmul.f32 %v6375_v35, %v6359_v36  ;;  %vm6361_vm2 = vcmp.ge.f32.partialorder %v6357_v37, 1.0  ;;  %v6354_v59 = vmul.f32 0.5, %v6350_v53 }
0x20af   : > { %v6834_v30 = vsel %vm6361_vm2, 1.0, %v10885_v1 }
0x20b0   : > { %v6380_v43 = vsub.f32 %v6268_v57, %v6376_v10  ;;  %v6383_v45 = vsub.f32 %v6286_v14, %v6379_v54  ;;  %v6373_v3 = vsub.f32 1.0, %v6834_v30  ;;  %v6358_v11 = vadd.f32 %v6354_v59, %v6346_v20 }
0x20b2   : > { %v6384_v13 = vmul.f32 0.5, %v6380_v43  ;;  %v6387_v5 = vmul.f32 0.5, %v6383_v45  ;;  %v6377_v46 = vmul.f32 %v6373_v3, %v6357_v37  ;;  %vm6362_vm7 = vcmp.ge.f32.partialorder %v6358_v11, 1.0 }
0x20b3   : > { %v6835_v23 = vsel %vm6362_vm7, 1.0, %v10885_v1 }
0x20b4   : > { %v6388_v28 = vadd.f32 %v6384_v13, %v6376_v10  ;;  %v6391_v9 = vadd.f32 %v6387_v5, %v6379_v54  ;;  %v6381_v12 = vsub.f32 %v6274_v17, %v6377_v46  ;;  %v6374_v27 = vsub.f32 1.0, %v6835_v23 }
0x20b6   : > { %vm6392_vm4 = vcmp.ge.f32.partialorder %v6388_v28, 1.0  ;;  %vm6395_vm6 = vcmp.ge.f32.partialorder %v6391_v9, 1.0  ;;  %v6385_v51 = vmul.f32 0.5, %v6381_v12  ;;  %v6378_v55 = vmul.f32 %v6374_v27, %v6358_v11 }
0x20b7   : > { %v6837_v63 = vsel %vm6392_vm4, 1.0, %v10885_v1  ;;  %v6840_v26 = vsel %vm6395_vm6, 1.0, %v10885_v1 }
0x20b8   : > { %v6856_v33 = vpack.c.bf16 %v6837_v63, %v6833_v61  ;;  %v6862_v39 = vpack.c.bf16 %v6840_v26, %v6836_v16  ;;  %v6389_v15 = vadd.f32 %v6385_v51, %v6377_v46  ;;  %v6382_v60 = vsub.f32 %v6280_v18, %v6378_v55 }
0x20ba   : > { %6453 = vst [vmem:[%s10541_s26 + $0x8] sm:$0xff] %v6856_v33  ;;  %6459 = vst [vmem:[%s10541_s26 + $0x38] sm:$0xff] %v6862_v39  ;;  %vm6393_vm10 = vcmp.ge.f32.partialorder %v6389_v15, 1.0  ;;  %v6386_v7 = vmul.f32 0.5, %v6382_v60 }
0x20bb   : > { %v6838_v44 = vsel %vm6393_vm10, 1.0, %v10885_v1 }
0x20bc   : > { %v6858_v19 = vpack.c.bf16 %v6838_v44, %v6834_v30  ;;  %v6390_v38 = vadd.f32 %v6386_v7, %v6378_v55 }
0x20be   : > { %6455 = vst [vmem:[%s10541_s26 + $0x18] sm:$0xff] %v6858_v19  ;;  %vm6394_vm9 = vcmp.ge.f32.partialorder %v6390_v38, 1.0 }
0x20bf   : > { %v6839_v40 = vsel %vm6394_vm9, 1.0, %v10885_v1 }
0x20c0   : > { %v6860_v32 = vpack.c.bf16 %v6839_v40, %v6835_v23 }
0x20c2   : > { %6457 = vst [vmem:[%s10541_s26 + $0x28] sm:$0xff] %v6860_v32 }
0x20c3   : > { %7884 = shalt.err (!%p7881_p11)
}
0x20c4   : > { %s7885_s18 = scalar_lea.hbm %s10573_s14, 1024  ;;  %s7889_s20 = scalar_lea.hbm %s10628_s6, 2048 }
0x20c5   : > { %p7886_p13 = scmp.ne.s32.totalorder %s10573_s14, %s7885_s18  ;;  %p7890_p6 = scmp.lt.u32.totalorder %s10573_s14, %s10628_s6 }
0x20c6   : > { %p7891_p9 = scmp.lt.u32.totalorder %s7889_s20, %s7885_s18  ;;  %p7893_p12 = scmp.lt.u32.totalorder %s7885_s18, %s10573_s14 }
0x20c7   : > { %p7887_p5 = pnand %p7886_p13, %p10981_p1 }
0x20c8   : > { %p7892_p10 = por %p7891_p9, %p7890_p6 }
0x20c9   : > { %p7888_p0 = pneg %p7887_p5 }
0x20ca   : > { %p7894_p2 = por %p7893_p12, %p7892_p10 }
0x20cc   : > { %p7895_p3 = pnand %p7894_p2, %p7888_p0 }
0x20ce   : > { %7898 = shalt.err (!%p7895_p3)
}
0x20cf   : > { %s7958_s13 = smov 256  }
0x20d0   : > { %7740 = dma.vmem_to_hbm [thread:$0]  (%p10981_p1), %s10575_s11, 1024, %s10573_s14, %s10580_s29, %s7958_s13, %s7958_s13, %s7956_s15  }
0x20d1 PF: > { %p7757_p4 = scmp.ge.s32.totalorder %s7941_s24, 2  ;;  %s6489_s12 = sand.u32 1, %s7929_s21  }
0x20d2   : > { %p10982_p7 = scmp.ne.s32.totalorder %s10719_s8, 0  ;;  %s6490_s25 = scalar_lea.sflag [#allocation4], %s6489_s12 }
0x20d4   : > { %p7750_p8 = pnand %p7757_p4, %p10982_p7 }
0x20d6   : > { %7924 = dma.done.wait (!%p7750_p8), %s6490_s25, 1024  }
0x20d7   : > { %7926 = vsyncadd (!%p7750_p8), %s6490_s25, 4294966272  ;;  %p18_p11 = scmp.ge.s32.totalorder %s8019_s27, 4   ;;  %s10983_s21 = smov %s7933_s22 }
0x20d8   : > { %s10984_s22 = smov %s7937_s23  ;;  %s10985_s23 = smov %s8030_s30 }
0x20d9   : > { %s10986_s24 = smov %s8019_s27  ;;  %20 = sbr.rel (!%p18_p11) target bundleno = 5 (0x5), region = 88 }
0x20e0   :  { %6495 = vsyncpa [#allocation3], 1 }
0x20e1   :  { %6497 = vsyncpa [#allocation3 + $0x1], 1 }
0x20e2   :  { %6498 = vsyncpa [#allocation6], 1 }
0x20e3   :  { %6499 = vsyncpa [#allocation4], 1 }
0x20e4   :  { %6501 = vsyncpa [#allocation4 + $0x1], 1 }

</bundles_post_ra>
